<compile_context>
chip_gen: v7x
topology: tpu7x:2x2x1
jax: 0.10.0
libtpu: 0.0.40
codegen_flags: <defaults>
</compile_context>

<pallas_src>
import math

import jax
import jax.numpy as jnp
from jax.experimental import pallas as pl
from jax.experimental.pallas import tpu as pltpu  # noqa: F401  (TPU backend)

# ---------------- config (small, consistent with the module) ----------------
HIDDEN = 32
NUM_HEADS = 4
HEAD_DIM = HIDDEN // NUM_HEADS          # 8
MAX_REL = 4                             # max_relative_positions
NUM_REL = 2 * MAX_REL + 1               # 9
MAX_SEQ = 16                            # max_seq_length (only sizes the table)
BATCH = 2
SEQ = 8
SCALE = 1.0 / math.sqrt(HEAD_DIM)


# ------------------------- single fused Pallas kernel ------------------------
def _fused_layer_kernel(xt_ref, sxt_ref, xi_ref, sxi_ref,
                        wqkv_t_ref, bqkv_t_ref, wsp_t_ref, bsp_t_ref, reltT_t_ref,
                        wqkv_i_ref, bqkv_i_ref, wsp_i_ref, bsp_i_ref, reltT_i_ref,
                        wo_ref, onehot_ref,
                        out_ref, tw_ref, iw_ref):
    # Fused projections: 2 wide matmuls per branch instead of 5 narrow ones.
    qkv_t = jnp.dot(xt_ref[...], wqkv_t_ref[...],
                    preferred_element_type=jnp.float32) + bqkv_t_ref[...]   # (B*L, 3H*D)
    sp_t = jnp.dot(sxt_ref[...], wsp_t_ref[...],
                   preferred_element_type=jnp.float32) + bsp_t_ref[...]     # (B*L, 2H*D)
    qkv_i = jnp.dot(xi_ref[...], wqkv_i_ref[...],
                    preferred_element_type=jnp.float32) + bqkv_i_ref[...]
    sp_i = jnp.dot(sxi_ref[...], wsp_i_ref[...],
                   preferred_element_type=jnp.float32) + bsp_i_ref[...]

    reltT_t = reltT_t_ref[...]     # (D, R)  relative table, pre-transposed
    reltT_i = reltT_i_ref[...]
    onehot = onehot_ref[...]       # (L, L, R), onehot[i,j,r] = [clip(j-i)+MAX_REL == r]
    wo = wo_ref[...]               # (HIDDEN, HIDDEN), bias-free o_proj

    def head_attn(qkv_b, sp_b, reltT, c0):
        q = qkv_b[:, c0:c0 + HEAD_DIM]                                    # (L, D)
        k = qkv_b[:, HIDDEN + c0:HIDDEN + c0 + HEAD_DIM]
        v = qkv_b[:, 2 * HIDDEN + c0:2 * HIDDEN + c0 + HEAD_DIM]
        sq = sp_b[:, c0:c0 + HEAD_DIM]
        sk = sp_b[:, HIDDEN + c0:HIDDEN + c0 + HEAD_DIM]

        scores = jnp.dot(q, k.T, preferred_element_type=jnp.float32) * SCALE
        spatial = jnp.dot(sq, sk.T, preferred_element_type=jnp.float32) * SCALE
        # Shaw-style relative term (NOT scaled): rel[i, j] = <q[j], E[clip(j-i)]>
        qE = jnp.dot(q, reltT, preferred_element_type=jnp.float32)        # (L, R)
        rel = jnp.sum(onehot * qE[None, :, :], axis=-1)                   # (L, L)

        w = scores + rel + spatial
        w = w - jnp.max(w, axis=-1, keepdims=True)
        e = jnp.exp(w)
        p = e / jnp.sum(e, axis=-1, keepdims=True)
        ctx = jnp.dot(p, v, preferred_element_type=jnp.float32)           # (L, D)
        return ctx, p

    for b in range(BATCH):
        r0 = b * SEQ
        qkv_t_b = qkv_t[r0:r0 + SEQ, :]
        sp_t_b = sp_t[r0:r0 + SEQ, :]
        qkv_i_b = qkv_i[r0:r0 + SEQ, :]
        sp_i_b = sp_i[r0:r0 + SEQ, :]

        out_rows = jnp.zeros((SEQ, HIDDEN), jnp.float32)
        for h in range(NUM_HEADS):
            c0 = h * HEAD_DIM
            ctx_t, p_t = head_attn(qkv_t_b, sp_t_b, reltT_t, c0)
            ctx_i, p_i = head_attn(qkv_i_b, sp_i_b, reltT_i, c0)
            tw_ref[b, h] = p_t
            iw_ref[b, h] = p_i
            # Fused bias-free o_proj: per-head partial product, accumulated.
            out_rows = out_rows + jnp.dot(ctx_t + ctx_i, wo[c0:c0 + HEAD_DIM, :],
                                          preferred_element_type=jnp.float32)
        # Lane-dense (SEQ, HIDDEN) row-slab store.
        out_ref[r0:r0 + SEQ, :] = out_rows


# ------------------------------ glue / params -------------------------------
def _make_onehot(seq_len):
    idx = jnp.arange(seq_len)
    dist = idx[None, :] - idx[:, None]                       # [i, j] = j - i
    clipped = jnp.clip(dist, -MAX_REL, MAX_REL) + MAX_REL    # (L, L) in [0, 2*MAX_REL]
    return (clipped[:, :, None] == jnp.arange(NUM_REL)[None, None, :]).astype(jnp.float32)


def make_branch_params(key):
    keys = jax.random.split(key, 11)

    def lin(kw, kb):
        w = jax.random.normal(kw, (HIDDEN, HIDDEN), jnp.float32) * 0.05
        b = jax.random.normal(kb, (HIDDEN,), jnp.float32) * 0.05
        return w, b

    p = {}
    p["wq"], p["bq"] = lin(keys[0], keys[1])
    p["wk"], p["bk"] = lin(keys[2], keys[3])
    p["wv"], p["bv"] = lin(keys[4], keys[5])
    p["wqs"], p["bqs"] = lin(keys[6], keys[7])
    p["wks"], p["bks"] = lin(keys[8], keys[9])
    # relative_positions_k table (relative_positions_q exists but is unused in forward)
    p["rel_table"] = jax.random.normal(keys[10], (NUM_REL, HEAD_DIM), jnp.float32) * 0.1
    return p


def pack_params(params):
    """One-time packing of per-branch weights into fused matmul operands."""
    def branch(p):
        return {
            "wqkv": jnp.concatenate([p["wq"], p["wk"], p["wv"]], axis=1),     # (32, 96)
            "bqkv": jnp.concatenate([p["bq"], p["bk"], p["bv"]])[None, :],    # (1, 96)
            "wsp": jnp.concatenate([p["wqs"], p["wks"]], axis=1),             # (32, 64)
            "bsp": jnp.concatenate([p["bqs"], p["bks"]])[None, :],            # (1, 64)
            "reltT": p["rel_table"].T,                                        # (D, R)
        }
    return {
        "text": branch(params["text"]),
        "img": branch(params["img"]),
        "wo": params["wo"],
        "onehot": _make_onehot(SEQ),
    }


def multimodal_attention_layer(text, img, text_sp, img_sp, packed):
    """Whole layer as one fused pallas_call (no grid, everything VMEM-resident)."""
    B, L, _ = text.shape
    pt, pi = packed["text"], packed["img"]
    out2, tw, iw = pl.pallas_call(
        _fused_layer_kernel,
        out_shape=(
            jax.ShapeDtypeStruct((B * L, HIDDEN), jnp.float32),
            jax.ShapeDtypeStruct((B, NUM_HEADS, L, L), jnp.float32),
            jax.ShapeDtypeStruct((B, NUM_HEADS, L, L), jnp.float32),
        ),
    )(text.reshape(B * L, HIDDEN), text_sp.reshape(B * L, HIDDEN),
      img.reshape(B * L, HIDDEN), img_sp.reshape(B * L, HIDDEN),
      pt["wqkv"], pt["bqkv"], pt["wsp"], pt["bsp"], pt["reltT"],
      pi["wqkv"], pi["bqkv"], pi["wsp"], pi["bsp"], pi["reltT"],
      packed["wo"], packed["onehot"])
    return out2.reshape(B, L, HIDDEN), tw, iw


# --------------------------- pure-JAX reference ------------------------------
def rel_pos_embed(table, q_len):
    idx = jnp.arange(q_len)
    dist = idx[None, :] - idx[:, None]                   # [i, j] = j - i
    clipped = jnp.clip(dist, -MAX_REL, MAX_REL) + MAX_REL
    return table[clipped]                                # (L, L, D)


def _ref_branch(x, sx, p):
    B, L, _ = x.shape

    def heads(t):
        return t.reshape(B, L, NUM_HEADS, HEAD_DIM).transpose(0, 2, 1, 3)

    q = heads(x @ p["wq"] + p["bq"])
    k = heads(x @ p["wk"] + p["bk"])
    v = heads(x @ p["wv"] + p["bv"])
    sq = heads(sx @ p["wqs"] + p["bqs"])
    sk = heads(sx @ p["wks"] + p["bks"])
    rel = rel_pos_embed(p["rel_table"], L)

    scores = jnp.einsum("bhid,bhjd->bhij", q, k) * SCALE
    relw = jnp.einsum("bhjd,ijd->bhij", q, rel)
    sp = jnp.einsum("bhid,bhjd->bhij", sq, sk) * SCALE
    w = jax.nn.softmax(scores + relw + sp, axis=-1)
    out = jnp.einsum("bhij,bhjd->bhid", w, v)
    return out, w


def _ref_layer(text, img, text_sp, img_sp, params):
    B, L, _ = text.shape
    t_out, t_w = _ref_branch(text, text_sp, params["text"])
    i_out, i_w = _ref_branch(img, img_sp, params["img"])
    attn = (t_out + i_out).transpose(0, 2, 1, 3).reshape(B, L, HIDDEN)
    return attn @ params["wo"], t_w, i_w


# ---------------------------------- main -------------------------------------
if __name__ == "__main__":
    key = jax.random.PRNGKey(0)
    kp1, kp2, kwo, kx1, kx2, kx3, kx4 = jax.random.split(key, 7)

    params = {
        "text": make_branch_params(kp1),
        "img": make_branch_params(kp2),
        "wo": jax.random.normal(kwo, (HIDDEN, HIDDEN), jnp.float32) * 0.05,
    }
    packed = pack_params(params)

    text = jax.random.normal(kx1, (BATCH, SEQ, HIDDEN), jnp.float32)
    img = jax.random.normal(kx2, (BATCH, SEQ, HIDDEN), jnp.float32)
    text_sp = jax.random.normal(kx3, (BATCH, SEQ, HIDDEN), jnp.float32)
    img_sp = jax.random.normal(kx4, (BATCH, SEQ, HIDDEN), jnp.float32)

    fn = jax.jit(multimodal_attention_layer)
    out, t_w, i_w = fn(text, img, text_sp, img_sp, packed)
    jax.block_until_ready((out, t_w, i_w))

    ref_out, ref_tw, ref_iw = _ref_layer(text, img, text_sp, img_sp, params)
    assert jnp.allclose(out, ref_out, atol=1e-4, rtol=1e-4)
    assert jnp.allclose(t_w, ref_tw, atol=1e-4, rtol=1e-4)
    assert jnp.allclose(i_w, ref_iw, atol=1e-4, rtol=1e-4)

    print("KERNEL_OK")
</pallas_src>

<mosaic_0001>
module attributes {stable_mosaic.version = 11 : i64} {
  func.func @_fused_layer_kernel(%arg0: memref<16x32xf32, #tpu.memory_space<vmem>>, %arg1: memref<16x32xf32, #tpu.memory_space<vmem>>, %arg2: memref<16x32xf32, #tpu.memory_space<vmem>>, %arg3: memref<16x32xf32, #tpu.memory_space<vmem>>, %arg4: memref<32x96xf32, #tpu.memory_space<vmem>>, %arg5: memref<1x96xf32, #tpu.memory_space<vmem>>, %arg6: memref<32x64xf32, #tpu.memory_space<vmem>>, %arg7: memref<1x64xf32, #tpu.memory_space<vmem>>, %arg8: memref<8x9xf32, #tpu.memory_space<vmem>>, %arg9: memref<32x96xf32, #tpu.memory_space<vmem>>, %arg10: memref<1x96xf32, #tpu.memory_space<vmem>>, %arg11: memref<32x64xf32, #tpu.memory_space<vmem>>, %arg12: memref<1x64xf32, #tpu.memory_space<vmem>>, %arg13: memref<8x9xf32, #tpu.memory_space<vmem>>, %arg14: memref<32x32xf32, #tpu.memory_space<vmem>>, %arg15: memref<8x8x9xf32, #tpu.memory_space<vmem>>, %arg16: memref<16x32xf32, #tpu.memory_space<vmem>>, %arg17: memref<2x4x8x8xf32, #tpu.memory_space<vmem>>, %arg18: memref<2x4x8x8xf32, #tpu.memory_space<vmem>>) attributes {dimension_semantics = [], scalar_prefetch = 0 : i64, scratch_operands = 0 : i64, tpu.core_type = #tpu.core_type<tc>} {
    %c0 = arith.constant 0 : index
    %c0_0 = arith.constant 0 : index
    %0 = vector.load %arg0[%c0, %c0_0] : memref<16x32xf32, #tpu.memory_space<vmem>>, vector<16x32xf32>
    %c0_1 = arith.constant 0 : index
    %c0_2 = arith.constant 0 : index
    %1 = vector.load %arg4[%c0_1, %c0_2] : memref<32x96xf32, #tpu.memory_space<vmem>>, vector<32x96xf32>
    %cst = arith.constant dense<0.000000e+00> : vector<16x96xf32>
    %2 = tpu.matmul %0, %1, %cst {dimension_numbers = #tpu.dot_dimension_numbers<[1], [0], [0], [1], [0, 0, 1, 1], [], []>} : vector<16x32xf32>, vector<32x96xf32>, vector<16x96xf32> -> vector<16x96xf32>
    %c0_3 = arith.constant 0 : index
    %c0_4 = arith.constant 0 : index
    %3 = vector.load %arg5[%c0_3, %c0_4] : memref<1x96xf32, #tpu.memory_space<vmem>>, vector<1x96xf32>
    %4 = vector.broadcast %3 : vector<1x96xf32> to vector<16x96xf32>
    %5 = arith.addf %2, %4 : vector<16x96xf32>
    %c0_5 = arith.constant 0 : index
    %c0_6 = arith.constant 0 : index
    %6 = vector.load %arg1[%c0_5, %c0_6] : memref<16x32xf32, #tpu.memory_space<vmem>>, vector<16x32xf32>
    %c0_7 = arith.constant 0 : index
    %c0_8 = arith.constant 0 : index
    %7 = vector.load %arg6[%c0_7, %c0_8] : memref<32x64xf32, #tpu.memory_space<vmem>>, vector<32x64xf32>
    %cst_9 = arith.constant dense<0.000000e+00> : vector<16x64xf32>
    %8 = tpu.matmul %6, %7, %cst_9 {dimension_numbers = #tpu.dot_dimension_numbers<[1], [0], [0], [1], [0, 0, 1, 1], [], []>} : vector<16x32xf32>, vector<32x64xf32>, vector<16x64xf32> -> vector<16x64xf32>
    %c0_10 = arith.constant 0 : index
    %c0_11 = arith.constant 0 : index
    %9 = vector.load %arg7[%c0_10, %c0_11] : memref<1x64xf32, #tpu.memory_space<vmem>>, vector<1x64xf32>
    %10 = vector.broadcast %9 : vector<1x64xf32> to vector<16x64xf32>
    %11 = arith.addf %8, %10 : vector<16x64xf32>
    %c0_12 = arith.constant 0 : index
    %c0_13 = arith.constant 0 : index
    %12 = vector.load %arg2[%c0_12, %c0_13] : memref<16x32xf32, #tpu.memory_space<vmem>>, vector<16x32xf32>
    %c0_14 = arith.constant 0 : index
    %c0_15 = arith.constant 0 : index
    %13 = vector.load %arg9[%c0_14, %c0_15] : memref<32x96xf32, #tpu.memory_space<vmem>>, vector<32x96xf32>
    %cst_16 = arith.constant dense<0.000000e+00> : vector<16x96xf32>
    %14 = tpu.matmul %12, %13, %cst_16 {dimension_numbers = #tpu.dot_dimension_numbers<[1], [0], [0], [1], [0, 0, 1, 1], [], []>} : vector<16x32xf32>, vector<32x96xf32>, vector<16x96xf32> -> vector<16x96xf32>
    %c0_17 = arith.constant 0 : index
    %c0_18 = arith.constant 0 : index
    %15 = vector.load %arg10[%c0_17, %c0_18] : memref<1x96xf32, #tpu.memory_space<vmem>>, vector<1x96xf32>
    %16 = vector.broadcast %15 : vector<1x96xf32> to vector<16x96xf32>
    %17 = arith.addf %14, %16 : vector<16x96xf32>
    %c0_19 = arith.constant 0 : index
    %c0_20 = arith.constant 0 : index
    %18 = vector.load %arg3[%c0_19, %c0_20] : memref<16x32xf32, #tpu.memory_space<vmem>>, vector<16x32xf32>
    %c0_21 = arith.constant 0 : index
    %c0_22 = arith.constant 0 : index
    %19 = vector.load %arg11[%c0_21, %c0_22] : memref<32x64xf32, #tpu.memory_space<vmem>>, vector<32x64xf32>
    %cst_23 = arith.constant dense<0.000000e+00> : vector<16x64xf32>
    %20 = tpu.matmul %18, %19, %cst_23 {dimension_numbers = #tpu.dot_dimension_numbers<[1], [0], [0], [1], [0, 0, 1, 1], [], []>} : vector<16x32xf32>, vector<32x64xf32>, vector<16x64xf32> -> vector<16x64xf32>
    %c0_24 = arith.constant 0 : index
    %c0_25 = arith.constant 0 : index
    %21 = vector.load %arg12[%c0_24, %c0_25] : memref<1x64xf32, #tpu.memory_space<vmem>>, vector<1x64xf32>
    %22 = vector.broadcast %21 : vector<1x64xf32> to vector<16x64xf32>
    %23 = arith.addf %20, %22 : vector<16x64xf32>
    %c0_26 = arith.constant 0 : index
    %c0_27 = arith.constant 0 : index
    %24 = vector.load %arg8[%c0_26, %c0_27] : memref<8x9xf32, #tpu.memory_space<vmem>>, vector<8x9xf32>
    %c0_28 = arith.constant 0 : index
    %c0_29 = arith.constant 0 : index
    %25 = vector.load %arg13[%c0_28, %c0_29] : memref<8x9xf32, #tpu.memory_space<vmem>>, vector<8x9xf32>
    %c0_30 = arith.constant 0 : index
    %c0_31 = arith.constant 0 : index
    %c0_32 = arith.constant 0 : index
    %26 = vector.load %arg15[%c0_30, %c0_31, %c0_32] : memref<8x8x9xf32, #tpu.memory_space<vmem>>, vector<8x8x9xf32>
    %c0_33 = arith.constant 0 : index
    %c0_34 = arith.constant 0 : index
    %27 = vector.load %arg14[%c0_33, %c0_34] : memref<32x32xf32, #tpu.memory_space<vmem>>, vector<32x32xf32>
    %28 = vector.extract_strided_slice %5 {offsets = [0, 0], sizes = [8, 96], strides = [1, 1]} : vector<16x96xf32> to vector<8x96xf32>
    %29 = vector.extract_strided_slice %11 {offsets = [0, 0], sizes = [8, 64], strides = [1, 1]} : vector<16x64xf32> to vector<8x64xf32>
    %30 = vector.extract_strided_slice %17 {offsets = [0, 0], sizes = [8, 96], strides = [1, 1]} : vector<16x96xf32> to vector<8x96xf32>
    %31 = vector.extract_strided_slice %23 {offsets = [0, 0], sizes = [8, 64], strides = [1, 1]} : vector<16x64xf32> to vector<8x64xf32>
    %cst_35 = arith.constant 0.000000e+00 : f32
    %32 = vector.broadcast %cst_35 : f32 to vector<8x32xf32>
    %33 = vector.extract_strided_slice %28 {offsets = [0, 0], sizes = [8, 8], strides = [1, 1]} : vector<8x96xf32> to vector<8x8xf32>
    %34 = vector.extract_strided_slice %28 {offsets = [0, 32], sizes = [8, 8], strides = [1, 1]} : vector<8x96xf32> to vector<8x8xf32>
    %35 = vector.extract_strided_slice %28 {offsets = [0, 64], sizes = [8, 8], strides = [1, 1]} : vector<8x96xf32> to vector<8x8xf32>
    %36 = vector.extract_strided_slice %29 {offsets = [0, 0], sizes = [8, 8], strides = [1, 1]} : vector<8x64xf32> to vector<8x8xf32>
    %37 = vector.extract_strided_slice %29 {offsets = [0, 32], sizes = [8, 8], strides = [1, 1]} : vector<8x64xf32> to vector<8x8xf32>
    %38 = tpu.transpose %34, [1, 0] : vector<8x8xf32> -> vector<8x8xf32>
    %cst_36 = arith.constant dense<0.000000e+00> : vector<8x8xf32>
    %39 = tpu.matmul %33, %38, %cst_36 {dimension_numbers = #tpu.dot_dimension_numbers<[1], [0], [0], [1], [0, 0, 1, 1], [], []>} : vector<8x8xf32>, vector<8x8xf32>, vector<8x8xf32> -> vector<8x8xf32>
    %cst_37 = arith.constant 0.353553385 : f32
    %40 = vector.broadcast %cst_37 : f32 to vector<8x8xf32>
    %41 = arith.mulf %39, %40 : vector<8x8xf32>
    %42 = tpu.transpose %37, [1, 0] : vector<8x8xf32> -> vector<8x8xf32>
    %cst_38 = arith.constant dense<0.000000e+00> : vector<8x8xf32>
    %43 = tpu.matmul %36, %42, %cst_38 {dimension_numbers = #tpu.dot_dimension_numbers<[1], [0], [0], [1], [0, 0, 1, 1], [], []>} : vector<8x8xf32>, vector<8x8xf32>, vector<8x8xf32> -> vector<8x8xf32>
    %cst_39 = arith.constant 0.353553385 : f32
    %44 = vector.broadcast %cst_39 : f32 to vector<8x8xf32>
    %45 = arith.mulf %43, %44 : vector<8x8xf32>
    %cst_40 = arith.constant dense<0.000000e+00> : vector<8x9xf32>
    %46 = tpu.matmul %33, %24, %cst_40 {dimension_numbers = #tpu.dot_dimension_numbers<[1], [0], [0], [1], [0, 0, 1, 1], [], []>} : vector<8x8xf32>, vector<8x9xf32>, vector<8x9xf32> -> vector<8x9xf32>
    %47 = vector.shape_cast %46 : vector<8x9xf32> to vector<1x8x9xf32>
    %48 = vector.broadcast %47 : vector<1x8x9xf32> to vector<8x8x9xf32>
    %49 = arith.mulf %26, %48 : vector<8x8x9xf32>
    %cst_41 = arith.constant dense<0.000000e+00> : vector<8x8xf32>
    %50 = vector.multi_reduction <add>, %49, %cst_41 [2] : vector<8x8x9xf32> to vector<8x8xf32>
    %51 = arith.addf %41, %50 : vector<8x8xf32>
    %52 = arith.addf %51, %45 : vector<8x8xf32>
    %cst_42 = arith.constant dense<0xFF800000> : vector<8xf32>
    %53 = vector.multi_reduction <maximumf>, %52, %cst_42 [1] : vector<8x8xf32> to vector<8xf32>
    %54 = vector.shape_cast %53 : vector<8xf32> to vector<8x1xf32>
    %55 = vector.broadcast %54 : vector<8x1xf32> to vector<8x8xf32>
    %56 = arith.subf %52, %55 : vector<8x8xf32>
    %57 = math.exp %56 : vector<8x8xf32>
    %cst_43 = arith.constant dense<0.000000e+00> : vector<8xf32>
    %58 = vector.multi_reduction <add>, %57, %cst_43 [1] : vector<8x8xf32> to vector<8xf32>
    %59 = vector.shape_cast %58 : vector<8xf32> to vector<8x1xf32>
    %60 = vector.broadcast %59 : vector<8x1xf32> to vector<8x8xf32>
    %61 = arith.divf %57, %60 : vector<8x8xf32>
    %cst_44 = arith.constant dense<0.000000e+00> : vector<8x8xf32>
    %62 = tpu.matmul %61, %35, %cst_44 {dimension_numbers = #tpu.dot_dimension_numbers<[1], [0], [0], [1], [0, 0, 1, 1], [], []>} : vector<8x8xf32>, vector<8x8xf32>, vector<8x8xf32> -> vector<8x8xf32>
    %63 = vector.extract_strided_slice %30 {offsets = [0, 0], sizes = [8, 8], strides = [1, 1]} : vector<8x96xf32> to vector<8x8xf32>
    %64 = vector.extract_strided_slice %30 {offsets = [0, 32], sizes = [8, 8], strides = [1, 1]} : vector<8x96xf32> to vector<8x8xf32>
    %65 = vector.extract_strided_slice %30 {offsets = [0, 64], sizes = [8, 8], strides = [1, 1]} : vector<8x96xf32> to vector<8x8xf32>
    %66 = vector.extract_strided_slice %31 {offsets = [0, 0], sizes = [8, 8], strides = [1, 1]} : vector<8x64xf32> to vector<8x8xf32>
    %67 = vector.extract_strided_slice %31 {offsets = [0, 32], sizes = [8, 8], strides = [1, 1]} : vector<8x64xf32> to vector<8x8xf32>
    %68 = tpu.transpose %64, [1, 0] : vector<8x8xf32> -> vector<8x8xf32>
    %cst_45 = arith.constant dense<0.000000e+00> : vector<8x8xf32>
    %69 = tpu.matmul %63, %68, %cst_45 {dimension_numbers = #tpu.dot_dimension_numbers<[1], [0], [0], [1], [0, 0, 1, 1], [], []>} : vector<8x8xf32>, vector<8x8xf32>, vector<8x8xf32> -> vector<8x8xf32>
    %cst_46 = arith.constant 0.353553385 : f32
    %70 = vector.broadcast %cst_46 : f32 to vector<8x8xf32>
    %71 = arith.mulf %69, %70 : vector<8x8xf32>
    %72 = tpu.transpose %67, [1, 0] : vector<8x8xf32> -> vector<8x8xf32>
    %cst_47 = arith.constant dense<0.000000e+00> : vector<8x8xf32>
    %73 = tpu.matmul %66, %72, %cst_47 {dimension_numbers = #tpu.dot_dimension_numbers<[1], [0], [0], [1], [0, 0, 1, 1], [], []>} : vector<8x8xf32>, vector<8x8xf32>, vector<8x8xf32> -> vector<8x8xf32>
    %cst_48 = arith.constant 0.353553385 : f32
    %74 = vector.broadcast %cst_48 : f32 to vector<8x8xf32>
    %75 = arith.mulf %73, %74 : vector<8x8xf32>
    %cst_49 = arith.constant dense<0.000000e+00> : vector<8x9xf32>
    %76 = tpu.matmul %63, %25, %cst_49 {dimension_numbers = #tpu.dot_dimension_numbers<[1], [0], [0], [1], [0, 0, 1, 1], [], []>} : vector<8x8xf32>, vector<8x9xf32>, vector<8x9xf32> -> vector<8x9xf32>
    %77 = vector.shape_cast %76 : vector<8x9xf32> to vector<1x8x9xf32>
    %78 = vector.broadcast %77 : vector<1x8x9xf32> to vector<8x8x9xf32>
    %79 = arith.mulf %26, %78 : vector<8x8x9xf32>
    %cst_50 = arith.constant dense<0.000000e+00> : vector<8x8xf32>
    %80 = vector.multi_reduction <add>, %79, %cst_50 [2] : vector<8x8x9xf32> to vector<8x8xf32>
    %81 = arith.addf %71, %80 : vector<8x8xf32>
    %82 = arith.addf %81, %75 : vector<8x8xf32>
    %cst_51 = arith.constant dense<0xFF800000> : vector<8xf32>
    %83 = vector.multi_reduction <maximumf>, %82, %cst_51 [1] : vector<8x8xf32> to vector<8xf32>
    %84 = vector.shape_cast %83 : vector<8xf32> to vector<8x1xf32>
    %85 = vector.broadcast %84 : vector<8x1xf32> to vector<8x8xf32>
    %86 = arith.subf %82, %85 : vector<8x8xf32>
    %87 = math.exp %86 : vector<8x8xf32>
    %cst_52 = arith.constant dense<0.000000e+00> : vector<8xf32>
    %88 = vector.multi_reduction <add>, %87, %cst_52 [1] : vector<8x8xf32> to vector<8xf32>
    %89 = vector.shape_cast %88 : vector<8xf32> to vector<8x1xf32>
    %90 = vector.broadcast %89 : vector<8x1xf32> to vector<8x8xf32>
    %91 = arith.divf %87, %90 : vector<8x8xf32>
    %cst_53 = arith.constant dense<0.000000e+00> : vector<8x8xf32>
    %92 = tpu.matmul %91, %65, %cst_53 {dimension_numbers = #tpu.dot_dimension_numbers<[1], [0], [0], [1], [0, 0, 1, 1], [], []>} : vector<8x8xf32>, vector<8x8xf32>, vector<8x8xf32> -> vector<8x8xf32>
    %c0_54 = arith.constant 0 : index
    %c0_55 = arith.constant 0 : index
    %c0_56 = arith.constant 0 : index
    %c0_57 = arith.constant 0 : index
    %93 = vector.load %arg17[%c0_54, %c0_55, %c0_56, %c0_57] : memref<2x4x8x8xf32, #tpu.memory_space<vmem>>, vector<1x1x8x8xf32>
    %94 = vector.shape_cast %93 : vector<1x1x8x8xf32> to vector<8x8xf32>
    %95 = vector.shape_cast %61 : vector<8x8xf32> to vector<1x1x8x8xf32>
    tpu.vector_store %arg17[%c0_54, %c0_55, %c0_56, %c0_57], %95 {strides = array<i32>} : memref<2x4x8x8xf32, #tpu.memory_space<vmem>>, vector<1x1x8x8xf32>,
    %c0_58 = arith.constant 0 : index
    %c0_59 = arith.constant 0 : index
    %c0_60 = arith.constant 0 : index
    %c0_61 = arith.constant 0 : index
    %96 = vector.load %arg18[%c0_58, %c0_59, %c0_60, %c0_61] : memref<2x4x8x8xf32, #tpu.memory_space<vmem>>, vector<1x1x8x8xf32>
    %97 = vector.shape_cast %96 : vector<1x1x8x8xf32> to vector<8x8xf32>
    %98 = vector.shape_cast %91 : vector<8x8xf32> to vector<1x1x8x8xf32>
    tpu.vector_store %arg18[%c0_58, %c0_59, %c0_60, %c0_61], %98 {strides = array<i32>} : memref<2x4x8x8xf32, #tpu.memory_space<vmem>>, vector<1x1x8x8xf32>,
    %99 = arith.addf %62, %92 : vector<8x8xf32>
    %100 = vector.extract_strided_slice %27 {offsets = [0, 0], sizes = [8, 32], strides = [1, 1]} : vector<32x32xf32> to vector<8x32xf32>
    %cst_62 = arith.constant dense<0.000000e+00> : vector<8x32xf32>
    %101 = tpu.matmul %99, %100, %cst_62 {dimension_numbers = #tpu.dot_dimension_numbers<[1], [0], [0], [1], [0, 0, 1, 1], [], []>} : vector<8x8xf32>, vector<8x32xf32>, vector<8x32xf32> -> vector<8x32xf32>
    %102 = arith.addf %32, %101 : vector<8x32xf32>
    %103 = vector.extract_strided_slice %28 {offsets = [0, 8], sizes = [8, 8], strides = [1, 1]} : vector<8x96xf32> to vector<8x8xf32>
    %104 = vector.extract_strided_slice %28 {offsets = [0, 40], sizes = [8, 8], strides = [1, 1]} : vector<8x96xf32> to vector<8x8xf32>
    %105 = vector.extract_strided_slice %28 {offsets = [0, 72], sizes = [8, 8], strides = [1, 1]} : vector<8x96xf32> to vector<8x8xf32>
    %106 = vector.extract_strided_slice %29 {offsets = [0, 8], sizes = [8, 8], strides = [1, 1]} : vector<8x64xf32> to vector<8x8xf32>
    %107 = vector.extract_strided_slice %29 {offsets = [0, 40], sizes = [8, 8], strides = [1, 1]} : vector<8x64xf32> to vector<8x8xf32>
    %108 = tpu.transpose %104, [1, 0] : vector<8x8xf32> -> vector<8x8xf32>
    %cst_63 = arith.constant dense<0.000000e+00> : vector<8x8xf32>
    %109 = tpu.matmul %103, %108, %cst_63 {dimension_numbers = #tpu.dot_dimension_numbers<[1], [0], [0], [1], [0, 0, 1, 1], [], []>} : vector<8x8xf32>, vector<8x8xf32>, vector<8x8xf32> -> vector<8x8xf32>
    %cst_64 = arith.constant 0.353553385 : f32
    %110 = vector.broadcast %cst_64 : f32 to vector<8x8xf32>
    %111 = arith.mulf %109, %110 : vector<8x8xf32>
    %112 = tpu.transpose %107, [1, 0] : vector<8x8xf32> -> vector<8x8xf32>
    %cst_65 = arith.constant dense<0.000000e+00> : vector<8x8xf32>
    %113 = tpu.matmul %106, %112, %cst_65 {dimension_numbers = #tpu.dot_dimension_numbers<[1], [0], [0], [1], [0, 0, 1, 1], [], []>} : vector<8x8xf32>, vector<8x8xf32>, vector<8x8xf32> -> vector<8x8xf32>
    %cst_66 = arith.constant 0.353553385 : f32
    %114 = vector.broadcast %cst_66 : f32 to vector<8x8xf32>
    %115 = arith.mulf %113, %114 : vector<8x8xf32>
    %cst_67 = arith.constant dense<0.000000e+00> : vector<8x9xf32>
    %116 = tpu.matmul %103, %24, %cst_67 {dimension_numbers = #tpu.dot_dimension_numbers<[1], [0], [0], [1], [0, 0, 1, 1], [], []>} : vector<8x8xf32>, vector<8x9xf32>, vector<8x9xf32> -> vector<8x9xf32>
    %117 = vector.shape_cast %116 : vector<8x9xf32> to vector<1x8x9xf32>
    %118 = vector.broadcast %117 : vector<1x8x9xf32> to vector<8x8x9xf32>
    %119 = arith.mulf %26, %118 : vector<8x8x9xf32>
    %cst_68 = arith.constant dense<0.000000e+00> : vector<8x8xf32>
    %120 = vector.multi_reduction <add>, %119, %cst_68 [2] : vector<8x8x9xf32> to vector<8x8xf32>
    %121 = arith.addf %111, %120 : vector<8x8xf32>
    %122 = arith.addf %121, %115 : vector<8x8xf32>
    %cst_69 = arith.constant dense<0xFF800000> : vector<8xf32>
    %123 = vector.multi_reduction <maximumf>, %122, %cst_69 [1] : vector<8x8xf32> to vector<8xf32>
    %124 = vector.shape_cast %123 : vector<8xf32> to vector<8x1xf32>
    %125 = vector.broadcast %124 : vector<8x1xf32> to vector<8x8xf32>
    %126 = arith.subf %122, %125 : vector<8x8xf32>
    %127 = math.exp %126 : vector<8x8xf32>
    %cst_70 = arith.constant dense<0.000000e+00> : vector<8xf32>
    %128 = vector.multi_reduction <add>, %127, %cst_70 [1] : vector<8x8xf32> to vector<8xf32>
    %129 = vector.shape_cast %128 : vector<8xf32> to vector<8x1xf32>
    %130 = vector.broadcast %129 : vector<8x1xf32> to vector<8x8xf32>
    %131 = arith.divf %127, %130 : vector<8x8xf32>
    %cst_71 = arith.constant dense<0.000000e+00> : vector<8x8xf32>
    %132 = tpu.matmul %131, %105, %cst_71 {dimension_numbers = #tpu.dot_dimension_numbers<[1], [0], [0], [1], [0, 0, 1, 1], [], []>} : vector<8x8xf32>, vector<8x8xf32>, vector<8x8xf32> -> vector<8x8xf32>
    %133 = vector.extract_strided_slice %30 {offsets = [0, 8], sizes = [8, 8], strides = [1, 1]} : vector<8x96xf32> to vector<8x8xf32>
    %134 = vector.extract_strided_slice %30 {offsets = [0, 40], sizes = [8, 8], strides = [1, 1]} : vector<8x96xf32> to vector<8x8xf32>
    %135 = vector.extract_strided_slice %30 {offsets = [0, 72], sizes = [8, 8], strides = [1, 1]} : vector<8x96xf32> to vector<8x8xf32>
    %136 = vector.extract_strided_slice %31 {offsets = [0, 8], sizes = [8, 8], strides = [1, 1]} : vector<8x64xf32> to vector<8x8xf32>
    %137 = vector.extract_strided_slice %31 {offsets = [0, 40], sizes = [8, 8], strides = [1, 1]} : vector<8x64xf32> to vector<8x8xf32>
    %138 = tpu.transpose %134, [1, 0] : vector<8x8xf32> -> vector<8x8xf32>
    %cst_72 = arith.constant dense<0.000000e+00> : vector<8x8xf32>
    %139 = tpu.matmul %133, %138, %cst_72 {dimension_numbers = #tpu.dot_dimension_numbers<[1], [0], [0], [1], [0, 0, 1, 1], [], []>} : vector<8x8xf32>, vector<8x8xf32>, vector<8x8xf32> -> vector<8x8xf32>
    %cst_73 = arith.constant 0.353553385 : f32
    %140 = vector.broadcast %cst_73 : f32 to vector<8x8xf32>
    %141 = arith.mulf %139, %140 : vector<8x8xf32>
    %142 = tpu.transpose %137, [1, 0] : vector<8x8xf32> -> vector<8x8xf32>
    %cst_74 = arith.constant dense<0.000000e+00> : vector<8x8xf32>
    %143 = tpu.matmul %136, %142, %cst_74 {dimension_numbers = #tpu.dot_dimension_numbers<[1], [0], [0], [1], [0, 0, 1, 1], [], []>} : vector<8x8xf32>, vector<8x8xf32>, vector<8x8xf32> -> vector<8x8xf32>
    %cst_75 = arith.constant 0.353553385 : f32
    %144 = vector.broadcast %cst_75 : f32 to vector<8x8xf32>
    %145 = arith.mulf %143, %144 : vector<8x8xf32>
    %cst_76 = arith.constant dense<0.000000e+00> : vector<8x9xf32>
    %146 = tpu.matmul %133, %25, %cst_76 {dimension_numbers = #tpu.dot_dimension_numbers<[1], [0], [0], [1], [0, 0, 1, 1], [], []>} : vector<8x8xf32>, vector<8x9xf32>, vector<8x9xf32> -> vector<8x9xf32>
    %147 = vector.shape_cast %146 : vector<8x9xf32> to vector<1x8x9xf32>
    %148 = vector.broadcast %147 : vector<1x8x9xf32> to vector<8x8x9xf32>
    %149 = arith.mulf %26, %148 : vector<8x8x9xf32>
    %cst_77 = arith.constant dense<0.000000e+00> : vector<8x8xf32>
    %150 = vector.multi_reduction <add>, %149, %cst_77 [2] : vector<8x8x9xf32> to vector<8x8xf32>
    %151 = arith.addf %141, %150 : vector<8x8xf32>
    %152 = arith.addf %151, %145 : vector<8x8xf32>
    %cst_78 = arith.constant dense<0xFF800000> : vector<8xf32>
    %153 = vector.multi_reduction <maximumf>, %152, %cst_78 [1] : vector<8x8xf32> to vector<8xf32>
    %154 = vector.shape_cast %153 : vector<8xf32> to vector<8x1xf32>
    %155 = vector.broadcast %154 : vector<8x1xf32> to vector<8x8xf32>
    %156 = arith.subf %152, %155 : vector<8x8xf32>
    %157 = math.exp %156 : vector<8x8xf32>
    %cst_79 = arith.constant dense<0.000000e+00> : vector<8xf32>
    %158 = vector.multi_reduction <add>, %157, %cst_79 [1] : vector<8x8xf32> to vector<8xf32>
    %159 = vector.shape_cast %158 : vector<8xf32> to vector<8x1xf32>
    %160 = vector.broadcast %159 : vector<8x1xf32> to vector<8x8xf32>
    %161 = arith.divf %157, %160 : vector<8x8xf32>
    %cst_80 = arith.constant dense<0.000000e+00> : vector<8x8xf32>
    %162 = tpu.matmul %161, %135, %cst_80 {dimension_numbers = #tpu.dot_dimension_numbers<[1], [0], [0], [1], [0, 0, 1, 1], [], []>} : vector<8x8xf32>, vector<8x8xf32>, vector<8x8xf32> -> vector<8x8xf32>
    %c0_81 = arith.constant 0 : index
    %c1 = arith.constant 1 : index
    %c0_82 = arith.constant 0 : index
    %c0_83 = arith.constant 0 : index
    %163 = vector.load %arg17[%c0_81, %c1, %c0_82, %c0_83] : memref<2x4x8x8xf32, #tpu.memory_space<vmem>>, vector<1x1x8x8xf32>
    %164 = vector.shape_cast %163 : vector<1x1x8x8xf32> to vector<8x8xf32>
    %165 = vector.shape_cast %131 : vector<8x8xf32> to vector<1x1x8x8xf32>
    tpu.vector_store %arg17[%c0_81, %c1, %c0_82, %c0_83], %165 {strides = array<i32>} : memref<2x4x8x8xf32, #tpu.memory_space<vmem>>, vector<1x1x8x8xf32>,
    %c0_84 = arith.constant 0 : index
    %c1_85 = arith.constant 1 : index
    %c0_86 = arith.constant 0 : index
    %c0_87 = arith.constant 0 : index
    %166 = vector.load %arg18[%c0_84, %c1_85, %c0_86, %c0_87] : memref<2x4x8x8xf32, #tpu.memory_space<vmem>>, vector<1x1x8x8xf32>
    %167 = vector.shape_cast %166 : vector<1x1x8x8xf32> to vector<8x8xf32>
    %168 = vector.shape_cast %161 : vector<8x8xf32> to vector<1x1x8x8xf32>
    tpu.vector_store %arg18[%c0_84, %c1_85, %c0_86, %c0_87], %168 {strides = array<i32>} : memref<2x4x8x8xf32, #tpu.memory_space<vmem>>, vector<1x1x8x8xf32>,
    %169 = arith.addf %132, %162 : vector<8x8xf32>
    %170 = vector.extract_strided_slice %27 {offsets = [8, 0], sizes = [8, 32], strides = [1, 1]} : vector<32x32xf32> to vector<8x32xf32>
    %cst_88 = arith.constant dense<0.000000e+00> : vector<8x32xf32>
    %171 = tpu.matmul %169, %170, %cst_88 {dimension_numbers = #tpu.dot_dimension_numbers<[1], [0], [0], [1], [0, 0, 1, 1], [], []>} : vector<8x8xf32>, vector<8x32xf32>, vector<8x32xf32> -> vector<8x32xf32>
    %172 = arith.addf %102, %171 : vector<8x32xf32>
    %173 = vector.extract_strided_slice %28 {offsets = [0, 16], sizes = [8, 8], strides = [1, 1]} : vector<8x96xf32> to vector<8x8xf32>
    %174 = vector.extract_strided_slice %28 {offsets = [0, 48], sizes = [8, 8], strides = [1, 1]} : vector<8x96xf32> to vector<8x8xf32>
    %175 = vector.extract_strided_slice %28 {offsets = [0, 80], sizes = [8, 8], strides = [1, 1]} : vector<8x96xf32> to vector<8x8xf32>
    %176 = vector.extract_strided_slice %29 {offsets = [0, 16], sizes = [8, 8], strides = [1, 1]} : vector<8x64xf32> to vector<8x8xf32>
    %177 = vector.extract_strided_slice %29 {offsets = [0, 48], sizes = [8, 8], strides = [1, 1]} : vector<8x64xf32> to vector<8x8xf32>
    %178 = tpu.transpose %174, [1, 0] : vector<8x8xf32> -> vector<8x8xf32>
    %cst_89 = arith.constant dense<0.000000e+00> : vector<8x8xf32>
    %179 = tpu.matmul %173, %178, %cst_89 {dimension_numbers = #tpu.dot_dimension_numbers<[1], [0], [0], [1], [0, 0, 1, 1], [], []>} : vector<8x8xf32>, vector<8x8xf32>, vector<8x8xf32> -> vector<8x8xf32>
    %cst_90 = arith.constant 0.353553385 : f32
    %180 = vector.broadcast %cst_90 : f32 to vector<8x8xf32>
    %181 = arith.mulf %179, %180 : vector<8x8xf32>
    %182 = tpu.transpose %177, [1, 0] : vector<8x8xf32> -> vector<8x8xf32>
    %cst_91 = arith.constant dense<0.000000e+00> : vector<8x8xf32>
    %183 = tpu.matmul %176, %182, %cst_91 {dimension_numbers = #tpu.dot_dimension_numbers<[1], [0], [0], [1], [0, 0, 1, 1], [], []>} : vector<8x8xf32>, vector<8x8xf32>, vector<8x8xf32> -> vector<8x8xf32>
    %cst_92 = arith.constant 0.353553385 : f32
    %184 = vector.broadcast %cst_92 : f32 to vector<8x8xf32>
    %185 = arith.mulf %183, %184 : vector<8x8xf32>
    %cst_93 = arith.constant dense<0.000000e+00> : vector<8x9xf32>
    %186 = tpu.matmul %173, %24, %cst_93 {dimension_numbers = #tpu.dot_dimension_numbers<[1], [0], [0], [1], [0, 0, 1, 1], [], []>} : vector<8x8xf32>, vector<8x9xf32>, vector<8x9xf32> -> vector<8x9xf32>
    %187 = vector.shape_cast %186 : vector<8x9xf32> to vector<1x8x9xf32>
    %188 = vector.broadcast %187 : vector<1x8x9xf32> to vector<8x8x9xf32>
    %189 = arith.mulf %26, %188 : vector<8x8x9xf32>
    %cst_94 = arith.constant dense<0.000000e+00> : vector<8x8xf32>
    %190 = vector.multi_reduction <add>, %189, %cst_94 [2] : vector<8x8x9xf32> to vector<8x8xf32>
    %191 = arith.addf %181, %190 : vector<8x8xf32>
    %192 = arith.addf %191, %185 : vector<8x8xf32>
    %cst_95 = arith.constant dense<0xFF800000> : vector<8xf32>
    %193 = vector.multi_reduction <maximumf>, %192, %cst_95 [1] : vector<8x8xf32> to vector<8xf32>
    %194 = vector.shape_cast %193 : vector<8xf32> to vector<8x1xf32>
    %195 = vector.broadcast %194 : vector<8x1xf32> to vector<8x8xf32>
    %196 = arith.subf %192, %195 : vector<8x8xf32>
    %197 = math.exp %196 : vector<8x8xf32>
    %cst_96 = arith.constant dense<0.000000e+00> : vector<8xf32>
    %198 = vector.multi_reduction <add>, %197, %cst_96 [1] : vector<8x8xf32> to vector<8xf32>
    %199 = vector.shape_cast %198 : vector<8xf32> to vector<8x1xf32>
    %200 = vector.broadcast %199 : vector<8x1xf32> to vector<8x8xf32>
    %201 = arith.divf %197, %200 : vector<8x8xf32>
    %cst_97 = arith.constant dense<0.000000e+00> : vector<8x8xf32>
    %202 = tpu.matmul %201, %175, %cst_97 {dimension_numbers = #tpu.dot_dimension_numbers<[1], [0], [0], [1], [0, 0, 1, 1], [], []>} : vector<8x8xf32>, vector<8x8xf32>, vector<8x8xf32> -> vector<8x8xf32>
    %203 = vector.extract_strided_slice %30 {offsets = [0, 16], sizes = [8, 8], strides = [1, 1]} : vector<8x96xf32> to vector<8x8xf32>
    %204 = vector.extract_strided_slice %30 {offsets = [0, 48], sizes = [8, 8], strides = [1, 1]} : vector<8x96xf32> to vector<8x8xf32>
    %205 = vector.extract_strided_slice %30 {offsets = [0, 80], sizes = [8, 8], strides = [1, 1]} : vector<8x96xf32> to vector<8x8xf32>
    %206 = vector.extract_strided_slice %31 {offsets = [0, 16], sizes = [8, 8], strides = [1, 1]} : vector<8x64xf32> to vector<8x8xf32>
    %207 = vector.extract_strided_slice %31 {offsets = [0, 48], sizes = [8, 8], strides = [1, 1]} : vector<8x64xf32> to vector<8x8xf32>
    %208 = tpu.transpose %204, [1, 0] : vector<8x8xf32> -> vector<8x8xf32>
    %cst_98 = arith.constant dense<0.000000e+00> : vector<8x8xf32>
    %209 = tpu.matmul %203, %208, %cst_98 {dimension_numbers = #tpu.dot_dimension_numbers<[1], [0], [0], [1], [0, 0, 1, 1], [], []>} : vector<8x8xf32>, vector<8x8xf32>, vector<8x8xf32> -> vector<8x8xf32>
    %cst_99 = arith.constant 0.353553385 : f32
    %210 = vector.broadcast %cst_99 : f32 to vector<8x8xf32>
    %211 = arith.mulf %209, %210 : vector<8x8xf32>
    %212 = tpu.transpose %207, [1, 0] : vector<8x8xf32> -> vector<8x8xf32>
    %cst_100 = arith.constant dense<0.000000e+00> : vector<8x8xf32>
    %213 = tpu.matmul %206, %212, %cst_100 {dimension_numbers = #tpu.dot_dimension_numbers<[1], [0], [0], [1], [0, 0, 1, 1], [], []>} : vector<8x8xf32>, vector<8x8xf32>, vector<8x8xf32> -> vector<8x8xf32>
    %cst_101 = arith.constant 0.353553385 : f32
    %214 = vector.broadcast %cst_101 : f32 to vector<8x8xf32>
    %215 = arith.mulf %213, %214 : vector<8x8xf32>
    %cst_102 = arith.constant dense<0.000000e+00> : vector<8x9xf32>
    %216 = tpu.matmul %203, %25, %cst_102 {dimension_numbers = #tpu.dot_dimension_numbers<[1], [0], [0], [1], [0, 0, 1, 1], [], []>} : vector<8x8xf32>, vector<8x9xf32>, vector<8x9xf32> -> vector<8x9xf32>
    %217 = vector.shape_cast %216 : vector<8x9xf32> to vector<1x8x9xf32>
    %218 = vector.broadcast %217 : vector<1x8x9xf32> to vector<8x8x9xf32>
    %219 = arith.mulf %26, %218 : vector<8x8x9xf32>
    %cst_103 = arith.constant dense<0.000000e+00> : vector<8x8xf32>
    %220 = vector.multi_reduction <add>, %219, %cst_103 [2] : vector<8x8x9xf32> to vector<8x8xf32>
    %221 = arith.addf %211, %220 : vector<8x8xf32>
    %222 = arith.addf %221, %215 : vector<8x8xf32>
    %cst_104 = arith.constant dense<0xFF800000> : vector<8xf32>
    %223 = vector.multi_reduction <maximumf>, %222, %cst_104 [1] : vector<8x8xf32> to vector<8xf32>
    %224 = vector.shape_cast %223 : vector<8xf32> to vector<8x1xf32>
    %225 = vector.broadcast %224 : vector<8x1xf32> to vector<8x8xf32>
    %226 = arith.subf %222, %225 : vector<8x8xf32>
    %227 = math.exp %226 : vector<8x8xf32>
    %cst_105 = arith.constant dense<0.000000e+00> : vector<8xf32>
    %228 = vector.multi_reduction <add>, %227, %cst_105 [1] : vector<8x8xf32> to vector<8xf32>
    %229 = vector.shape_cast %228 : vector<8xf32> to vector<8x1xf32>
    %230 = vector.broadcast %229 : vector<8x1xf32> to vector<8x8xf32>
    %231 = arith.divf %227, %230 : vector<8x8xf32>
    %cst_106 = arith.constant dense<0.000000e+00> : vector<8x8xf32>
    %232 = tpu.matmul %231, %205, %cst_106 {dimension_numbers = #tpu.dot_dimension_numbers<[1], [0], [0], [1], [0, 0, 1, 1], [], []>} : vector<8x8xf32>, vector<8x8xf32>, vector<8x8xf32> -> vector<8x8xf32>
    %c0_107 = arith.constant 0 : index
    %c2 = arith.constant 2 : index
    %c0_108 = arith.constant 0 : index
    %c0_109 = arith.constant 0 : index
    %233 = vector.load %arg17[%c0_107, %c2, %c0_108, %c0_109] : memref<2x4x8x8xf32, #tpu.memory_space<vmem>>, vector<1x1x8x8xf32>
    %234 = vector.shape_cast %233 : vector<1x1x8x8xf32> to vector<8x8xf32>
    %235 = vector.shape_cast %201 : vector<8x8xf32> to vector<1x1x8x8xf32>
    tpu.vector_store %arg17[%c0_107, %c2, %c0_108, %c0_109], %235 {strides = array<i32>} : memref<2x4x8x8xf32, #tpu.memory_space<vmem>>, vector<1x1x8x8xf32>,
    %c0_110 = arith.constant 0 : index
    %c2_111 = arith.constant 2 : index
    %c0_112 = arith.constant 0 : index
    %c0_113 = arith.constant 0 : index
    %236 = vector.load %arg18[%c0_110, %c2_111, %c0_112, %c0_113] : memref<2x4x8x8xf32, #tpu.memory_space<vmem>>, vector<1x1x8x8xf32>
    %237 = vector.shape_cast %236 : vector<1x1x8x8xf32> to vector<8x8xf32>
    %238 = vector.shape_cast %231 : vector<8x8xf32> to vector<1x1x8x8xf32>
    tpu.vector_store %arg18[%c0_110, %c2_111, %c0_112, %c0_113], %238 {strides = array<i32>} : memref<2x4x8x8xf32, #tpu.memory_space<vmem>>, vector<1x1x8x8xf32>,
    %239 = arith.addf %202, %232 : vector<8x8xf32>
    %240 = vector.extract_strided_slice %27 {offsets = [16, 0], sizes = [8, 32], strides = [1, 1]} : vector<32x32xf32> to vector<8x32xf32>
    %cst_114 = arith.constant dense<0.000000e+00> : vector<8x32xf32>
    %241 = tpu.matmul %239, %240, %cst_114 {dimension_numbers = #tpu.dot_dimension_numbers<[1], [0], [0], [1], [0, 0, 1, 1], [], []>} : vector<8x8xf32>, vector<8x32xf32>, vector<8x32xf32> -> vector<8x32xf32>
    %242 = arith.addf %172, %241 : vector<8x32xf32>
    %243 = vector.extract_strided_slice %28 {offsets = [0, 24], sizes = [8, 8], strides = [1, 1]} : vector<8x96xf32> to vector<8x8xf32>
    %244 = vector.extract_strided_slice %28 {offsets = [0, 56], sizes = [8, 8], strides = [1, 1]} : vector<8x96xf32> to vector<8x8xf32>
    %245 = vector.extract_strided_slice %28 {offsets = [0, 88], sizes = [8, 8], strides = [1, 1]} : vector<8x96xf32> to vector<8x8xf32>
    %246 = vector.extract_strided_slice %29 {offsets = [0, 24], sizes = [8, 8], strides = [1, 1]} : vector<8x64xf32> to vector<8x8xf32>
    %247 = vector.extract_strided_slice %29 {offsets = [0, 56], sizes = [8, 8], strides = [1, 1]} : vector<8x64xf32> to vector<8x8xf32>
    %248 = tpu.transpose %244, [1, 0] : vector<8x8xf32> -> vector<8x8xf32>
    %cst_115 = arith.constant dense<0.000000e+00> : vector<8x8xf32>
    %249 = tpu.matmul %243, %248, %cst_115 {dimension_numbers = #tpu.dot_dimension_numbers<[1], [0], [0], [1], [0, 0, 1, 1], [], []>} : vector<8x8xf32>, vector<8x8xf32>, vector<8x8xf32> -> vector<8x8xf32>
    %cst_116 = arith.constant 0.353553385 : f32
    %250 = vector.broadcast %cst_116 : f32 to vector<8x8xf32>
    %251 = arith.mulf %249, %250 : vector<8x8xf32>
    %252 = tpu.transpose %247, [1, 0] : vector<8x8xf32> -> vector<8x8xf32>
    %cst_117 = arith.constant dense<0.000000e+00> : vector<8x8xf32>
    %253 = tpu.matmul %246, %252, %cst_117 {dimension_numbers = #tpu.dot_dimension_numbers<[1], [0], [0], [1], [0, 0, 1, 1], [], []>} : vector<8x8xf32>, vector<8x8xf32>, vector<8x8xf32> -> vector<8x8xf32>
    %cst_118 = arith.constant 0.353553385 : f32
    %254 = vector.broadcast %cst_118 : f32 to vector<8x8xf32>
    %255 = arith.mulf %253, %254 : vector<8x8xf32>
    %cst_119 = arith.constant dense<0.000000e+00> : vector<8x9xf32>
    %256 = tpu.matmul %243, %24, %cst_119 {dimension_numbers = #tpu.dot_dimension_numbers<[1], [0], [0], [1], [0, 0, 1, 1], [], []>} : vector<8x8xf32>, vector<8x9xf32>, vector<8x9xf32> -> vector<8x9xf32>
    %257 = vector.shape_cast %256 : vector<8x9xf32> to vector<1x8x9xf32>
    %258 = vector.broadcast %257 : vector<1x8x9xf32> to vector<8x8x9xf32>
    %259 = arith.mulf %26, %258 : vector<8x8x9xf32>
    %cst_120 = arith.constant dense<0.000000e+00> : vector<8x8xf32>
    %260 = vector.multi_reduction <add>, %259, %cst_120 [2] : vector<8x8x9xf32> to vector<8x8xf32>
    %261 = arith.addf %251, %260 : vector<8x8xf32>
    %262 = arith.addf %261, %255 : vector<8x8xf32>
    %cst_121 = arith.constant dense<0xFF800000> : vector<8xf32>
    %263 = vector.multi_reduction <maximumf>, %262, %cst_121 [1] : vector<8x8xf32> to vector<8xf32>
    %264 = vector.shape_cast %263 : vector<8xf32> to vector<8x1xf32>
    %265 = vector.broadcast %264 : vector<8x1xf32> to vector<8x8xf32>
    %266 = arith.subf %262, %265 : vector<8x8xf32>
    %267 = math.exp %266 : vector<8x8xf32>
    %cst_122 = arith.constant dense<0.000000e+00> : vector<8xf32>
    %268 = vector.multi_reduction <add>, %267, %cst_122 [1] : vector<8x8xf32> to vector<8xf32>
    %269 = vector.shape_cast %268 : vector<8xf32> to vector<8x1xf32>
    %270 = vector.broadcast %269 : vector<8x1xf32> to vector<8x8xf32>
    %271 = arith.divf %267, %270 : vector<8x8xf32>
    %cst_123 = arith.constant dense<0.000000e+00> : vector<8x8xf32>
    %272 = tpu.matmul %271, %245, %cst_123 {dimension_numbers = #tpu.dot_dimension_numbers<[1], [0], [0], [1], [0, 0, 1, 1], [], []>} : vector<8x8xf32>, vector<8x8xf32>, vector<8x8xf32> -> vector<8x8xf32>
    %273 = vector.extract_strided_slice %30 {offsets = [0, 24], sizes = [8, 8], strides = [1, 1]} : vector<8x96xf32> to vector<8x8xf32>
    %274 = vector.extract_strided_slice %30 {offsets = [0, 56], sizes = [8, 8], strides = [1, 1]} : vector<8x96xf32> to vector<8x8xf32>
    %275 = vector.extract_strided_slice %30 {offsets = [0, 88], sizes = [8, 8], strides = [1, 1]} : vector<8x96xf32> to vector<8x8xf32>
    %276 = vector.extract_strided_slice %31 {offsets = [0, 24], sizes = [8, 8], strides = [1, 1]} : vector<8x64xf32> to vector<8x8xf32>
    %277 = vector.extract_strided_slice %31 {offsets = [0, 56], sizes = [8, 8], strides = [1, 1]} : vector<8x64xf32> to vector<8x8xf32>
    %278 = tpu.transpose %274, [1, 0] : vector<8x8xf32> -> vector<8x8xf32>
    %cst_124 = arith.constant dense<0.000000e+00> : vector<8x8xf32>
    %279 = tpu.matmul %273, %278, %cst_124 {dimension_numbers = #tpu.dot_dimension_numbers<[1], [0], [0], [1], [0, 0, 1, 1], [], []>} : vector<8x8xf32>, vector<8x8xf32>, vector<8x8xf32> -> vector<8x8xf32>
    %cst_125 = arith.constant 0.353553385 : f32
    %280 = vector.broadcast %cst_125 : f32 to vector<8x8xf32>
    %281 = arith.mulf %279, %280 : vector<8x8xf32>
    %282 = tpu.transpose %277, [1, 0] : vector<8x8xf32> -> vector<8x8xf32>
    %cst_126 = arith.constant dense<0.000000e+00> : vector<8x8xf32>
    %283 = tpu.matmul %276, %282, %cst_126 {dimension_numbers = #tpu.dot_dimension_numbers<[1], [0], [0], [1], [0, 0, 1, 1], [], []>} : vector<8x8xf32>, vector<8x8xf32>, vector<8x8xf32> -> vector<8x8xf32>
    %cst_127 = arith.constant 0.353553385 : f32
    %284 = vector.broadcast %cst_127 : f32 to vector<8x8xf32>
    %285 = arith.mulf %283, %284 : vector<8x8xf32>
    %cst_128 = arith.constant dense<0.000000e+00> : vector<8x9xf32>
    %286 = tpu.matmul %273, %25, %cst_128 {dimension_numbers = #tpu.dot_dimension_numbers<[1], [0], [0], [1], [0, 0, 1, 1], [], []>} : vector<8x8xf32>, vector<8x9xf32>, vector<8x9xf32> -> vector<8x9xf32>
    %287 = vector.shape_cast %286 : vector<8x9xf32> to vector<1x8x9xf32>
    %288 = vector.broadcast %287 : vector<1x8x9xf32> to vector<8x8x9xf32>
    %289 = arith.mulf %26, %288 : vector<8x8x9xf32>
    %cst_129 = arith.constant dense<0.000000e+00> : vector<8x8xf32>
    %290 = vector.multi_reduction <add>, %289, %cst_129 [2] : vector<8x8x9xf32> to vector<8x8xf32>
    %291 = arith.addf %281, %290 : vector<8x8xf32>
    %292 = arith.addf %291, %285 : vector<8x8xf32>
    %cst_130 = arith.constant dense<0xFF800000> : vector<8xf32>
    %293 = vector.multi_reduction <maximumf>, %292, %cst_130 [1] : vector<8x8xf32> to vector<8xf32>
    %294 = vector.shape_cast %293 : vector<8xf32> to vector<8x1xf32>
    %295 = vector.broadcast %294 : vector<8x1xf32> to vector<8x8xf32>
    %296 = arith.subf %292, %295 : vector<8x8xf32>
    %297 = math.exp %296 : vector<8x8xf32>
    %cst_131 = arith.constant dense<0.000000e+00> : vector<8xf32>
    %298 = vector.multi_reduction <add>, %297, %cst_131 [1] : vector<8x8xf32> to vector<8xf32>
    %299 = vector.shape_cast %298 : vector<8xf32> to vector<8x1xf32>
    %300 = vector.broadcast %299 : vector<8x1xf32> to vector<8x8xf32>
    %301 = arith.divf %297, %300 : vector<8x8xf32>
    %cst_132 = arith.constant dense<0.000000e+00> : vector<8x8xf32>
    %302 = tpu.matmul %301, %275, %cst_132 {dimension_numbers = #tpu.dot_dimension_numbers<[1], [0], [0], [1], [0, 0, 1, 1], [], []>} : vector<8x8xf32>, vector<8x8xf32>, vector<8x8xf32> -> vector<8x8xf32>
    %c0_133 = arith.constant 0 : index
    %c3 = arith.constant 3 : index
    %c0_134 = arith.constant 0 : index
    %c0_135 = arith.constant 0 : index
    %303 = vector.load %arg17[%c0_133, %c3, %c0_134, %c0_135] : memref<2x4x8x8xf32, #tpu.memory_space<vmem>>, vector<1x1x8x8xf32>
    %304 = vector.shape_cast %303 : vector<1x1x8x8xf32> to vector<8x8xf32>
    %305 = vector.shape_cast %271 : vector<8x8xf32> to vector<1x1x8x8xf32>
    tpu.vector_store %arg17[%c0_133, %c3, %c0_134, %c0_135], %305 {strides = array<i32>} : memref<2x4x8x8xf32, #tpu.memory_space<vmem>>, vector<1x1x8x8xf32>,
    %c0_136 = arith.constant 0 : index
    %c3_137 = arith.constant 3 : index
    %c0_138 = arith.constant 0 : index
    %c0_139 = arith.constant 0 : index
    %306 = vector.load %arg18[%c0_136, %c3_137, %c0_138, %c0_139] : memref<2x4x8x8xf32, #tpu.memory_space<vmem>>, vector<1x1x8x8xf32>
    %307 = vector.shape_cast %306 : vector<1x1x8x8xf32> to vector<8x8xf32>
    %308 = vector.shape_cast %301 : vector<8x8xf32> to vector<1x1x8x8xf32>
    tpu.vector_store %arg18[%c0_136, %c3_137, %c0_138, %c0_139], %308 {strides = array<i32>} : memref<2x4x8x8xf32, #tpu.memory_space<vmem>>, vector<1x1x8x8xf32>,
    %309 = arith.addf %272, %302 : vector<8x8xf32>
    %310 = vector.extract_strided_slice %27 {offsets = [24, 0], sizes = [8, 32], strides = [1, 1]} : vector<32x32xf32> to vector<8x32xf32>
    %cst_140 = arith.constant dense<0.000000e+00> : vector<8x32xf32>
    %311 = tpu.matmul %309, %310, %cst_140 {dimension_numbers = #tpu.dot_dimension_numbers<[1], [0], [0], [1], [0, 0, 1, 1], [], []>} : vector<8x8xf32>, vector<8x32xf32>, vector<8x32xf32> -> vector<8x32xf32>
    %312 = arith.addf %242, %311 : vector<8x32xf32>
    %c0_141 = arith.constant 0 : index
    %c0_142 = arith.constant 0 : index
    %313 = vector.load %arg16[%c0_141, %c0_142] : memref<16x32xf32, #tpu.memory_space<vmem>>, vector<8x32xf32>
    tpu.vector_store %arg16[%c0_141, %c0_142], %312 {strides = array<i32>} : memref<16x32xf32, #tpu.memory_space<vmem>>, vector<8x32xf32>,
    %314 = vector.extract_strided_slice %5 {offsets = [8, 0], sizes = [8, 96], strides = [1, 1]} : vector<16x96xf32> to vector<8x96xf32>
    %315 = vector.extract_strided_slice %11 {offsets = [8, 0], sizes = [8, 64], strides = [1, 1]} : vector<16x64xf32> to vector<8x64xf32>
    %316 = vector.extract_strided_slice %17 {offsets = [8, 0], sizes = [8, 96], strides = [1, 1]} : vector<16x96xf32> to vector<8x96xf32>
    %317 = vector.extract_strided_slice %23 {offsets = [8, 0], sizes = [8, 64], strides = [1, 1]} : vector<16x64xf32> to vector<8x64xf32>
    %cst_143 = arith.constant 0.000000e+00 : f32
    %318 = vector.broadcast %cst_143 : f32 to vector<8x32xf32>
    %319 = vector.extract_strided_slice %314 {offsets = [0, 0], sizes = [8, 8], strides = [1, 1]} : vector<8x96xf32> to vector<8x8xf32>
    %320 = vector.extract_strided_slice %314 {offsets = [0, 32], sizes = [8, 8], strides = [1, 1]} : vector<8x96xf32> to vector<8x8xf32>
    %321 = vector.extract_strided_slice %314 {offsets = [0, 64], sizes = [8, 8], strides = [1, 1]} : vector<8x96xf32> to vector<8x8xf32>
    %322 = vector.extract_strided_slice %315 {offsets = [0, 0], sizes = [8, 8], strides = [1, 1]} : vector<8x64xf32> to vector<8x8xf32>
    %323 = vector.extract_strided_slice %315 {offsets = [0, 32], sizes = [8, 8], strides = [1, 1]} : vector<8x64xf32> to vector<8x8xf32>
    %324 = tpu.transpose %320, [1, 0] : vector<8x8xf32> -> vector<8x8xf32>
    %cst_144 = arith.constant dense<0.000000e+00> : vector<8x8xf32>
    %325 = tpu.matmul %319, %324, %cst_144 {dimension_numbers = #tpu.dot_dimension_numbers<[1], [0], [0], [1], [0, 0, 1, 1], [], []>} : vector<8x8xf32>, vector<8x8xf32>, vector<8x8xf32> -> vector<8x8xf32>
    %cst_145 = arith.constant 0.353553385 : f32
    %326 = vector.broadcast %cst_145 : f32 to vector<8x8xf32>
    %327 = arith.mulf %325, %326 : vector<8x8xf32>
    %328 = tpu.transpose %323, [1, 0] : vector<8x8xf32> -> vector<8x8xf32>
    %cst_146 = arith.constant dense<0.000000e+00> : vector<8x8xf32>
    %329 = tpu.matmul %322, %328, %cst_146 {dimension_numbers = #tpu.dot_dimension_numbers<[1], [0], [0], [1], [0, 0, 1, 1], [], []>} : vector<8x8xf32>, vector<8x8xf32>, vector<8x8xf32> -> vector<8x8xf32>
    %cst_147 = arith.constant 0.353553385 : f32
    %330 = vector.broadcast %cst_147 : f32 to vector<8x8xf32>
    %331 = arith.mulf %329, %330 : vector<8x8xf32>
    %cst_148 = arith.constant dense<0.000000e+00> : vector<8x9xf32>
    %332 = tpu.matmul %319, %24, %cst_148 {dimension_numbers = #tpu.dot_dimension_numbers<[1], [0], [0], [1], [0, 0, 1, 1], [], []>} : vector<8x8xf32>, vector<8x9xf32>, vector<8x9xf32> -> vector<8x9xf32>
    %333 = vector.shape_cast %332 : vector<8x9xf32> to vector<1x8x9xf32>
    %334 = vector.broadcast %333 : vector<1x8x9xf32> to vector<8x8x9xf32>
    %335 = arith.mulf %26, %334 : vector<8x8x9xf32>
    %cst_149 = arith.constant dense<0.000000e+00> : vector<8x8xf32>
    %336 = vector.multi_reduction <add>, %335, %cst_149 [2] : vector<8x8x9xf32> to vector<8x8xf32>
    %337 = arith.addf %327, %336 : vector<8x8xf32>
    %338 = arith.addf %337, %331 : vector<8x8xf32>
    %cst_150 = arith.constant dense<0xFF800000> : vector<8xf32>
    %339 = vector.multi_reduction <maximumf>, %338, %cst_150 [1] : vector<8x8xf32> to vector<8xf32>
    %340 = vector.shape_cast %339 : vector<8xf32> to vector<8x1xf32>
    %341 = vector.broadcast %340 : vector<8x1xf32> to vector<8x8xf32>
    %342 = arith.subf %338, %341 : vector<8x8xf32>
    %343 = math.exp %342 : vector<8x8xf32>
    %cst_151 = arith.constant dense<0.000000e+00> : vector<8xf32>
    %344 = vector.multi_reduction <add>, %343, %cst_151 [1] : vector<8x8xf32> to vector<8xf32>
    %345 = vector.shape_cast %344 : vector<8xf32> to vector<8x1xf32>
    %346 = vector.broadcast %345 : vector<8x1xf32> to vector<8x8xf32>
    %347 = arith.divf %343, %346 : vector<8x8xf32>
    %cst_152 = arith.constant dense<0.000000e+00> : vector<8x8xf32>
    %348 = tpu.matmul %347, %321, %cst_152 {dimension_numbers = #tpu.dot_dimension_numbers<[1], [0], [0], [1], [0, 0, 1, 1], [], []>} : vector<8x8xf32>, vector<8x8xf32>, vector<8x8xf32> -> vector<8x8xf32>
    %349 = vector.extract_strided_slice %316 {offsets = [0, 0], sizes = [8, 8], strides = [1, 1]} : vector<8x96xf32> to vector<8x8xf32>
    %350 = vector.extract_strided_slice %316 {offsets = [0, 32], sizes = [8, 8], strides = [1, 1]} : vector<8x96xf32> to vector<8x8xf32>
    %351 = vector.extract_strided_slice %316 {offsets = [0, 64], sizes = [8, 8], strides = [1, 1]} : vector<8x96xf32> to vector<8x8xf32>
    %352 = vector.extract_strided_slice %317 {offsets = [0, 0], sizes = [8, 8], strides = [1, 1]} : vector<8x64xf32> to vector<8x8xf32>
    %353 = vector.extract_strided_slice %317 {offsets = [0, 32], sizes = [8, 8], strides = [1, 1]} : vector<8x64xf32> to vector<8x8xf32>
    %354 = tpu.transpose %350, [1, 0] : vector<8x8xf32> -> vector<8x8xf32>
    %cst_153 = arith.constant dense<0.000000e+00> : vector<8x8xf32>
    %355 = tpu.matmul %349, %354, %cst_153 {dimension_numbers = #tpu.dot_dimension_numbers<[1], [0], [0], [1], [0, 0, 1, 1], [], []>} : vector<8x8xf32>, vector<8x8xf32>, vector<8x8xf32> -> vector<8x8xf32>
    %cst_154 = arith.constant 0.353553385 : f32
    %356 = vector.broadcast %cst_154 : f32 to vector<8x8xf32>
    %357 = arith.mulf %355, %356 : vector<8x8xf32>
    %358 = tpu.transpose %353, [1, 0] : vector<8x8xf32> -> vector<8x8xf32>
    %cst_155 = arith.constant dense<0.000000e+00> : vector<8x8xf32>
    %359 = tpu.matmul %352, %358, %cst_155 {dimension_numbers = #tpu.dot_dimension_numbers<[1], [0], [0], [1], [0, 0, 1, 1], [], []>} : vector<8x8xf32>, vector<8x8xf32>, vector<8x8xf32> -> vector<8x8xf32>
    %cst_156 = arith.constant 0.353553385 : f32
    %360 = vector.broadcast %cst_156 : f32 to vector<8x8xf32>
    %361 = arith.mulf %359, %360 : vector<8x8xf32>
    %cst_157 = arith.constant dense<0.000000e+00> : vector<8x9xf32>
    %362 = tpu.matmul %349, %25, %cst_157 {dimension_numbers = #tpu.dot_dimension_numbers<[1], [0], [0], [1], [0, 0, 1, 1], [], []>} : vector<8x8xf32>, vector<8x9xf32>, vector<8x9xf32> -> vector<8x9xf32>
    %363 = vector.shape_cast %362 : vector<8x9xf32> to vector<1x8x9xf32>
    %364 = vector.broadcast %363 : vector<1x8x9xf32> to vector<8x8x9xf32>
    %365 = arith.mulf %26, %364 : vector<8x8x9xf32>
    %cst_158 = arith.constant dense<0.000000e+00> : vector<8x8xf32>
    %366 = vector.multi_reduction <add>, %365, %cst_158 [2] : vector<8x8x9xf32> to vector<8x8xf32>
    %367 = arith.addf %357, %366 : vector<8x8xf32>
    %368 = arith.addf %367, %361 : vector<8x8xf32>
    %cst_159 = arith.constant dense<0xFF800000> : vector<8xf32>
    %369 = vector.multi_reduction <maximumf>, %368, %cst_159 [1] : vector<8x8xf32> to vector<8xf32>
    %370 = vector.shape_cast %369 : vector<8xf32> to vector<8x1xf32>
    %371 = vector.broadcast %370 : vector<8x1xf32> to vector<8x8xf32>
    %372 = arith.subf %368, %371 : vector<8x8xf32>
    %373 = math.exp %372 : vector<8x8xf32>
    %cst_160 = arith.constant dense<0.000000e+00> : vector<8xf32>
    %374 = vector.multi_reduction <add>, %373, %cst_160 [1] : vector<8x8xf32> to vector<8xf32>
    %375 = vector.shape_cast %374 : vector<8xf32> to vector<8x1xf32>
    %376 = vector.broadcast %375 : vector<8x1xf32> to vector<8x8xf32>
    %377 = arith.divf %373, %376 : vector<8x8xf32>
    %cst_161 = arith.constant dense<0.000000e+00> : vector<8x8xf32>
    %378 = tpu.matmul %377, %351, %cst_161 {dimension_numbers = #tpu.dot_dimension_numbers<[1], [0], [0], [1], [0, 0, 1, 1], [], []>} : vector<8x8xf32>, vector<8x8xf32>, vector<8x8xf32> -> vector<8x8xf32>
    %c1_162 = arith.constant 1 : index
    %c0_163 = arith.constant 0 : index
    %c0_164 = arith.constant 0 : index
    %c0_165 = arith.constant 0 : index
    %379 = vector.load %arg17[%c1_162, %c0_163, %c0_164, %c0_165] : memref<2x4x8x8xf32, #tpu.memory_space<vmem>>, vector<1x1x8x8xf32>
    %380 = vector.shape_cast %379 : vector<1x1x8x8xf32> to vector<8x8xf32>
    %381 = vector.shape_cast %347 : vector<8x8xf32> to vector<1x1x8x8xf32>
    tpu.vector_store %arg17[%c1_162, %c0_163, %c0_164, %c0_165], %381 {strides = array<i32>} : memref<2x4x8x8xf32, #tpu.memory_space<vmem>>, vector<1x1x8x8xf32>,
    %c1_166 = arith.constant 1 : index
    %c0_167 = arith.constant 0 : index
    %c0_168 = arith.constant 0 : index
    %c0_169 = arith.constant 0 : index
    %382 = vector.load %arg18[%c1_166, %c0_167, %c0_168, %c0_169] : memref<2x4x8x8xf32, #tpu.memory_space<vmem>>, vector<1x1x8x8xf32>
    %383 = vector.shape_cast %382 : vector<1x1x8x8xf32> to vector<8x8xf32>
    %384 = vector.shape_cast %377 : vector<8x8xf32> to vector<1x1x8x8xf32>
    tpu.vector_store %arg18[%c1_166, %c0_167, %c0_168, %c0_169], %384 {strides = array<i32>} : memref<2x4x8x8xf32, #tpu.memory_space<vmem>>, vector<1x1x8x8xf32>,
    %385 = arith.addf %348, %378 : vector<8x8xf32>
    %386 = vector.extract_strided_slice %27 {offsets = [0, 0], sizes = [8, 32], strides = [1, 1]} : vector<32x32xf32> to vector<8x32xf32>
    %cst_170 = arith.constant dense<0.000000e+00> : vector<8x32xf32>
    %387 = tpu.matmul %385, %386, %cst_170 {dimension_numbers = #tpu.dot_dimension_numbers<[1], [0], [0], [1], [0, 0, 1, 1], [], []>} : vector<8x8xf32>, vector<8x32xf32>, vector<8x32xf32> -> vector<8x32xf32>
    %388 = arith.addf %318, %387 : vector<8x32xf32>
    %389 = vector.extract_strided_slice %314 {offsets = [0, 8], sizes = [8, 8], strides = [1, 1]} : vector<8x96xf32> to vector<8x8xf32>
    %390 = vector.extract_strided_slice %314 {offsets = [0, 40], sizes = [8, 8], strides = [1, 1]} : vector<8x96xf32> to vector<8x8xf32>
    %391 = vector.extract_strided_slice %314 {offsets = [0, 72], sizes = [8, 8], strides = [1, 1]} : vector<8x96xf32> to vector<8x8xf32>
    %392 = vector.extract_strided_slice %315 {offsets = [0, 8], sizes = [8, 8], strides = [1, 1]} : vector<8x64xf32> to vector<8x8xf32>
    %393 = vector.extract_strided_slice %315 {offsets = [0, 40], sizes = [8, 8], strides = [1, 1]} : vector<8x64xf32> to vector<8x8xf32>
    %394 = tpu.transpose %390, [1, 0] : vector<8x8xf32> -> vector<8x8xf32>
    %cst_171 = arith.constant dense<0.000000e+00> : vector<8x8xf32>
    %395 = tpu.matmul %389, %394, %cst_171 {dimension_numbers = #tpu.dot_dimension_numbers<[1], [0], [0], [1], [0, 0, 1, 1], [], []>} : vector<8x8xf32>, vector<8x8xf32>, vector<8x8xf32> -> vector<8x8xf32>
    %cst_172 = arith.constant 0.353553385 : f32
    %396 = vector.broadcast %cst_172 : f32 to vector<8x8xf32>
    %397 = arith.mulf %395, %396 : vector<8x8xf32>
    %398 = tpu.transpose %393, [1, 0] : vector<8x8xf32> -> vector<8x8xf32>
    %cst_173 = arith.constant dense<0.000000e+00> : vector<8x8xf32>
    %399 = tpu.matmul %392, %398, %cst_173 {dimension_numbers = #tpu.dot_dimension_numbers<[1], [0], [0], [1], [0, 0, 1, 1], [], []>} : vector<8x8xf32>, vector<8x8xf32>, vector<8x8xf32> -> vector<8x8xf32>
    %cst_174 = arith.constant 0.353553385 : f32
    %400 = vector.broadcast %cst_174 : f32 to vector<8x8xf32>
    %401 = arith.mulf %399, %400 : vector<8x8xf32>
    %cst_175 = arith.constant dense<0.000000e+00> : vector<8x9xf32>
    %402 = tpu.matmul %389, %24, %cst_175 {dimension_numbers = #tpu.dot_dimension_numbers<[1], [0], [0], [1], [0, 0, 1, 1], [], []>} : vector<8x8xf32>, vector<8x9xf32>, vector<8x9xf32> -> vector<8x9xf32>
    %403 = vector.shape_cast %402 : vector<8x9xf32> to vector<1x8x9xf32>
    %404 = vector.broadcast %403 : vector<1x8x9xf32> to vector<8x8x9xf32>
    %405 = arith.mulf %26, %404 : vector<8x8x9xf32>
    %cst_176 = arith.constant dense<0.000000e+00> : vector<8x8xf32>
    %406 = vector.multi_reduction <add>, %405, %cst_176 [2] : vector<8x8x9xf32> to vector<8x8xf32>
    %407 = arith.addf %397, %406 : vector<8x8xf32>
    %408 = arith.addf %407, %401 : vector<8x8xf32>
    %cst_177 = arith.constant dense<0xFF800000> : vector<8xf32>
    %409 = vector.multi_reduction <maximumf>, %408, %cst_177 [1] : vector<8x8xf32> to vector<8xf32>
    %410 = vector.shape_cast %409 : vector<8xf32> to vector<8x1xf32>
    %411 = vector.broadcast %410 : vector<8x1xf32> to vector<8x8xf32>
    %412 = arith.subf %408, %411 : vector<8x8xf32>
    %413 = math.exp %412 : vector<8x8xf32>
    %cst_178 = arith.constant dense<0.000000e+00> : vector<8xf32>
    %414 = vector.multi_reduction <add>, %413, %cst_178 [1] : vector<8x8xf32> to vector<8xf32>
    %415 = vector.shape_cast %414 : vector<8xf32> to vector<8x1xf32>
    %416 = vector.broadcast %415 : vector<8x1xf32> to vector<8x8xf32>
    %417 = arith.divf %413, %416 : vector<8x8xf32>
    %cst_179 = arith.constant dense<0.000000e+00> : vector<8x8xf32>
    %418 = tpu.matmul %417, %391, %cst_179 {dimension_numbers = #tpu.dot_dimension_numbers<[1], [0], [0], [1], [0, 0, 1, 1], [], []>} : vector<8x8xf32>, vector<8x8xf32>, vector<8x8xf32> -> vector<8x8xf32>
    %419 = vector.extract_strided_slice %316 {offsets = [0, 8], sizes = [8, 8], strides = [1, 1]} : vector<8x96xf32> to vector<8x8xf32>
    %420 = vector.extract_strided_slice %316 {offsets = [0, 40], sizes = [8, 8], strides = [1, 1]} : vector<8x96xf32> to vector<8x8xf32>
    %421 = vector.extract_strided_slice %316 {offsets = [0, 72], sizes = [8, 8], strides = [1, 1]} : vector<8x96xf32> to vector<8x8xf32>
    %422 = vector.extract_strided_slice %317 {offsets = [0, 8], sizes = [8, 8], strides = [1, 1]} : vector<8x64xf32> to vector<8x8xf32>
    %423 = vector.extract_strided_slice %317 {offsets = [0, 40], sizes = [8, 8], strides = [1, 1]} : vector<8x64xf32> to vector<8x8xf32>
    %424 = tpu.transpose %420, [1, 0] : vector<8x8xf32> -> vector<8x8xf32>
    %cst_180 = arith.constant dense<0.000000e+00> : vector<8x8xf32>
    %425 = tpu.matmul %419, %424, %cst_180 {dimension_numbers = #tpu.dot_dimension_numbers<[1], [0], [0], [1], [0, 0, 1, 1], [], []>} : vector<8x8xf32>, vector<8x8xf32>, vector<8x8xf32> -> vector<8x8xf32>
    %cst_181 = arith.constant 0.353553385 : f32
    %426 = vector.broadcast %cst_181 : f32 to vector<8x8xf32>
    %427 = arith.mulf %425, %426 : vector<8x8xf32>
    %428 = tpu.transpose %423, [1, 0] : vector<8x8xf32> -> vector<8x8xf32>
    %cst_182 = arith.constant dense<0.000000e+00> : vector<8x8xf32>
    %429 = tpu.matmul %422, %428, %cst_182 {dimension_numbers = #tpu.dot_dimension_numbers<[1], [0], [0], [1], [0, 0, 1, 1], [], []>} : vector<8x8xf32>, vector<8x8xf32>, vector<8x8xf32> -> vector<8x8xf32>
    %cst_183 = arith.constant 0.353553385 : f32
    %430 = vector.broadcast %cst_183 : f32 to vector<8x8xf32>
    %431 = arith.mulf %429, %430 : vector<8x8xf32>
    %cst_184 = arith.constant dense<0.000000e+00> : vector<8x9xf32>
    %432 = tpu.matmul %419, %25, %cst_184 {dimension_numbers = #tpu.dot_dimension_numbers<[1], [0], [0], [1], [0, 0, 1, 1], [], []>} : vector<8x8xf32>, vector<8x9xf32>, vector<8x9xf32> -> vector<8x9xf32>
    %433 = vector.shape_cast %432 : vector<8x9xf32> to vector<1x8x9xf32>
    %434 = vector.broadcast %433 : vector<1x8x9xf32> to vector<8x8x9xf32>
    %435 = arith.mulf %26, %434 : vector<8x8x9xf32>
    %cst_185 = arith.constant dense<0.000000e+00> : vector<8x8xf32>
    %436 = vector.multi_reduction <add>, %435, %cst_185 [2] : vector<8x8x9xf32> to vector<8x8xf32>
    %437 = arith.addf %427, %436 : vector<8x8xf32>
    %438 = arith.addf %437, %431 : vector<8x8xf32>
    %cst_186 = arith.constant dense<0xFF800000> : vector<8xf32>
    %439 = vector.multi_reduction <maximumf>, %438, %cst_186 [1] : vector<8x8xf32> to vector<8xf32>
    %440 = vector.shape_cast %439 : vector<8xf32> to vector<8x1xf32>
    %441 = vector.broadcast %440 : vector<8x1xf32> to vector<8x8xf32>
    %442 = arith.subf %438, %441 : vector<8x8xf32>
    %443 = math.exp %442 : vector<8x8xf32>
    %cst_187 = arith.constant dense<0.000000e+00> : vector<8xf32>
    %444 = vector.multi_reduction <add>, %443, %cst_187 [1] : vector<8x8xf32> to vector<8xf32>
    %445 = vector.shape_cast %444 : vector<8xf32> to vector<8x1xf32>
    %446 = vector.broadcast %445 : vector<8x1xf32> to vector<8x8xf32>
    %447 = arith.divf %443, %446 : vector<8x8xf32>
    %cst_188 = arith.constant dense<0.000000e+00> : vector<8x8xf32>
    %448 = tpu.matmul %447, %421, %cst_188 {dimension_numbers = #tpu.dot_dimension_numbers<[1], [0], [0], [1], [0, 0, 1, 1], [], []>} : vector<8x8xf32>, vector<8x8xf32>, vector<8x8xf32> -> vector<8x8xf32>
    %c1_189 = arith.constant 1 : index
    %c1_190 = arith.constant 1 : index
    %c0_191 = arith.constant 0 : index
    %c0_192 = arith.constant 0 : index
    %449 = vector.load %arg17[%c1_189, %c1_190, %c0_191, %c0_192] : memref<2x4x8x8xf32, #tpu.memory_space<vmem>>, vector<1x1x8x8xf32>
    %450 = vector.shape_cast %449 : vector<1x1x8x8xf32> to vector<8x8xf32>
    %451 = vector.shape_cast %417 : vector<8x8xf32> to vector<1x1x8x8xf32>
    tpu.vector_store %arg17[%c1_189, %c1_190, %c0_191, %c0_192], %451 {strides = array<i32>} : memref<2x4x8x8xf32, #tpu.memory_space<vmem>>, vector<1x1x8x8xf32>,
    %c1_193 = arith.constant 1 : index
    %c1_194 = arith.constant 1 : index
    %c0_195 = arith.constant 0 : index
    %c0_196 = arith.constant 0 : index
    %452 = vector.load %arg18[%c1_193, %c1_194, %c0_195, %c0_196] : memref<2x4x8x8xf32, #tpu.memory_space<vmem>>, vector<1x1x8x8xf32>
    %453 = vector.shape_cast %452 : vector<1x1x8x8xf32> to vector<8x8xf32>
    %454 = vector.shape_cast %447 : vector<8x8xf32> to vector<1x1x8x8xf32>
    tpu.vector_store %arg18[%c1_193, %c1_194, %c0_195, %c0_196], %454 {strides = array<i32>} : memref<2x4x8x8xf32, #tpu.memory_space<vmem>>, vector<1x1x8x8xf32>,
    %455 = arith.addf %418, %448 : vector<8x8xf32>
    %456 = vector.extract_strided_slice %27 {offsets = [8, 0], sizes = [8, 32], strides = [1, 1]} : vector<32x32xf32> to vector<8x32xf32>
    %cst_197 = arith.constant dense<0.000000e+00> : vector<8x32xf32>
    %457 = tpu.matmul %455, %456, %cst_197 {dimension_numbers = #tpu.dot_dimension_numbers<[1], [0], [0], [1], [0, 0, 1, 1], [], []>} : vector<8x8xf32>, vector<8x32xf32>, vector<8x32xf32> -> vector<8x32xf32>
    %458 = arith.addf %388, %457 : vector<8x32xf32>
    %459 = vector.extract_strided_slice %314 {offsets = [0, 16], sizes = [8, 8], strides = [1, 1]} : vector<8x96xf32> to vector<8x8xf32>
    %460 = vector.extract_strided_slice %314 {offsets = [0, 48], sizes = [8, 8], strides = [1, 1]} : vector<8x96xf32> to vector<8x8xf32>
    %461 = vector.extract_strided_slice %314 {offsets = [0, 80], sizes = [8, 8], strides = [1, 1]} : vector<8x96xf32> to vector<8x8xf32>
    %462 = vector.extract_strided_slice %315 {offsets = [0, 16], sizes = [8, 8], strides = [1, 1]} : vector<8x64xf32> to vector<8x8xf32>
    %463 = vector.extract_strided_slice %315 {offsets = [0, 48], sizes = [8, 8], strides = [1, 1]} : vector<8x64xf32> to vector<8x8xf32>
    %464 = tpu.transpose %460, [1, 0] : vector<8x8xf32> -> vector<8x8xf32>
    %cst_198 = arith.constant dense<0.000000e+00> : vector<8x8xf32>
    %465 = tpu.matmul %459, %464, %cst_198 {dimension_numbers = #tpu.dot_dimension_numbers<[1], [0], [0], [1], [0, 0, 1, 1], [], []>} : vector<8x8xf32>, vector<8x8xf32>, vector<8x8xf32> -> vector<8x8xf32>
    %cst_199 = arith.constant 0.353553385 : f32
    %466 = vector.broadcast %cst_199 : f32 to vector<8x8xf32>
    %467 = arith.mulf %465, %466 : vector<8x8xf32>
    %468 = tpu.transpose %463, [1, 0] : vector<8x8xf32> -> vector<8x8xf32>
    %cst_200 = arith.constant dense<0.000000e+00> : vector<8x8xf32>
    %469 = tpu.matmul %462, %468, %cst_200 {dimension_numbers = #tpu.dot_dimension_numbers<[1], [0], [0], [1], [0, 0, 1, 1], [], []>} : vector<8x8xf32>, vector<8x8xf32>, vector<8x8xf32> -> vector<8x8xf32>
    %cst_201 = arith.constant 0.353553385 : f32
    %470 = vector.broadcast %cst_201 : f32 to vector<8x8xf32>
    %471 = arith.mulf %469, %470 : vector<8x8xf32>
    %cst_202 = arith.constant dense<0.000000e+00> : vector<8x9xf32>
    %472 = tpu.matmul %459, %24, %cst_202 {dimension_numbers = #tpu.dot_dimension_numbers<[1], [0], [0], [1], [0, 0, 1, 1], [], []>} : vector<8x8xf32>, vector<8x9xf32>, vector<8x9xf32> -> vector<8x9xf32>
    %473 = vector.shape_cast %472 : vector<8x9xf32> to vector<1x8x9xf32>
    %474 = vector.broadcast %473 : vector<1x8x9xf32> to vector<8x8x9xf32>
    %475 = arith.mulf %26, %474 : vector<8x8x9xf32>
    %cst_203 = arith.constant dense<0.000000e+00> : vector<8x8xf32>
    %476 = vector.multi_reduction <add>, %475, %cst_203 [2] : vector<8x8x9xf32> to vector<8x8xf32>
    %477 = arith.addf %467, %476 : vector<8x8xf32>
    %478 = arith.addf %477, %471 : vector<8x8xf32>
    %cst_204 = arith.constant dense<0xFF800000> : vector<8xf32>
    %479 = vector.multi_reduction <maximumf>, %478, %cst_204 [1] : vector<8x8xf32> to vector<8xf32>
    %480 = vector.shape_cast %479 : vector<8xf32> to vector<8x1xf32>
    %481 = vector.broadcast %480 : vector<8x1xf32> to vector<8x8xf32>
    %482 = arith.subf %478, %481 : vector<8x8xf32>
    %483 = math.exp %482 : vector<8x8xf32>
    %cst_205 = arith.constant dense<0.000000e+00> : vector<8xf32>
    %484 = vector.multi_reduction <add>, %483, %cst_205 [1] : vector<8x8xf32> to vector<8xf32>
    %485 = vector.shape_cast %484 : vector<8xf32> to vector<8x1xf32>
    %486 = vector.broadcast %485 : vector<8x1xf32> to vector<8x8xf32>
    %487 = arith.divf %483, %486 : vector<8x8xf32>
    %cst_206 = arith.constant dense<0.000000e+00> : vector<8x8xf32>
    %488 = tpu.matmul %487, %461, %cst_206 {dimension_numbers = #tpu.dot_dimension_numbers<[1], [0], [0], [1], [0, 0, 1, 1], [], []>} : vector<8x8xf32>, vector<8x8xf32>, vector<8x8xf32> -> vector<8x8xf32>
    %489 = vector.extract_strided_slice %316 {offsets = [0, 16], sizes = [8, 8], strides = [1, 1]} : vector<8x96xf32> to vector<8x8xf32>
    %490 = vector.extract_strided_slice %316 {offsets = [0, 48], sizes = [8, 8], strides = [1, 1]} : vector<8x96xf32> to vector<8x8xf32>
    %491 = vector.extract_strided_slice %316 {offsets = [0, 80], sizes = [8, 8], strides = [1, 1]} : vector<8x96xf32> to vector<8x8xf32>
    %492 = vector.extract_strided_slice %317 {offsets = [0, 16], sizes = [8, 8], strides = [1, 1]} : vector<8x64xf32> to vector<8x8xf32>
    %493 = vector.extract_strided_slice %317 {offsets = [0, 48], sizes = [8, 8], strides = [1, 1]} : vector<8x64xf32> to vector<8x8xf32>
    %494 = tpu.transpose %490, [1, 0] : vector<8x8xf32> -> vector<8x8xf32>
    %cst_207 = arith.constant dense<0.000000e+00> : vector<8x8xf32>
    %495 = tpu.matmul %489, %494, %cst_207 {dimension_numbers = #tpu.dot_dimension_numbers<[1], [0], [0], [1], [0, 0, 1, 1], [], []>} : vector<8x8xf32>, vector<8x8xf32>, vector<8x8xf32> -> vector<8x8xf32>
    %cst_208 = arith.constant 0.353553385 : f32
    %496 = vector.broadcast %cst_208 : f32 to vector<8x8xf32>
    %497 = arith.mulf %495, %496 : vector<8x8xf32>
    %498 = tpu.transpose %493, [1, 0] : vector<8x8xf32> -> vector<8x8xf32>
    %cst_209 = arith.constant dense<0.000000e+00> : vector<8x8xf32>
    %499 = tpu.matmul %492, %498, %cst_209 {dimension_numbers = #tpu.dot_dimension_numbers<[1], [0], [0], [1], [0, 0, 1, 1], [], []>} : vector<8x8xf32>, vector<8x8xf32>, vector<8x8xf32> -> vector<8x8xf32>
    %cst_210 = arith.constant 0.353553385 : f32
    %500 = vector.broadcast %cst_210 : f32 to vector<8x8xf32>
    %501 = arith.mulf %499, %500 : vector<8x8xf32>
    %cst_211 = arith.constant dense<0.000000e+00> : vector<8x9xf32>
    %502 = tpu.matmul %489, %25, %cst_211 {dimension_numbers = #tpu.dot_dimension_numbers<[1], [0], [0], [1], [0, 0, 1, 1], [], []>} : vector<8x8xf32>, vector<8x9xf32>, vector<8x9xf32> -> vector<8x9xf32>
    %503 = vector.shape_cast %502 : vector<8x9xf32> to vector<1x8x9xf32>
    %504 = vector.broadcast %503 : vector<1x8x9xf32> to vector<8x8x9xf32>
    %505 = arith.mulf %26, %504 : vector<8x8x9xf32>
    %cst_212 = arith.constant dense<0.000000e+00> : vector<8x8xf32>
    %506 = vector.multi_reduction <add>, %505, %cst_212 [2] : vector<8x8x9xf32> to vector<8x8xf32>
    %507 = arith.addf %497, %506 : vector<8x8xf32>
    %508 = arith.addf %507, %501 : vector<8x8xf32>
    %cst_213 = arith.constant dense<0xFF800000> : vector<8xf32>
    %509 = vector.multi_reduction <maximumf>, %508, %cst_213 [1] : vector<8x8xf32> to vector<8xf32>
    %510 = vector.shape_cast %509 : vector<8xf32> to vector<8x1xf32>
    %511 = vector.broadcast %510 : vector<8x1xf32> to vector<8x8xf32>
    %512 = arith.subf %508, %511 : vector<8x8xf32>
    %513 = math.exp %512 : vector<8x8xf32>
    %cst_214 = arith.constant dense<0.000000e+00> : vector<8xf32>
    %514 = vector.multi_reduction <add>, %513, %cst_214 [1] : vector<8x8xf32> to vector<8xf32>
    %515 = vector.shape_cast %514 : vector<8xf32> to vector<8x1xf32>
    %516 = vector.broadcast %515 : vector<8x1xf32> to vector<8x8xf32>
    %517 = arith.divf %513, %516 : vector<8x8xf32>
    %cst_215 = arith.constant dense<0.000000e+00> : vector<8x8xf32>
    %518 = tpu.matmul %517, %491, %cst_215 {dimension_numbers = #tpu.dot_dimension_numbers<[1], [0], [0], [1], [0, 0, 1, 1], [], []>} : vector<8x8xf32>, vector<8x8xf32>, vector<8x8xf32> -> vector<8x8xf32>
    %c1_216 = arith.constant 1 : index
    %c2_217 = arith.constant 2 : index
    %c0_218 = arith.constant 0 : index
    %c0_219 = arith.constant 0 : index
    %519 = vector.load %arg17[%c1_216, %c2_217, %c0_218, %c0_219] : memref<2x4x8x8xf32, #tpu.memory_space<vmem>>, vector<1x1x8x8xf32>
    %520 = vector.shape_cast %519 : vector<1x1x8x8xf32> to vector<8x8xf32>
    %521 = vector.shape_cast %487 : vector<8x8xf32> to vector<1x1x8x8xf32>
    tpu.vector_store %arg17[%c1_216, %c2_217, %c0_218, %c0_219], %521 {strides = array<i32>} : memref<2x4x8x8xf32, #tpu.memory_space<vmem>>, vector<1x1x8x8xf32>,
    %c1_220 = arith.constant 1 : index
    %c2_221 = arith.constant 2 : index
    %c0_222 = arith.constant 0 : index
    %c0_223 = arith.constant 0 : index
    %522 = vector.load %arg18[%c1_220, %c2_221, %c0_222, %c0_223] : memref<2x4x8x8xf32, #tpu.memory_space<vmem>>, vector<1x1x8x8xf32>
    %523 = vector.shape_cast %522 : vector<1x1x8x8xf32> to vector<8x8xf32>
    %524 = vector.shape_cast %517 : vector<8x8xf32> to vector<1x1x8x8xf32>
    tpu.vector_store %arg18[%c1_220, %c2_221, %c0_222, %c0_223], %524 {strides = array<i32>} : memref<2x4x8x8xf32, #tpu.memory_space<vmem>>, vector<1x1x8x8xf32>,
    %525 = arith.addf %488, %518 : vector<8x8xf32>
    %526 = vector.extract_strided_slice %27 {offsets = [16, 0], sizes = [8, 32], strides = [1, 1]} : vector<32x32xf32> to vector<8x32xf32>
    %cst_224 = arith.constant dense<0.000000e+00> : vector<8x32xf32>
    %527 = tpu.matmul %525, %526, %cst_224 {dimension_numbers = #tpu.dot_dimension_numbers<[1], [0], [0], [1], [0, 0, 1, 1], [], []>} : vector<8x8xf32>, vector<8x32xf32>, vector<8x32xf32> -> vector<8x32xf32>
    %528 = arith.addf %458, %527 : vector<8x32xf32>
    %529 = vector.extract_strided_slice %314 {offsets = [0, 24], sizes = [8, 8], strides = [1, 1]} : vector<8x96xf32> to vector<8x8xf32>
    %530 = vector.extract_strided_slice %314 {offsets = [0, 56], sizes = [8, 8], strides = [1, 1]} : vector<8x96xf32> to vector<8x8xf32>
    %531 = vector.extract_strided_slice %314 {offsets = [0, 88], sizes = [8, 8], strides = [1, 1]} : vector<8x96xf32> to vector<8x8xf32>
    %532 = vector.extract_strided_slice %315 {offsets = [0, 24], sizes = [8, 8], strides = [1, 1]} : vector<8x64xf32> to vector<8x8xf32>
    %533 = vector.extract_strided_slice %315 {offsets = [0, 56], sizes = [8, 8], strides = [1, 1]} : vector<8x64xf32> to vector<8x8xf32>
    %534 = tpu.transpose %530, [1, 0] : vector<8x8xf32> -> vector<8x8xf32>
    %cst_225 = arith.constant dense<0.000000e+00> : vector<8x8xf32>
    %535 = tpu.matmul %529, %534, %cst_225 {dimension_numbers = #tpu.dot_dimension_numbers<[1], [0], [0], [1], [0, 0, 1, 1], [], []>} : vector<8x8xf32>, vector<8x8xf32>, vector<8x8xf32> -> vector<8x8xf32>
    %cst_226 = arith.constant 0.353553385 : f32
    %536 = vector.broadcast %cst_226 : f32 to vector<8x8xf32>
    %537 = arith.mulf %535, %536 : vector<8x8xf32>
    %538 = tpu.transpose %533, [1, 0] : vector<8x8xf32> -> vector<8x8xf32>
    %cst_227 = arith.constant dense<0.000000e+00> : vector<8x8xf32>
    %539 = tpu.matmul %532, %538, %cst_227 {dimension_numbers = #tpu.dot_dimension_numbers<[1], [0], [0], [1], [0, 0, 1, 1], [], []>} : vector<8x8xf32>, vector<8x8xf32>, vector<8x8xf32> -> vector<8x8xf32>
    %cst_228 = arith.constant 0.353553385 : f32
    %540 = vector.broadcast %cst_228 : f32 to vector<8x8xf32>
    %541 = arith.mulf %539, %540 : vector<8x8xf32>
    %cst_229 = arith.constant dense<0.000000e+00> : vector<8x9xf32>
    %542 = tpu.matmul %529, %24, %cst_229 {dimension_numbers = #tpu.dot_dimension_numbers<[1], [0], [0], [1], [0, 0, 1, 1], [], []>} : vector<8x8xf32>, vector<8x9xf32>, vector<8x9xf32> -> vector<8x9xf32>
    %543 = vector.shape_cast %542 : vector<8x9xf32> to vector<1x8x9xf32>
    %544 = vector.broadcast %543 : vector<1x8x9xf32> to vector<8x8x9xf32>
    %545 = arith.mulf %26, %544 : vector<8x8x9xf32>
    %cst_230 = arith.constant dense<0.000000e+00> : vector<8x8xf32>
    %546 = vector.multi_reduction <add>, %545, %cst_230 [2] : vector<8x8x9xf32> to vector<8x8xf32>
    %547 = arith.addf %537, %546 : vector<8x8xf32>
    %548 = arith.addf %547, %541 : vector<8x8xf32>
    %cst_231 = arith.constant dense<0xFF800000> : vector<8xf32>
    %549 = vector.multi_reduction <maximumf>, %548, %cst_231 [1] : vector<8x8xf32> to vector<8xf32>
    %550 = vector.shape_cast %549 : vector<8xf32> to vector<8x1xf32>
    %551 = vector.broadcast %550 : vector<8x1xf32> to vector<8x8xf32>
    %552 = arith.subf %548, %551 : vector<8x8xf32>
    %553 = math.exp %552 : vector<8x8xf32>
    %cst_232 = arith.constant dense<0.000000e+00> : vector<8xf32>
    %554 = vector.multi_reduction <add>, %553, %cst_232 [1] : vector<8x8xf32> to vector<8xf32>
    %555 = vector.shape_cast %554 : vector<8xf32> to vector<8x1xf32>
    %556 = vector.broadcast %555 : vector<8x1xf32> to vector<8x8xf32>
    %557 = arith.divf %553, %556 : vector<8x8xf32>
    %cst_233 = arith.constant dense<0.000000e+00> : vector<8x8xf32>
    %558 = tpu.matmul %557, %531, %cst_233 {dimension_numbers = #tpu.dot_dimension_numbers<[1], [0], [0], [1], [0, 0, 1, 1], [], []>} : vector<8x8xf32>, vector<8x8xf32>, vector<8x8xf32> -> vector<8x8xf32>
    %559 = vector.extract_strided_slice %316 {offsets = [0, 24], sizes = [8, 8], strides = [1, 1]} : vector<8x96xf32> to vector<8x8xf32>
    %560 = vector.extract_strided_slice %316 {offsets = [0, 56], sizes = [8, 8], strides = [1, 1]} : vector<8x96xf32> to vector<8x8xf32>
    %561 = vector.extract_strided_slice %316 {offsets = [0, 88], sizes = [8, 8], strides = [1, 1]} : vector<8x96xf32> to vector<8x8xf32>
    %562 = vector.extract_strided_slice %317 {offsets = [0, 24], sizes = [8, 8], strides = [1, 1]} : vector<8x64xf32> to vector<8x8xf32>
    %563 = vector.extract_strided_slice %317 {offsets = [0, 56], sizes = [8, 8], strides = [1, 1]} : vector<8x64xf32> to vector<8x8xf32>
    %564 = tpu.transpose %560, [1, 0] : vector<8x8xf32> -> vector<8x8xf32>
    %cst_234 = arith.constant dense<0.000000e+00> : vector<8x8xf32>
    %565 = tpu.matmul %559, %564, %cst_234 {dimension_numbers = #tpu.dot_dimension_numbers<[1], [0], [0], [1], [0, 0, 1, 1], [], []>} : vector<8x8xf32>, vector<8x8xf32>, vector<8x8xf32> -> vector<8x8xf32>
    %cst_235 = arith.constant 0.353553385 : f32
    %566 = vector.broadcast %cst_235 : f32 to vector<8x8xf32>
    %567 = arith.mulf %565, %566 : vector<8x8xf32>
    %568 = tpu.transpose %563, [1, 0] : vector<8x8xf32> -> vector<8x8xf32>
    %cst_236 = arith.constant dense<0.000000e+00> : vector<8x8xf32>
    %569 = tpu.matmul %562, %568, %cst_236 {dimension_numbers = #tpu.dot_dimension_numbers<[1], [0], [0], [1], [0, 0, 1, 1], [], []>} : vector<8x8xf32>, vector<8x8xf32>, vector<8x8xf32> -> vector<8x8xf32>
    %cst_237 = arith.constant 0.353553385 : f32
    %570 = vector.broadcast %cst_237 : f32 to vector<8x8xf32>
    %571 = arith.mulf %569, %570 : vector<8x8xf32>
    %cst_238 = arith.constant dense<0.000000e+00> : vector<8x9xf32>
    %572 = tpu.matmul %559, %25, %cst_238 {dimension_numbers = #tpu.dot_dimension_numbers<[1], [0], [0], [1], [0, 0, 1, 1], [], []>} : vector<8x8xf32>, vector<8x9xf32>, vector<8x9xf32> -> vector<8x9xf32>
    %573 = vector.shape_cast %572 : vector<8x9xf32> to vector<1x8x9xf32>
    %574 = vector.broadcast %573 : vector<1x8x9xf32> to vector<8x8x9xf32>
    %575 = arith.mulf %26, %574 : vector<8x8x9xf32>
    %cst_239 = arith.constant dense<0.000000e+00> : vector<8x8xf32>
    %576 = vector.multi_reduction <add>, %575, %cst_239 [2] : vector<8x8x9xf32> to vector<8x8xf32>
    %577 = arith.addf %567, %576 : vector<8x8xf32>
    %578 = arith.addf %577, %571 : vector<8x8xf32>
    %cst_240 = arith.constant dense<0xFF800000> : vector<8xf32>
    %579 = vector.multi_reduction <maximumf>, %578, %cst_240 [1] : vector<8x8xf32> to vector<8xf32>
    %580 = vector.shape_cast %579 : vector<8xf32> to vector<8x1xf32>
    %581 = vector.broadcast %580 : vector<8x1xf32> to vector<8x8xf32>
    %582 = arith.subf %578, %581 : vector<8x8xf32>
    %583 = math.exp %582 : vector<8x8xf32>
    %cst_241 = arith.constant dense<0.000000e+00> : vector<8xf32>
    %584 = vector.multi_reduction <add>, %583, %cst_241 [1] : vector<8x8xf32> to vector<8xf32>
    %585 = vector.shape_cast %584 : vector<8xf32> to vector<8x1xf32>
    %586 = vector.broadcast %585 : vector<8x1xf32> to vector<8x8xf32>
    %587 = arith.divf %583, %586 : vector<8x8xf32>
    %cst_242 = arith.constant dense<0.000000e+00> : vector<8x8xf32>
    %588 = tpu.matmul %587, %561, %cst_242 {dimension_numbers = #tpu.dot_dimension_numbers<[1], [0], [0], [1], [0, 0, 1, 1], [], []>} : vector<8x8xf32>, vector<8x8xf32>, vector<8x8xf32> -> vector<8x8xf32>
    %c1_243 = arith.constant 1 : index
    %c3_244 = arith.constant 3 : index
    %c0_245 = arith.constant 0 : index
    %c0_246 = arith.constant 0 : index
    %589 = vector.load %arg17[%c1_243, %c3_244, %c0_245, %c0_246] : memref<2x4x8x8xf32, #tpu.memory_space<vmem>>, vector<1x1x8x8xf32>
    %590 = vector.shape_cast %589 : vector<1x1x8x8xf32> to vector<8x8xf32>
    %591 = vector.shape_cast %557 : vector<8x8xf32> to vector<1x1x8x8xf32>
    tpu.vector_store %arg17[%c1_243, %c3_244, %c0_245, %c0_246], %591 {strides = array<i32>} : memref<2x4x8x8xf32, #tpu.memory_space<vmem>>, vector<1x1x8x8xf32>,
    %c1_247 = arith.constant 1 : index
    %c3_248 = arith.constant 3 : index
    %c0_249 = arith.constant 0 : index
    %c0_250 = arith.constant 0 : index
    %592 = vector.load %arg18[%c1_247, %c3_248, %c0_249, %c0_250] : memref<2x4x8x8xf32, #tpu.memory_space<vmem>>, vector<1x1x8x8xf32>
    %593 = vector.shape_cast %592 : vector<1x1x8x8xf32> to vector<8x8xf32>
    %594 = vector.shape_cast %587 : vector<8x8xf32> to vector<1x1x8x8xf32>
    tpu.vector_store %arg18[%c1_247, %c3_248, %c0_249, %c0_250], %594 {strides = array<i32>} : memref<2x4x8x8xf32, #tpu.memory_space<vmem>>, vector<1x1x8x8xf32>,
    %595 = arith.addf %558, %588 : vector<8x8xf32>
    %596 = vector.extract_strided_slice %27 {offsets = [24, 0], sizes = [8, 32], strides = [1, 1]} : vector<32x32xf32> to vector<8x32xf32>
    %cst_251 = arith.constant dense<0.000000e+00> : vector<8x32xf32>
    %597 = tpu.matmul %595, %596, %cst_251 {dimension_numbers = #tpu.dot_dimension_numbers<[1], [0], [0], [1], [0, 0, 1, 1], [], []>} : vector<8x8xf32>, vector<8x32xf32>, vector<8x32xf32> -> vector<8x32xf32>
    %598 = arith.addf %528, %597 : vector<8x32xf32>
    %c8 = arith.constant 8 : index
    %c0_252 = arith.constant 0 : index
    %599 = vector.load %arg16[%c8, %c0_252] : memref<16x32xf32, #tpu.memory_space<vmem>>, vector<8x32xf32>
    tpu.vector_store %arg16[%c8, %c0_252], %598 {strides = array<i32>} : memref<16x32xf32, #tpu.memory_space<vmem>>, vector<8x32xf32>,
    return
  }
}

</mosaic_0001>

<bundles_post_ra>
// kernel: multimodal_attention_layer.1
= control target key start
LH: loop header
LB: loop body
LE: loop exit
PB: predicated region body
PF: predicated region fallthrough
CT: control target
= control target key end

     0   :  { %s10586_s0 = inlined_call_operand.hbm [shape: f32[16,32], index: 0, kind: input, shape index: {}]   ;;  %s10587_s1 = inlined_call_operand.hbm [shape: f32[16,32], index: 1, kind: input, shape index: {}]   ;;  %s10588_s2 = inlined_call_operand.hbm [shape: f32[16,32], index: 2, kind: input, shape index: {}]   ;;  %s10589_s3 = inlined_call_operand.hbm [shape: f32[16,32], index: 3, kind: input, shape index: {}]   ;;  %s10590_s4 = inlined_call_operand.vmem [shape: f32[32,96], index: 4, kind: input, shape index: {}]   ;;  %s10591_s5 = inlined_call_operand.hbm [shape: f32[1,96], index: 5, kind: input, shape index: {}]   ;;  %s10592_s6 = inlined_call_operand.vmem [shape: f32[32,64], index: 6, kind: input, shape index: {}]   ;;  %s10593_s7 = inlined_call_operand.hbm [shape: f32[1,64], index: 7, kind: input, shape index: {}]   ;;  %s10594_s8 = inlined_call_operand.hbm [shape: f32[8,9], index: 8, kind: input, shape index: {}]   ;;  %s10595_s9 = inlined_call_operand.hbm [shape: f32[32,96], index: 9, kind: input, shape index: {}]   ;;  %s10596_s10 = inlined_call_operand.hbm [shape: f32[1,96], index: 10, kind: input, shape index: {}]   ;;  %s10597_s11 = inlined_call_operand.hbm [shape: f32[32,64], index: 11, kind: input, shape index: {}]   ;;  %s10598_s12 = inlined_call_operand.hbm [shape: f32[1,64], index: 12, kind: input, shape index: {}]   ;;  %s10599_s13 = inlined_call_operand.hbm [shape: f32[8,9], index: 13, kind: input, shape index: {}]   ;;  %s10600_s14 = inlined_call_operand.hbm [shape: f32[32,32], index: 14, kind: input, shape index: {}]   ;;  %s10601_s15 = inlined_call_operand.hbm [shape: f32[8,8,9], index: 15, kind: input, shape index: {}]   ;;  %s10602_s16 = inlined_call_operand.hbm [shape: f32[16,32], index: 16, kind: output, shape index: {0}]   ;;  %s10603_s17 = inlined_call_operand.hbm [shape: f32[2,4,8,8], index: 17, kind: output, shape index: {1}]   ;;  %s10604_s18 = inlined_call_operand.hbm [shape: f32[2,4,8,8], index: 18, kind: output, shape index: {2}]  }
   0x1   :  { %10609 = sst [smem:[#allocation39_spill]] %s10586_s0 }
   0x2   :  { %10610 = sst [smem:[#allocation40_spill]] %s10587_s1 }
   0x3   :  { %10611 = sst [smem:[#allocation41_spill]] %s10588_s2 }
   0x4   :  { %10612 = sst [smem:[#allocation42_spill]] %s10602_s16 }
   0x5   :  { %24 = vsyncpa [#allocation3], 0 }
   0x6   :  { %25 = vsyncpa [#allocation6], 0 }
   0x7   :  { %26 = vsyncpa [#allocation9], 0 }
   0x8   :  { %27 = vsyncpa [#allocation12], 0 }
   0x9   :  { %28 = vsyncpa [#allocation15], 0 }
   0xa   :  { %29 = vsyncpa [#allocation18], 0 }
   0xb   :  { %30 = vsyncpa [#allocation21], 0 }
   0xc   :  { %31 = vsyncpa [#allocation24], 0 }
   0xd   :  { %32 = vsyncpa [#allocation4], 0 }
   0xe   :  { %33 = vsyncpa [#allocation27], 0  ;;  %s8919_s27 = smov [#allocation5]   ;;  %s8920_s29 = smov [#allocation8]  }
   0xf   :  { %s51_s28 = sshll.u32 %s8919_s27, 4  ;;  %s75_s30 = sshll.u32 %s8920_s29, 4  ;;  %s52_s28 = int_to_ptr.vmem [resolvable:$true] %s51_s28  ;;  %s9046_s30 = int_to_ptr.vmem [resolvable:$true] %s75_s30 }
  0x10   :  { %s10613_s1 = sld [smem:[#allocation40_spill]] }
  0x16   :  { %s8525_s20 = scalar_lea.hbm %s10613_s1, 256 }
  0x17   :  { %p8526_p0 = scmp.ne.s32.totalorder %s10613_s1, %s8525_s20  ;;  %p8529_p1 = scmp.lt.u32.totalorder %s8525_s20, %s10613_s1 }
  0x19   :  { %p8531_p2 = pnand %p8529_p1, %p8526_p0 }
  0x1b   :  { %8534 = shalt.err (!%p8531_p2)
}
  0x1c   :  { %s8535_s24 = scalar_lea.vmem %s52_s28, 256  ;;  %p8540_p4 = scmp.lt.s32.totalorder %s52_s28, %s52_s28 }
  0x1d   :  { %p8536_p3 = scmp.ne.s32.totalorder %s52_s28, %s8535_s24  ;;  %p8541_p5 = scmp.lt.s32.totalorder %s8535_s24, %s8535_s24 }
  0x1f   :  { %p8542_p6 = por %p8541_p5, %p8540_p4 }
  0x21   :  { %p8543_p7 = pnand %p8542_p6, %p8536_p3 }
  0x23   :  { %8546 = shalt.err (!%p8543_p7)
}
  0x24   :  { %s8921_s25 = smov 128   ;;  %s8922_s26 = smov 8  }
  0x25   :  { %57 = dma.hbm_to_vmem [thread:$0]  %s10613_s1, 256, %s52_s28, [#allocation6], %s8921_s25, %s8921_s25, %s8922_s26  }
  0x26   :  { %s8547_s20 = scalar_lea.hbm %s10589_s3, 256 }
  0x27   :  { %p8548_p8 = scmp.ne.s32.totalorder %s10589_s3, %s8547_s20  ;;  %p8551_p9 = scmp.lt.u32.totalorder %s8547_s20, %s10589_s3 }
  0x29   :  { %p8553_p10 = pnand %p8551_p9, %p8548_p8 }
  0x2b   :  { %8556 = shalt.err (!%p8553_p10)
}
  0x2c   :  { %s8557_s24 = scalar_lea.vmem %s9046_s30, 256  ;;  %p8562_p12 = scmp.lt.s32.totalorder %s9046_s30, %s9046_s30 }
  0x2d   :  { %p8558_p11 = scmp.ne.s32.totalorder %s9046_s30, %s8557_s24  ;;  %p8563_p13 = scmp.lt.s32.totalorder %s8557_s24, %s8557_s24 }
  0x2f   :  { %p8564_p0 = por %p8563_p13, %p8562_p12 }
  0x31   :  { %p8565_p1 = pnand %p8564_p0, %p8558_p11 }
  0x33   :  { %8568 = shalt.err (!%p8565_p1)
}
  0x34   :  { %81 = dma.hbm_to_vmem [thread:$0]  %s10589_s3, 256, %s9046_s30, [#allocation9], %s8921_s25, %s8921_s25, %s8922_s26  }
  0x35   :  { %s8923_s27 = smov [#allocation11]   ;;  %s8924_s0 = smov [#allocation14]  }
  0x36   :  { %s102_s29 = sshll.u32 %s8923_s27, 4  ;;  %s121_s19 = sshll.u32 %s8924_s0, 4  ;;  %s103_s29 = int_to_ptr.vmem [resolvable:$true] %s102_s29  ;;  %s9083_s19 = int_to_ptr.vmem [resolvable:$true] %s121_s19 }
  0x37   :  { %s8569_s22 = scalar_lea.hbm %s10593_s7, 16 }
  0x38   :  { %p8570_p2 = scmp.ne.s32.totalorder %s10593_s7, %s8569_s22  ;;  %p8573_p3 = scmp.lt.u32.totalorder %s8569_s22, %s10593_s7 }
  0x3a   :  { %p8575_p4 = pnand %p8573_p3, %p8570_p2 }
  0x3c   :  { %8578 = shalt.err (!%p8575_p4)
}
  0x3d   :  { %s8579_s3 = scalar_lea.vmem %s103_s29, 16  ;;  %s8583_s30 = scalar_lea.vmem %s103_s29, 32 }
  0x3e   :  { %p8580_p5 = scmp.ne.s32.totalorder %s103_s29, %s8579_s3  ;;  %p8584_p6 = scmp.lt.s32.totalorder %s103_s29, %s103_s29 }
  0x3f   :  { %p8585_p7 = scmp.lt.s32.totalorder %s8583_s30, %s8579_s3 }
  0x41   :  { %p8586_p8 = por %p8585_p7, %p8584_p6 }
  0x43   :  { %p8587_p9 = pnand %p8586_p8, %p8580_p5 }
  0x45   :  { %8590 = shalt.err (!%p8587_p9)
}
  0x46   :  { %105 = dma.hbm_to_vmem [thread:$0]  %s10593_s7, 16, %s103_s29, [#allocation12]  }
  0x47   :  { %s8591_s20 = scalar_lea.hbm %s10595_s9, 512 }
  0x48   :  { %p8592_p10 = scmp.ne.s32.totalorder %s10595_s9, %s8591_s20  ;;  %p8595_p11 = scmp.lt.u32.totalorder %s8591_s20, %s10595_s9 }
  0x4a   :  { %p8597_p12 = pnand %p8595_p11, %p8592_p10 }
  0x4c   :  { %8600 = shalt.err (!%p8597_p12)
}
  0x4d   :  { %s8601_s23 = scalar_lea.vmem %s9083_s19, 512  ;;  %p8606_p0 = scmp.lt.s32.totalorder %s9083_s19, %s9083_s19 }
  0x4e   :  { %p8602_p13 = scmp.ne.s32.totalorder %s9083_s19, %s8601_s23  ;;  %p8607_p1 = scmp.lt.s32.totalorder %s8601_s23, %s8601_s23 }
  0x50   :  { %p8608_p2 = por %p8607_p1, %p8606_p0 }
  0x52   :  { %p8609_p3 = pnand %p8608_p2, %p8602_p13 }
  0x54   :  { %8612 = shalt.err (!%p8609_p3)
}
  0x55   :  { %127 = dma.hbm_to_vmem [thread:$0]  %s10595_s9, 512, %s9083_s19, [#allocation15], %s8921_s25, %s8921_s25, %s8922_s26  }
  0x56   :  { %s8925_s24 = smov [#allocation17]   ;;  %s8926_s30 = smov [#allocation20]  }
  0x57   :  { %s143_s3 = sshll.u32 %s8925_s24, 4  ;;  %s166_s28 = sshll.u32 %s8926_s30, 4  ;;  %s144_s3 = int_to_ptr.vmem [resolvable:$true] %s143_s3  ;;  %s167_s28 = int_to_ptr.vmem [resolvable:$true] %s166_s28 }
  0x58   :  { %s8613_s0 = scalar_lea.hbm %s10597_s11, 512 }
  0x59   :  { %p8614_p4 = scmp.ne.s32.totalorder %s10597_s11, %s8613_s0  ;;  %p8617_p5 = scmp.lt.u32.totalorder %s8613_s0, %s10597_s11 }
  0x5b   :  { %p8619_p6 = pnand %p8617_p5, %p8614_p4 }
  0x5d   :  { %8622 = shalt.err (!%p8619_p6)
}
  0x5e   :  { %s8623_s9 = scalar_lea.vmem %s144_s3, 512  ;;  %p8628_p8 = scmp.lt.s32.totalorder %s144_s3, %s144_s3 }
  0x5f   :  { %p8624_p7 = scmp.ne.s32.totalorder %s144_s3, %s8623_s9  ;;  %p8629_p9 = scmp.lt.s32.totalorder %s8623_s9, %s8623_s9 }
  0x61   :  { %p8630_p10 = por %p8629_p9, %p8628_p8 }
  0x63   :  { %p8631_p11 = pnand %p8630_p10, %p8624_p7 }
  0x65   :  { %8634 = shalt.err (!%p8631_p11)
}
  0x66   :  { %149 = dma.hbm_to_vmem [thread:$0]  %s10597_s11, 512, %s144_s3, [#allocation18], %s8921_s25, %s8921_s25, %s8922_s26  }
  0x67   :  { %s8635_s29 = scalar_lea.hbm %s10599_s13, 128 }
  0x68   :  { %p8636_p12 = scmp.ne.s32.totalorder %s10599_s13, %s8635_s29  ;;  %p8639_p13 = scmp.lt.u32.totalorder %s8635_s29, %s10599_s13 }
  0x6a   :  { %p8641_p0 = pnand %p8639_p13, %p8636_p12 }
  0x6c   :  { %8644 = shalt.err (!%p8641_p0)
}
  0x6d   :  { %s8645_s0 = scalar_lea.vmem %s167_s28, 128  ;;  %p8650_p2 = scmp.lt.s32.totalorder %s167_s28, %s167_s28 }
  0x6e   :  { %p8646_p1 = scmp.ne.s32.totalorder %s167_s28, %s8645_s0  ;;  %p8651_p3 = scmp.lt.s32.totalorder %s8645_s0, %s8645_s0 }
  0x70   :  { %p8652_p4 = por %p8651_p3, %p8650_p2 }
  0x72   :  { %p8653_p5 = pnand %p8652_p4, %p8646_p1 }
  0x74   :  { %8656 = shalt.err (!%p8653_p5)
}
  0x75   :  { %169 = dma.hbm_to_vmem [thread:$0]  %s10599_s13, 128, %s167_s28, [#allocation21]  }
  0x76   :  { %s8927_s20 = smov [#allocation2]   ;;  %s8928_s21 = smov [#allocation7]  }
  0x77   :  { %s39_s16 = sshll.u32 %s8927_s20, 4  ;;  %s63_s22 = sshll.u32 %s8928_s21, 4  ;;  %s40_s16 = int_to_ptr.vmem [resolvable:$true] %s39_s16  ;;  %s9144_s22 = int_to_ptr.vmem [resolvable:$true] %s63_s22 }
  0x78   :  { %s10614_s2 = sld [smem:[#allocation39_spill]] }
  0x7e   :  { %s8657_s23 = scalar_lea.hbm %s10614_s2, 256 }
  0x7f   :  { %p8658_p6 = scmp.ne.s32.totalorder %s10614_s2, %s8657_s23  ;;  %p8661_p7 = scmp.lt.u32.totalorder %s8657_s23, %s10614_s2 }
  0x81   :  { %p8663_p8 = pnand %p8661_p7, %p8658_p6 }
  0x83   :  { %8666 = shalt.err (!%p8663_p8)
}
  0x84   :  { %s8667_s13 = scalar_lea.vmem %s40_s16, 256  ;;  %p8672_p10 = scmp.lt.s32.totalorder %s40_s16, %s40_s16 }
  0x85   :  { %p8668_p9 = scmp.ne.s32.totalorder %s40_s16, %s8667_s13  ;;  %p8673_p11 = scmp.lt.s32.totalorder %s8667_s13, %s8667_s13 }
  0x87   :  { %p8674_p12 = por %p8673_p11, %p8672_p10 }
  0x89   :  { %p8675_p13 = pnand %p8674_p12, %p8668_p9 }
  0x8b   :  { %8678 = shalt.err (!%p8675_p13)
}
  0x8c   :  { %45 = dma.hbm_to_vmem [thread:$0]  %s10614_s2, 256, %s40_s16, [#allocation3], %s8921_s25, %s8921_s25, %s8922_s26  }
  0x8d   :  { %s10615_s11 = sld [smem:[#allocation41_spill]] }
  0x93   :  { %s8679_s3 = scalar_lea.hbm %s10615_s11, 256 }
  0x94   :  { %p8680_p0 = scmp.ne.s32.totalorder %s10615_s11, %s8679_s3  ;;  %p8683_p1 = scmp.lt.u32.totalorder %s8679_s3, %s10615_s11 }
  0x96   :  { %p8685_p2 = pnand %p8683_p1, %p8680_p0 }
  0x98   :  { %8688 = shalt.err (!%p8685_p2)
}
  0x99   :  { %s8689_s23 = scalar_lea.vmem %s9144_s22, 256  ;;  %p8694_p4 = scmp.lt.s32.totalorder %s9144_s22, %s9144_s22 }
  0x9a   :  { %p8690_p3 = scmp.ne.s32.totalorder %s9144_s22, %s8689_s23  ;;  %p8695_p5 = scmp.lt.s32.totalorder %s8689_s23, %s8689_s23 }
  0x9c   :  { %p8696_p6 = por %p8695_p5, %p8694_p4 }
  0x9e   :  { %p8697_p7 = pnand %p8696_p6, %p8690_p3 }
  0xa0   :  { %8700 = shalt.err (!%p8697_p7)
}
  0xa1   :  { %69 = dma.hbm_to_vmem [thread:$0]  %s10615_s11, 256, %s9144_s22, [#allocation6], %s8921_s25, %s8921_s25, %s8922_s26  }
  0xa2   :  { %s8929_s7 = smov [#allocation10]   ;;  %s8930_s24 = smov [#allocation13]  }
  0xa3   :  { %s90_s29 = sshll.u32 %s8929_s7, 4  ;;  %s112_s30 = sshll.u32 %s8930_s24, 4  ;;  %s91_s29 = int_to_ptr.vmem [resolvable:$true] %s90_s29  ;;  %s113_s30 = int_to_ptr.vmem [resolvable:$true] %s112_s30 }
  0xa4   :  { %s8701_s1 = scalar_lea.hbm %s10591_s5, 16 }
  0xa5   :  { %p8702_p8 = scmp.ne.s32.totalorder %s10591_s5, %s8701_s1  ;;  %p8705_p9 = scmp.lt.u32.totalorder %s8701_s1, %s10591_s5 }
  0xa7   :  { %p8707_p10 = pnand %p8705_p9, %p8702_p8 }
  0xa9   :  { %8710 = shalt.err (!%p8707_p10)
}
  0xaa   :  { %s8711_s22 = scalar_lea.vmem %s91_s29, 16  ;;  %s8715_s11 = scalar_lea.vmem %s91_s29, 32 }
  0xab   :  { %p8712_p11 = scmp.ne.s32.totalorder %s91_s29, %s8711_s22  ;;  %p8716_p12 = scmp.lt.s32.totalorder %s91_s29, %s91_s29 }
  0xac   :  { %p8717_p13 = scmp.lt.s32.totalorder %s8715_s11, %s8711_s22 }
  0xae   :  { %p8718_p0 = por %p8717_p13, %p8716_p12 }
  0xb0   :  { %p8719_p1 = pnand %p8718_p0, %p8712_p11 }
  0xb2   :  { %8722 = shalt.err (!%p8719_p1)
}
  0xb3   :  { %93 = dma.hbm_to_vmem [thread:$0]  %s10591_s5, 16, %s91_s29, [#allocation9]  }
  0xb4   :  { %s8723_s16 = scalar_lea.hbm %s10594_s8, 128 }
  0xb5   :  { %p8724_p2 = scmp.ne.s32.totalorder %s10594_s8, %s8723_s16  ;;  %p8727_p3 = scmp.lt.u32.totalorder %s8723_s16, %s10594_s8 }
  0xb7   :  { %p8729_p4 = pnand %p8727_p3, %p8724_p2 }
  0xb9   :  { %8732 = shalt.err (!%p8729_p4)
}
  0xba   :  { %s8733_s28 = scalar_lea.vmem %s113_s30, 128  ;;  %p8738_p6 = scmp.lt.s32.totalorder %s113_s30, %s113_s30 }
  0xbb   :  { %p8734_p5 = scmp.ne.s32.totalorder %s113_s30, %s8733_s28  ;;  %p8739_p7 = scmp.lt.s32.totalorder %s8733_s28, %s8733_s28 }
  0xbd   :  { %p8740_p8 = por %p8739_p7, %p8738_p6 }
  0xbf   :  { %p8741_p9 = pnand %p8740_p8, %p8734_p5 }
  0xc1   :  { %8744 = shalt.err (!%p8741_p9)
}
  0xc2   :  { %115 = dma.hbm_to_vmem [thread:$0]  %s10594_s8, 128, %s113_s30, [#allocation12]  }
  0xc3   :  { %s8931_s1 = smov [#allocation16]   ;;  %s8932_s0 = smov [#allocation19]  }
  0xc4   :  { %s134_s27 = sshll.u32 %s8931_s1, 4  ;;  %s156_s3 = sshll.u32 %s8932_s0, 4  ;;  %s135_s27 = int_to_ptr.vmem [resolvable:$true] %s134_s27  ;;  %s157_s3 = int_to_ptr.vmem [resolvable:$true] %s156_s3 }
  0xc5   :  { %s8745_s11 = scalar_lea.hbm %s10596_s10, 16 }
  0xc6   :  { %p8746_p10 = scmp.ne.s32.totalorder %s10596_s10, %s8745_s11  ;;  %p8749_p11 = scmp.lt.u32.totalorder %s8745_s11, %s10596_s10 }
  0xc8   :  { %p8751_p12 = pnand %p8749_p11, %p8746_p10 }
  0xca   :  { %8754 = shalt.err (!%p8751_p12)
}
  0xcb   :  { %s8755_s8 = scalar_lea.vmem %s135_s27, 16  ;;  %s8759_s30 = scalar_lea.vmem %s135_s27, 32 }
  0xcc   :  { %p8756_p13 = scmp.ne.s32.totalorder %s135_s27, %s8755_s8  ;;  %p8760_p0 = scmp.lt.s32.totalorder %s135_s27, %s135_s27 }
  0xcd   :  { %p8761_p1 = scmp.lt.s32.totalorder %s8759_s30, %s8755_s8 }
  0xcf   :  { %p8762_p2 = por %p8761_p1, %p8760_p0 }
  0xd1   :  { %p8763_p3 = pnand %p8762_p2, %p8756_p13 }
  0xd3   :  { %8766 = shalt.err (!%p8763_p3)
}
  0xd4   :  { %137 = dma.hbm_to_vmem [thread:$0]  %s10596_s10, 16, %s135_s27, [#allocation15]  }
  0xd5   :  { %s8767_s13 = scalar_lea.hbm %s10598_s12, 16 }
  0xd6   :  { %p8768_p4 = scmp.ne.s32.totalorder %s10598_s12, %s8767_s13  ;;  %p8771_p5 = scmp.lt.u32.totalorder %s8767_s13, %s10598_s12 }
  0xd8   :  { %p8773_p6 = pnand %p8771_p5, %p8768_p4 }
  0xda   :  { %8776 = shalt.err (!%p8773_p6)
}
  0xdb   :  { %s8777_s0 = scalar_lea.vmem %s157_s3, 16  ;;  %s8781_s20 = scalar_lea.vmem %s157_s3, 32 }
  0xdc   :  { %p8778_p7 = scmp.ne.s32.totalorder %s157_s3, %s8777_s0  ;;  %p8782_p8 = scmp.lt.s32.totalorder %s157_s3, %s157_s3 }
  0xdd   :  { %p8783_p9 = scmp.lt.s32.totalorder %s8781_s20, %s8777_s0 }
  0xdf   :  { %p8784_p10 = por %p8783_p9, %p8782_p8 }
  0xe1   :  { %p8785_p11 = pnand %p8784_p10, %p8778_p7 }
  0xe3   :  { %8788 = shalt.err (!%p8785_p11)
}
  0xe4   :  { %159 = dma.hbm_to_vmem [thread:$0]  %s10598_s12, 16, %s157_s3, [#allocation18]  }
  0xe5   :  { %s8933_s22 = smov [#allocation22]   ;;  %s8934_s21 = smov [#allocation23]  }
  0xe6   :  { %s175_s11 = sshll.u32 %s8933_s22, 4  ;;  %s187_s9 = sshll.u32 %s8934_s21, 4  ;;  %s176_s11 = int_to_ptr.vmem [resolvable:$true] %s175_s11  ;;  %s9229_s9 = int_to_ptr.vmem [resolvable:$true] %s187_s9 }
  0xe7   :  { %s8789_s8 = scalar_lea.hbm %s10600_s14, 512 }
  0xe8   :  { %p8790_p12 = scmp.ne.s32.totalorder %s10600_s14, %s8789_s8  ;;  %p8793_p13 = scmp.lt.u32.totalorder %s8789_s8, %s10600_s14 }
  0xea   :  { %p8795_p0 = pnand %p8793_p13, %p8790_p12 }
  0xec   :  { %8798 = shalt.err (!%p8795_p0)
}
  0xed   :  { %s8799_s12 = scalar_lea.vmem %s176_s11, 512  ;;  %p8804_p2 = scmp.lt.s32.totalorder %s176_s11, %s176_s11 }
  0xee   :  { %p8800_p1 = scmp.ne.s32.totalorder %s176_s11, %s8799_s12  ;;  %p8805_p3 = scmp.lt.s32.totalorder %s8799_s12, %s8799_s12 }
  0xf0   :  { %p8806_p4 = por %p8805_p3, %p8804_p2 }
  0xf2   :  { %p8807_p5 = pnand %p8806_p4, %p8800_p1 }
  0xf4   :  { %8810 = shalt.err (!%p8807_p5)
}
  0xf5   :  { %181 = dma.hbm_to_vmem [thread:$0]  %s10600_s14, 512, %s176_s11, [#allocation21], %s8921_s25, %s8921_s25, %s8922_s26  }
  0xf6   :  { %s8811_s5 = scalar_lea.hbm %s10601_s15, 1024 }
  0xf7   :  { %p8812_p6 = scmp.ne.s32.totalorder %s10601_s15, %s8811_s5  ;;  %p8815_p7 = scmp.lt.u32.totalorder %s8811_s5, %s10601_s15 }
  0xf9   :  { %p8817_p8 = pnand %p8815_p7, %p8812_p6 }
  0xfb   :  { %8820 = shalt.err (!%p8817_p8)
}
  0xfc   :  { %s8821_s10 = scalar_lea.vmem %s9229_s9, 1024  ;;  %p8826_p10 = scmp.lt.s32.totalorder %s9229_s9, %s9229_s9 }
  0xfd   :  { %p8822_p9 = scmp.ne.s32.totalorder %s9229_s9, %s8821_s10  ;;  %p8827_p11 = scmp.lt.s32.totalorder %s8821_s10, %s8821_s10 }
  0xff   :  { %p8828_p12 = por %p8827_p11, %p8826_p10 }
 0x101   :  { %p8829_p13 = pnand %p8828_p12, %p8822_p9 }
 0x103   :  { %8832 = shalt.err (!%p8829_p13)
}
 0x104   :  { %193 = dma.hbm_to_vmem [thread:$0]  %s10601_s15, 1024, %s9229_s9, [#allocation24], %s8921_s25, %s8921_s25, %s8922_s26  }
 0x105   :  { %8899 = dma.done.wait [#allocation3], 256  }
 0x106   :  { %8900 = vsyncadd [#allocation3], 4294967040 }
 0x107   :  { %8901 = dma.done.wait [#allocation6], 512  }
 0x108   :  { %8902 = vsyncadd [#allocation6], 4294966784 }
 0x109   :  { %8903 = dma.done.wait [#allocation9], 272  }
 0x10a   :  { %8904 = vsyncadd [#allocation9], 4294967024 }
 0x10b   :  { %8905 = dma.done.wait [#allocation12], 144  }
 0x10c   :  { %8906 = vsyncadd [#allocation12], 4294967152 }
 0x10d   :  { %8907 = dma.done.wait [#allocation15], 528  }
 0x10e   :  { %8908 = vsyncadd [#allocation15], 4294966768 }
 0x10f   :  { %8909 = dma.done.wait [#allocation18], 528  }
 0x110   :  { %8910 = vsyncadd [#allocation18], 4294966768 }
 0x111   :  { %8911 = dma.done.wait [#allocation21], 640  }
 0x112   :  { %8912 = vsyncadd [#allocation21], 4294966656 }
 0x113   :  { %8913 = dma.done.wait [#allocation24], 1024  }
 0x114   :  { %8914 = vsyncadd [#allocation24], 4294966272  ;;  %vm249_vm0 = vcmask 261120   ;;  %v238_v0 = vld [vmem:[%s10590_s4] sm:$0xff]  ;;  %v239_v1 = vld [vmem:[%s10590_s4 + $0x8] sm:$0xff]  ;;  %v8935_v32 = vmov 0.0  }
 0x115   :  { %v240_v2 = vld [vmem:[%s10590_s4 + $0x10] sm:$0xff]  ;;  %v8345_v3 = vpack.c.bf16 %v239_v1, %v238_v0  ;;  %v241_v4 = vld [vmem:[%s10590_s4 + $0x18] sm:$0xff]  ;;  %v236_v5 = vld [vmem:[#allocation2] sm:$0xff]  ;;  %vm8936_vm1 = vmmov 0   ;;  %vm630_vm2 = vcmask 64512   ;;  %vm862_vm3 = vcmask 72704  }
 0x116   :  { %v8349_v6 = vpack.c.bf16 %v241_v4, %v240_v2  ;;  %7949 = vmatprep.mubr.msk.f32.mxu0 %vm249_vm0, %v236_v5  ;;  %v427_v7 = vld [vmem:[#allocation14] sm:$0xff]  ;;  %v428_v8 = vld [vmem:[#allocation14 + $0x8] sm:$0xff]  ;;  %v333_v9 = vld [vmem:[%s10592_s6] sm:$0xff]  ;;  %vm929_vm4 = vcmask 1041409   ;;  %vm931_vm5 = vcmask 1042434   ;;  %vm933_vm6 = vcmask 1043459  }
 0x117   :  { %8346 = vmatprep.subr.bf16.mxu0 %v8345_v3  ;;  %v334_v10 = vld [vmem:[%s10592_s6 + $0x8] sm:$0xff]  ;;  %v335_v12 = vld [vmem:[%s10592_s6 + $0x10] sm:$0xff]  ;;  %v8361_v13 = vpack.c.bf16 %v428_v8, %v427_v7  ;;  %v429_v14 = vld [vmem:[#allocation14 + $0x10] sm:$0xff]  ;;  %vm935_vm7 = vcmask 1044484   ;;  %vm937_vm8 = vcmask 1045509   ;;  %vm939_vm9 = vcmask 1046534  }
 0x118   :  { %8348 = vmatpush3.bf16.msra.mxu0 %v8345_v3  ;;  %v8353_v11 = vpack.c.bf16 %v334_v10, %v333_v9  ;;  %v336_v15 = vld [vmem:[%s10592_s6 + $0x18] sm:$0xff]  ;;  %v331_v16 = vld [vmem:[#allocation5] sm:$0xff]  ;;  %v430_v17 = vld [vmem:[#allocation14 + $0x18] sm:$0xff]  ;;  %s8937_s6 = smov 96   ;;  %vm941_vm10 = vcmask 1047559   ;;  %s8938_s13 = smov 88  }
 0x119   :  { %8350 = vmatprep.subr.bf16.mxu0 %v8349_v6  ;;  %v8357_v18 = vpack.c.bf16 %v336_v15, %v335_v12  ;;  %7960 = vmatprep.mubr.msk.f32.mxu1 %vm249_vm0, %v331_v16  ;;  %v521_v19 = vld [vmem:[#allocation17] sm:$0xff]  ;;  %v522_v20 = vld [vmem:[#allocation17 + $0x8] sm:$0xff]  ;;  %v8365_v22 = vpack.c.bf16 %v430_v17, %v429_v14  ;;  %v425_v23 = vld [vmem:[#allocation7] sm:$0xff]  ;;  %s8939_s28 = smov 120   ;;  %s8940_s5 = smov 64  }
 0x11a   :  { %8354 = vmatprep.subr.bf16.mxu1 %v8353_v11  ;;  %v237_v21 = vld [vmem:[#allocation2 + $0x8] sm:$0xff]  ;;  %v8369_v24 = vpack.c.bf16 %v522_v20, %v521_v19  ;;  %v523_v25 = vld [vmem:[#allocation17 + $0x10] sm:$0xff]  ;;  %v519_v29 = vld [vmem:[#allocation8] sm:$0xff]  ;;  %s8941_s29 = smov 56   ;;  %s8942_s1 = smov 80  }
 0x11b   :  { %8356 = vmatpush3.bf16.msra.mxu1 %v8353_v11  ;;  %v524_v26 = vld [vmem:[#allocation17 + $0x18] sm:$0xff]  ;;  %v332_v27 = vld [vmem:[#allocation5 + $0x8] sm:$0xff]  ;;  %v7657_v33 = vld [vmem:[#allocation10] ss:$0 sm:$0xff]  ;;  %s8943_s0 = smov 112   ;;  %s8944_s20 = smov 48  }
 0x11c   :  { %8352 = vmatpush3.bf16.msra.mxu0 %v8349_v6  ;;  %8358 = vmatprep.subr.bf16.mxu1 %v8357_v18  ;;  %v8373_v28 = vpack.c.bf16 %v524_v26, %v523_v25  ;;  %v426_v30 = vld [vmem:[#allocation7 + $0x8] sm:$0xff]  ;;  %v520_v31 = vld [vmem:[#allocation8 + $0x8] sm:$0xff]  ;;  %v7660_v37 = vld [vmem:[#allocation11] ss:$0 sm:$0xff]  ;;  %s8945_s10 = smov 72   ;;  %s8946_s14 = smov 104  }
 0x11d   :  { %8362 = vmatprep.subr.bf16.mxu0 %v8361_v13  ;;  %v7663_v42 = vld [vmem:[#allocation16] ss:$0 sm:$0xff]  ;;  %v7666_v47 = vld [vmem:[#allocation19] ss:$0 sm:$0xff]  ;;  %v9330_v54 = vld [vmem:[#allocation20] sm:$0xff]  ;;  %s8947_s27 = smov 40  }
 0x11e   :  { %v9348_v57 = vld [vmem:[#allocation13] sm:$0xff]  ;;  %v9376_v5 = vld [vmem:[#allocation23] sm:$0xff]  ;;  %v9380_v9 = vld [vmem:[#allocation23 + $0x18] sm:$0xff]  ;;  %s8948_s22 = smov [#allocation26]  }
 0x11f   :  { %7950 = vmatmul.mubr.msk.f32.vlgmr.msra.gmra.mrb[0].mxu0 %vm249_vm0, %v237_v21  ;;  %8360 = vmatpush3.bf16.msra.mxu1 %v8357_v18  ;;  %v9374_v4 = vld [vmem:[#allocation23 + $0x8] sm:$0xff]  ;;  %v9382_v10 = vld [vmem:[#allocation23 + $0x10] sm:$0xff]  ;;  %v9394_v20 = vld [vmem:[#allocation23 + $0x20] sm:$0xff]  ;;  %s7619_s11 = sshll.u32 %s8948_s22, 4  ;;  %s7620_s11 = int_to_ptr.vmem [resolvable:$true] %s7619_s11 }
 0x120   :  { %8364 = vmatpush3.bf16.msra.mxu0 %v8361_v13  ;;  %7971 = vmatprep.mubr.msk.f32.mxu0 %vm249_vm0, %v425_v23  ;;  %v9400_v26 = vld [vmem:[#allocation23 + $0x30] sm:$0xff]  ;;  %s8833_s15 = scalar_lea.vmem %s7620_s11, 1024  ;;  %p8838_p1 = scmp.lt.s32.totalorder %s7620_s11, %s7620_s11 }
 0x121   :  { %8366 = vmatprep.subr.bf16.mxu0 %v8365_v22  ;;  %8370 = vmatprep.subr.bf16.mxu1 %v8369_v24  ;;  %p8834_p0 = scmp.ne.s32.totalorder %s7620_s11, %s8833_s15  ;;  %p8839_p2 = scmp.lt.s32.totalorder %s8833_s15, %s8833_s15 }
 0x122   :  { %7961 = vmatmul.mubr.msk.f32.vlgmr.msra.gmra.mrb[0].mxu1 %vm249_vm0, %v332_v27 }
 0x123   :  { %8372 = vmatpush3.bf16.msra.mxu1 %v8369_v24  ;;  %7982 = vmatprep.mubr.msk.f32.mxu1 %vm249_vm0, %v519_v29  ;;  %p8840_p3 = por %p8839_p2, %p8838_p1 }
 0x124   :  { %8368 = vmatpush3.bf16.msra.mxu0 %v8365_v22  ;;  %8374 = vmatprep.subr.bf16.mxu1 %v8373_v28 }
 0x125   :  { %7985 = vmatprep.subr.mxu0 %v8935_v32  ;;  %p8841_p4 = pnand %p8840_p3, %p8834_p0 }
 0x127   :  { %7972 = vmatmul.mubr.msk.f32.vlgmr.msra.gmra.mrb[2].mxu0 %vm249_vm0, %v426_v30  ;;  %8376 = vmatpush3.bf16.msra.mxu1 %v8373_v28 }
 0x128   :  { %8000 = vmatprep.subr.mxu1 %v8935_v32  ;;  %7987 = vmatprep.mubr.msk.f32.mxu0 %vm8936_vm1, %v8935_v32 }
 0x12a   :  { %7983 = vmatmul.mubr.msk.f32.vlgmr.msra.gmra.mrb[2].mxu1 %vm249_vm0, %v520_v31  ;;  %v9406_v31 = vld [vmem:[#allocation23 + $0x28] sm:$0xff] }
 0x12b   :  { %8002 = vmatprep.mubr.msk.f32.mxu1 %vm8936_vm1, %v8935_v32 }
 0x1f2   :  { %v7951_v34 = vpop.f32.mrb[0].mxu0 }
 0x1f3   :  { %v9304_v35 = vadd.f32 %v7951_v34, %v7657_v33  ;;  %v322_v36 = vpop.f32.mrb[1].mxu0 }
 0x1f4   :  { %v9322_v52 = vadd.f32 %v7657_v33, %v322_v36 }
 0x1f5   :  { %v7962_v38 = vpop.f32.mrb[0].mxu1 }
 0x1f6   :  { %v9306_v39 = vadd.f32 %v7962_v38, %v7660_v37  ;;  %v416_v40 = vpop.f32.mrb[1].mxu1  ;;  %v9412_v38 = vld [vmem:[#allocation23 + $0x38] sm:$0xff] }
 0x1f7   :  { %v9308_v41 = vadd.f32 %v7660_v37, %v416_v40 }
 0x1f9   :  { %707 = vrot.lane.b32.xlu1 %v9308_v41, %s8937_s6 }
 0x1fa   :  { %v7973_v43 = vpop.f32.mrb[2].mxu0 }
 0x1fb   :  { %v9312_v44 = vadd.f32 %v7973_v43, %v7663_v42  ;;  %v510_v45 = vpop.f32.mrb[3].mxu0 }
 0x1fc   :  { %v9314_v46 = vadd.f32 %v7663_v42, %v510_v45 }
 0x1fd   :  { %v7984_v48 = vpop.f32.mrb[2].mxu1 }
 0x1fe   :  { %958 = vrot.lane.b32.xlu0 %v9314_v46, %s8937_s6  ;;  %v9318_v49 = vadd.f32 %v7984_v48, %v7666_v47  ;;  %v604_v50 = vpop.f32.mrb[3].mxu1 }
 0x1ff   :  { %v9320_v51 = vadd.f32 %v7666_v47, %v604_v50 }
 0x201   :  { %1036 = vrot.lane.b32.xlu1 %v9320_v51, %s8937_s6 }
 0x202   :  { %628 = vrot.lane.b32.xlu0 %v9322_v52, %s8937_s6 }
 0x26b   :  { %v708_v56 = vpop.permute.xlu1 %707 }
 0x270   :  { %v959_v53 = vpop.permute.xlu0 %958 }
 0x271   :  { %8001 = vmatpush3.xpose.msk.msra.mxu1 %vm630_vm2, %v959_v53 }
 0x272   :  { %8010 = vmatprep.subr.mxu1 %v8935_v32 }
 0x273   :  { %v1037_v58 = vpop.permute.xlu1 %1036 }
 0x274   :  { %8003 = vmatmul.mubr.msk.f32.vlgmr.msra.gmra.mrb[4].mxu1 %vm630_vm2, %v9314_v46  ;;  %v629_v55 = vpop.permute.xlu0 %628 }
 0x275   :  { %7986 = vmatpush3.xpose.msk.msra.mxu0 %vm630_vm2, %v629_v55  ;;  %8011 = vmatpush3.msra.mxu1 %v9330_v54 }
 0x276   :  { %8012 = vmatprep.mubr.msk.f32.mxu1 %vm8936_vm1, %v8935_v32  ;;  %7990 = vmatprep.subr.mxu0 %v8935_v32 }
 0x277   :  { %8025 = vmatprep.subr.mxu1 %v8935_v32 }
 0x278   :  { %7988 = vmatmul.mubr.msk.f32.vlgmr.msra.gmra.mrb[4].mxu0 %vm630_vm2, %v9322_v52  ;;  %8013 = vmatmul.mubr.msk.f32.vlgmr.msra.gmra.mrb[6].mxu1 %vm630_vm2, %v9314_v46 }
 0x279   :  { %7991 = vmatpush3.xpose.msk.msra.mxu0 %vm630_vm2, %v708_v56  ;;  %7992 = vmatprep.mubr.msk.f32.mxu0 %vm8936_vm1, %v8935_v32 }
 0x27a   :  { %7995 = vmatprep.subr.mxu0 %v8935_v32  ;;  %8027 = vmatprep.mubr.msk.f32.mxu1 %vm8936_vm1, %v8935_v32 }
 0x27c   :  { %7993 = vmatmul.mubr.msk.f32.vlgmr.msra.gmra.mrb[6].mxu0 %vm630_vm2, %v9308_v41 }
 0x27d   :  { %7996 = vmatpush3.msra.mxu0 %v9348_v57  ;;  %7997 = vmatprep.mubr.msk.f32.mxu0 %vm8936_vm1, %v8935_v32 }
 0x27e   :  { %8005 = vmatprep.subr.mxu0 %v8935_v32 }
 0x280   :  { %7998 = vmatmul.mubr.msk.f32.vlgmr.msra.gmra.mrb[8].mxu0 %vm630_vm2, %v9322_v52 }
 0x281   :  { %8007 = vmatprep.mubr.msk.f32.mxu0 %vm8936_vm1, %v8935_v32 }
 0x284   :  { %8006 = vmatpush3.xpose.msk.msra.mxu0 %vm630_vm2, %v1037_v58 }
 0x285   :  { %8015 = vmatprep.subr.mxu0 %v8935_v32 }
 0x287   :  { %8008 = vmatmul.mubr.msk.f32.vlgmr.msra.gmra.mrb[10].mxu0 %vm630_vm2, %v9320_v51 }
 0x288   :  { %8017 = vmatprep.mubr.msk.f32.mxu0 %vm8936_vm1, %v8935_v32 }
 0x347   :  { %v9368_v59 = vpop.f32.mrb[4].mxu1 }
 0x348   :  { %v8004_v60 = vpop.f32.mrb[5].mxu1 }
 0x34b   :  { %v9370_v61 = vpop.f32.mrb[4].mxu0  ;;  %v1179_v62 = vpop.f32.mrb[6].mxu1 }
 0x34c   :  { %v7989_v63 = vpop.f32.mrb[5].mxu0  ;;  %v8014_v0 = vpop.f32.mrb[7].mxu1  ;;  %v1183_v17 = vmul.f32 %v1179_v62, %v9376_v5  ;;  %v1184_v18 = vmul.f32 %v1179_v62, %v9374_v4  ;;  %v1185_v24 = vmul.f32 %v1179_v62, %v9382_v10  ;;  %v1187_v25 = vmul.f32 %v1179_v62, %v9394_v20 }
 0x34d   :  { %v1186_v29 = vmul.f32 %v1179_v62, %v9380_v9  ;;  %v1189_v30 = vmul.f32 %v1179_v62, %v9400_v26  ;;  %v1188_v36 = vmul.f32 %v1179_v62, %v9406_v31  ;;  %v1190_v43 = vmul.f32 %v1179_v62, %v9412_v38 }
 0x34e   :  { %v1191_v22 = vsel %vm862_vm3, %v1183_v17, 0.0  ;;  %v1194_v23 = vsel %vm862_vm3, %v1184_v18, 0.0  ;;  %v1197_v27 = vsel %vm862_vm3, %v1185_v24, 0.0  ;;  %v1203_v28 = vsel %vm862_vm3, %v1187_v25, 0.0 }
 0x34f   :  { %v9372_v1 = vpop.f32.mrb[6].mxu0  ;;  %v1200_v33 = vsel %vm862_vm3, %v1186_v29, 0.0  ;;  %v1209_v34 = vsel %vm862_vm3, %v1189_v30, 0.0  ;;  %v1206_v40 = vsel %vm862_vm3, %v1188_v36, 0.0  ;;  %v1212_v47 = vsel %vm862_vm3, %v1190_v43, 0.0 }
 0x350   :  { %v7994_v2 = vpop.f32.mrb[7].mxu0  ;;  %v895_v62 = vlaneseq }
 0x352   :  { %v896_v2 = vand.u32 127, %v895_v62 }
 0x353   :  { %v850_v3 = vpop.f32.mrb[8].mxu0 }
 0x354   :  { %v7999_v6 = vpop.f32.mrb[9].mxu0  ;;  %v855_v7 = vmul.f32 %v850_v3, %v9374_v4  ;;  %v854_v8 = vmul.f32 %v850_v3, %v9376_v5  ;;  %v857_v13 = vmul.f32 %v850_v3, %v9380_v9  ;;  %v856_v14 = vmul.f32 %v850_v3, %v9382_v10 }
 0x355   :  { %v858_v37 = vmul.f32 %v850_v3, %v9394_v20  ;;  %v860_v45 = vmul.f32 %v850_v3, %v9400_v26  ;;  %v859_v50 = vmul.f32 %v850_v3, %v9406_v31  ;;  %v861_v55 = vmul.f32 %v850_v3, %v9412_v38 }
 0x356   :  { %v866_v11 = vsel %vm862_vm3, %v855_v7, 0.0  ;;  %v863_v12 = vsel %vm862_vm3, %v854_v8, 0.0  ;;  %v872_v15 = vsel %vm862_vm3, %v857_v13, 0.0  ;;  %v869_v16 = vsel %vm862_vm3, %v856_v14, 0.0 }
 0x357   :  { %867 = vadd.xlane.f32.xlu0 %v866_v11  ;;  %864 = vadd.xlane.f32.xlu1 %v863_v12  ;;  %v875_v42 = vsel %vm862_vm3, %v858_v37, 0.0  ;;  %v881_v48 = vsel %vm862_vm3, %v860_v45, 0.0  ;;  %v878_v53 = vsel %vm862_vm3, %v859_v50, 0.0  ;;  %v884_v56 = vsel %vm862_vm3, %v861_v55, 0.0 }
 0x358   :  { %v898_v6 = vshrl.u32 %v895_v62, 7 }
 0x35a   :  { %v9392_v19 = vpop.f32.mrb[10].mxu0  ;;  %v9424_v11 = vsub.s32 %v896_v2, %v898_v6 }
 0x35b   :  { %873 = vadd.xlane.f32.xlu0 %v872_v15  ;;  %870 = vadd.xlane.f32.xlu1 %v869_v16  ;;  %v8009_v21 = vpop.f32.mrb[11].mxu0 }
 0x35f   :  { %1192 = vadd.xlane.f32.xlu0 %v1191_v22  ;;  %1195 = vadd.xlane.f32.xlu1 %v1194_v23 }
 0x363   :  { %1198 = vadd.xlane.f32.xlu0 %v1197_v27  ;;  %1204 = vadd.xlane.f32.xlu1 %v1203_v28 }
 0x367   :  { %1201 = vadd.xlane.f32.xlu0 %v1200_v33  ;;  %1210 = vadd.xlane.f32.xlu1 %v1209_v34 }
 0x36b   :  { %1207 = vadd.xlane.f32.xlu0 %v1206_v40  ;;  %876 = vadd.xlane.f32.xlu1 %v875_v42 }
 0x36f   :  { %1213 = vadd.xlane.f32.xlu0 %v1212_v47  ;;  %882 = vadd.xlane.f32.xlu1 %v881_v48  ;;  %v1034_v47 = vmul.f32 0.35355338, %v9368_v59 }
 0x373   :  { %879 = vadd.xlane.f32.xlu0 %v878_v53 }
 0x377   :  { %885 = vadd.xlane.f32.xlu0 %v884_v56  ;;  %v1112_v56 = vmul.f32 0.35355338, %v9392_v19  ;;  %v705_v19 = vmul.f32 0.35355338, %v9370_v61 }
 0x3e4   :  { %v868_v58 = vpop.xlane.xlu0 %867  ;;  %v865_v60 = vpop.xlane.xlu1 %864 }
 0x3e5   :  { %v904_v27 = vrot.slane %v868_v58, %v9424_v11  ;;  %v900_v28 = vrot.slane %v865_v60, %v9424_v11 }
 0x3e7   :  { %v930_v42 = vsel %vm929_vm4, %v904_v27, %v900_v28 }
 0x3e8   :  { %v874_v63 = vpop.xlane.xlu0 %873  ;;  %v871_v0 = vpop.xlane.xlu1 %870 }
 0x3e9   :  { %v908_v30 = vrot.slane %v871_v0, %v9424_v11  ;;  %v912_v43 = vrot.slane %v874_v63, %v9424_v11 }
 0x3eb   :  { %v932_v48 = vsel %vm931_vm5, %v908_v30, %v930_v42 }
 0x3ec   :  { %v1193_v7 = vpop.xlane.xlu0 %1192  ;;  %v1196_v8 = vpop.xlane.xlu1 %1195  ;;  %v934_v62 = vsel %vm933_vm6, %v912_v43, %v932_v48 }
 0x3ed   :  { %v1226_v14 = vrot.slane %v1193_v7, %v9424_v11  ;;  %v1230_v3 = vrot.slane %v1196_v8, %v9424_v11 }
 0x3ef   :  { %v1255_v17 = vsel %vm929_vm4, %v1230_v3, %v1226_v14 }
 0x3f0   :  { %v1199_v12 = vpop.xlane.xlu0 %1198  ;;  %v1205_v13 = vpop.xlane.xlu1 %1204 }
 0x3f1   :  { %v1234_v15 = vrot.slane %v1199_v12, %v9424_v11  ;;  %v1242_v24 = vrot.slane %v1205_v13, %v9424_v11 }
 0x3f3   :  { %v1256_v22 = vsel %vm931_vm5, %v1234_v15, %v1255_v17  ;;  %v783_v15 = vmul.f32 0.35355338, %v9372_v1 }
 0x3f4   :  { %v1202_v16 = vpop.xlane.xlu0 %1201  ;;  %v1211_v21 = vpop.xlane.xlu1 %1210 }
 0x3f5   :  { %v1238_v18 = vrot.slane %v1202_v16, %v9424_v11  ;;  %v1250_v37 = vrot.slane %v1211_v21, %v9424_v11 }
 0x3f7   :  { %v1257_v23 = vsel %vm933_vm6, %v1238_v18, %v1256_v22 }
 0x3f8   :  { %v1208_v25 = vpop.xlane.xlu0 %1207  ;;  %v1258_v33 = vsel %vm935_vm7, %v1242_v24, %v1257_v23  ;;  %v877_v36 = vpop.xlane.xlu1 %876 }
 0x3f9   :  { %v1246_v29 = vrot.slane %v1208_v25, %v9424_v11  ;;  %v916_v50 = vrot.slane %v877_v36, %v9424_v11 }
 0x3fb   :  { %v1259_v34 = vsel %vm937_vm8, %v1246_v29, %v1258_v33  ;;  %v936_v2 = vsel %vm935_vm7, %v916_v50, %v934_v62 }
 0x3fc   :  { %v1214_v40 = vpop.xlane.xlu0 %1213  ;;  %v1260_v53 = vsel %vm939_vm9, %v1250_v37, %v1259_v34  ;;  %v883_v0 = vpop.xlane.xlu1 %882 }
 0x3fd   :  { %v1254_v45 = vrot.slane %v1214_v40, %v9424_v11  ;;  %v924_v7 = vrot.slane %v883_v0, %v9424_v11 }
 0x3ff   :  { %v1261_v55 = vsel %vm941_vm10, %v1254_v45, %v1260_v53 }
 0x400   :  { %v880_v58 = vpop.xlane.xlu0 %879  ;;  %v1263_v60 = vadd.f32 %v1261_v55, %v1034_v47 }
 0x401   :  { %v920_v63 = vrot.slane %v880_v58, %v9424_v11 }
 0x402   :  { %v1264_v59 = vadd.f32 %v1263_v60, %v1112_v56 }
 0x403   :  { %v938_v6 = vsel %vm937_vm8, %v920_v63, %v936_v2 }
 0x404   :  { %v886_v8 = vpop.xlane.xlu0 %885  ;;  %v1265_v12 = vsel %vm630_vm2, %v1264_v59, -inf  ;;  %v940_v14 = vsel %vm939_vm9, %v924_v7, %v938_v6 }
 0x405   :  { %v928_v13 = vrot.slane %v886_v8, %v9424_v11  ;;  %1266 = vmax.xlane.f32.xlu1 %v1265_v12 }
 0x407   :  { %v942_v3 = vsel %vm941_vm10, %v928_v13, %v940_v14 }
 0x408   :  { %v944_v16 = vadd.f32 %v942_v3, %v705_v19 }
 0x40a   :  { %v945_v17 = vadd.f32 %v944_v16, %v783_v15 }
 0x40c   :  { %v946_v18 = vsel %vm630_vm2, %v945_v17, -inf }
 0x40d   :  { %947 = vmax.xlane.f32.xlu0 %v946_v18 }
 0x416   :  { %1432 = vrot.lane.b32.xlu1 %v9322_v52, %s8938_s13 }
 0x41a   :  { %1511 = vrot.lane.b32.xlu1 %v9308_v41, %s8938_s13 }
 0x41e   :  { %1509 = vrot.lane.b32.xlu1 %v9308_v41, %s8939_s28 }
 0x422   :  { %1276 = vrot.lane.b32.xlu1 %v9314_v46, %s8940_s5 }
 0x423   :  { %1430 = vrot.lane.b32.xlu0 %v9322_v52, %s8939_s28 }
 0x427   :  { %1753 = vrot.lane.b32.xlu0 %v9314_v46, %s8938_s13 }
 0x492   :  { %v1267_v61 = vpop.xlane.xlu1 %1266 }
 0x493   :  { %v1268_v1 = vsub.f32 %v1264_v59, %v1267_v61 }
 0x495   :  { %v1269_v21 = vmul.f32 1.442695, %v1268_v1 }
 0x496   :  { %v1433_v22 = vpop.permute.xlu1 %1432 }
 0x497   :  { %8437 = vpow2.f32 %v1269_v21  ;;  %8026 = vmatpush3.xpose.msk.msra.mxu1 %vm630_vm2, %v1433_v22 }
 0x498   :  { %8030 = vmatprep.subr.mxu1 %v8935_v32 }
 0x49a   :  { %v948_v23 = vpop.xlane.xlu0 %947  ;;  %v1512_v24 = vpop.permute.xlu1 %1511 }
 0x49b   :  { %v949_v25 = vsub.f32 %v945_v17, %v948_v23 }
 0x49d   :  { %v950_v27 = vmul.f32 1.442695, %v949_v25 }
 0x49e   :  { %v1431_v28 = vpop.permute.xlu0 %1430  ;;  %v1510_v29 = vpop.permute.xlu1 %1509 }
 0x49f   :  { %8439 = vpow2.f32 %v950_v27  ;;  %8028 = vmatmul.mubr.msk.f32.vlgmr.msra.gmra.mrb[8].mxu1 %vm630_vm2, %v1431_v28 }
 0x4a0   :  { %8031 = vmatpush3.xpose.msk.msra.mxu1 %vm630_vm2, %v1512_v24  ;;  %8032 = vmatprep.mubr.msk.f32.mxu1 %vm8936_vm1, %v8935_v32 }
 0x4a1   :  { %v8438_v30 = vpop.eup %8437  ;;  %8040 = vmatprep.subr.mxu1 %v8935_v32 }
 0x4a2   :  { %v1754_v33 = vpop.permute.xlu0 %1753  ;;  %v1277_v34 = vpop.permute.xlu1 %1276  ;;  %v1271_v36 = vsel %vm630_vm2, %v8438_v30, 0.0 }
 0x4a3   :  { %1272 = vadd.xlane.f32.xlu1 %v1271_v36  ;;  %8016 = vmatpush3.msra.mxu0 %v1277_v34 }
 0x4a4   :  { %8033 = vmatmul.mubr.msk.f32.vlgmr.msra.gmra.mrb[10].mxu1 %vm630_vm2, %v1510_v29  ;;  %8020 = vmatprep.subr.mxu0 %v8935_v32 }
 0x4a5   :  { %8041 = vmatpush3.xpose.msk.msra.mxu1 %vm630_vm2, %v1754_v33  ;;  %8042 = vmatprep.mubr.msk.f32.mxu1 %vm8936_vm1, %v8935_v32 }
 0x4a6   :  { %8050 = vmatprep.subr.mxu1 %v8935_v32 }
 0x4a9   :  { %v8440_v37 = vpop.eup %8439 }
 0x4aa   :  { %v952_v40 = vsel %vm630_vm2, %v8440_v37, 0.0 }
 0x4ab   :  { %953 = vadd.xlane.f32.xlu0 %v952_v40 }
 0x4b4   :  { %1354 = vrot.lane.b32.xlu1 %v9322_v52, %s8940_s5 }
 0x4b8   :  { %1830 = vrot.lane.b32.xlu1 %v9320_v51, %s8939_s28 }
 0x4c1   :  { %1751 = vrot.lane.b32.xlu0 %v9314_v46, %s8939_s28 }
 0x4c5   :  { %1832 = vrot.lane.b32.xlu0 %v9320_v51, %s8938_s13 }
 0x530   :  { %v1273_v42 = vpop.xlane.xlu1 %1272 }
 0x531   :  { %8441 = vrcp.f32 %v1273_v42 }
 0x534   :  { %v1355_v50 = vpop.permute.xlu1 %1354 }
 0x538   :  { %v954_v43 = vpop.xlane.xlu0 %953  ;;  %v1831_v58 = vpop.permute.xlu1 %1830 }
 0x539   :  { %8443 = vrcp.f32 %v954_v43 }
 0x53b   :  { %v8442_v45 = vpop.eup %8441 }
 0x53c   :  { %v1752_v47 = vpop.permute.xlu0 %1751  ;;  %v1275_v48 = vmul.f32 %v8442_v45, %v8438_v30 }
 0x53d   :  { %8043 = vmatmul.mubr.msk.f32.vlgmr.msra.gmra.mrb[12].mxu1 %vm630_vm2, %v1752_v47 }
 0x53e   :  { %8018 = vmatmul.mubr.msk.f32.vlgmr.msra.gmra.mrb[12].mxu0 %vm630_vm2, %v1275_v48  ;;  %1353 = vst.msk [vmem:[#allocation28] sm:$0xff] %vm630_vm2, %v1275_v48  ;;  %8051 = vmatpush3.msra.mxu1 %v9330_v54 }
 0x53f   :  { %8021 = vmatpush3.msra.mxu0 %v1355_v50  ;;  %8052 = vmatprep.mubr.msk.f32.mxu1 %vm8936_vm1, %v8935_v32 }
 0x540   :  { %8022 = vmatprep.mubr.msk.f32.mxu0 %vm8936_vm1, %v8935_v32  ;;  %8035 = vmatprep.subr.mxu0 %v8935_v32  ;;  %v1833_v56 = vpop.permute.xlu0 %1832 }
 0x541   :  { %8053 = vmatmul.mubr.msk.f32.vlgmr.msra.gmra.mrb[14].mxu1 %vm630_vm2, %v1752_v47  ;;  %8065 = vmatprep.subr.mxu1 %v8935_v32 }
 0x542   :  { %8067 = vmatprep.mubr.msk.f32.mxu1 %vm8936_vm1, %v8935_v32 }
 0x543   :  { %v8444_v53 = vpop.eup %8443 }
 0x544   :  { %v956_v55 = vmul.f32 %v8444_v53, %v8440_v37 }
 0x546   :  { %1352 = vst.msk [vmem:[#allocation26] sm:$0xff] %vm630_vm2, %v956_v55  ;;  %8023 = vmatmul.mubr.msk.f32.vlgmr.msra.gmra.mrb[12].mxu0 %vm630_vm2, %v956_v55 }
 0x547   :  { %8036 = vmatpush3.msra.mxu0 %v9348_v57  ;;  %8037 = vmatprep.mubr.msk.f32.mxu0 %vm8936_vm1, %v8935_v32 }
 0x548   :  { %8045 = vmatprep.subr.mxu0 %v8935_v32 }
 0x54a   :  { %8038 = vmatmul.mubr.msk.f32.vlgmr.msra.gmra.mrb[14].mxu0 %vm630_vm2, %v1431_v28 }
 0x54b   :  { %8047 = vmatprep.mubr.msk.f32.mxu0 %vm8936_vm1, %v8935_v32 }
 0x54e   :  { %8046 = vmatpush3.xpose.msk.msra.mxu0 %vm630_vm2, %v1833_v56 }
 0x54f   :  { %8055 = vmatprep.subr.mxu0 %v8935_v32 }
 0x551   :  { %8048 = vmatmul.mubr.msk.f32.vlgmr.msra.gmra.mrb[16].mxu0 %vm630_vm2, %v1831_v58 }
 0x552   :  { %8057 = vmatprep.mubr.msk.f32.mxu0 %vm8936_vm1, %v8935_v32 }
 0x572   :  { %v9524_v60 = vpop.f32.mrb[8].mxu1 }
 0x573   :  { %v8029_v62 = vpop.f32.mrb[9].mxu1 }
 0x577   :  { %v9526_v0 = vpop.f32.mrb[10].mxu1 }
 0x578   :  { %v8034_v63 = vpop.f32.mrb[11].mxu1 }
 0x610   :  { %v9528_v2 = vpop.f32.mrb[12].mxu1 }
 0x611   :  { %v8044_v59 = vpop.f32.mrb[13].mxu1 }
 0x614   :  { %v1975_v6 = vpop.f32.mrb[14].mxu1 }
 0x615   :  { %v8054_v7 = vpop.f32.mrb[15].mxu1  ;;  %v1980_v8 = vmul.f32 %v1975_v6, %v9374_v4  ;;  %v1979_v12 = vmul.f32 %v1975_v6, %v9376_v5  ;;  %v1983_v14 = vmul.f32 %v1975_v6, %v9394_v20  ;;  %v1981_v3 = vmul.f32 %v1975_v6, %v9382_v10 }
 0x616   :  { %v1985_v61 = vmul.f32 %v1975_v6, %v9400_v26  ;;  %v1982_v1 = vmul.f32 %v1975_v6, %v9380_v9  ;;  %v1984_v25 = vmul.f32 %v1975_v6, %v9406_v31  ;;  %v1986_v30 = vmul.f32 %v1975_v6, %v9412_v38 }
 0x617   :  { %v1990_v13 = vsel %vm862_vm3, %v1980_v8, 0.0  ;;  %v1987_v19 = vsel %vm862_vm3, %v1979_v12, 0.0  ;;  %v1999_v17 = vsel %vm862_vm3, %v1983_v14, 0.0  ;;  %v1993_v18 = vsel %vm862_vm3, %v1981_v3, 0.0 }
 0x618   :  { %1991 = vadd.xlane.f32.xlu1 %v1990_v13  ;;  %1988 = vadd.xlane.f32.xlu0 %v1987_v19  ;;  %v2005_v23 = vsel %vm862_vm3, %v1985_v61, 0.0  ;;  %v1996_v24 = vsel %vm862_vm3, %v1982_v1, 0.0  ;;  %v2002_v28 = vsel %vm862_vm3, %v1984_v25, 0.0  ;;  %v2008_v37 = vsel %vm862_vm3, %v1986_v30, 0.0 }
 0x619   :  { %v9536_v15 = vpop.f32.mrb[12].mxu0 }
 0x61a   :  { %v8024_v16 = vpop.f32.mrb[13].mxu0 }
 0x61c   :  { %2000 = vadd.xlane.f32.xlu1 %v1999_v17  ;;  %1994 = vadd.xlane.f32.xlu0 %v1993_v18 }
 0x61d   :  { %v1654_v21 = vpop.f32.mrb[14].mxu0 }
 0x61e   :  { %v8039_v22 = vpop.f32.mrb[15].mxu0  ;;  %v1658_v27 = vmul.f32 %v1654_v21, %v9376_v5  ;;  %v1660_v33 = vmul.f32 %v1654_v21, %v9382_v10  ;;  %v1659_v42 = vmul.f32 %v1654_v21, %v9374_v4  ;;  %v1662_v43 = vmul.f32 %v1654_v21, %v9394_v20 }
 0x61f   :  { %v1661_v48 = vmul.f32 %v1654_v21, %v9380_v9  ;;  %v1664_v50 = vmul.f32 %v1654_v21, %v9400_v26  ;;  %v1663_v56 = vmul.f32 %v1654_v21, %v9406_v31  ;;  %v1665_v62 = vmul.f32 %v1654_v21, %v9412_v38 }
 0x620   :  { %2006 = vadd.xlane.f32.xlu1 %v2005_v23  ;;  %1997 = vadd.xlane.f32.xlu0 %v1996_v24  ;;  %v1666_v29 = vsel %vm862_vm3, %v1658_v27, 0.0  ;;  %v1672_v40 = vsel %vm862_vm3, %v1660_v33, 0.0  ;;  %v1669_v45 = vsel %vm862_vm3, %v1659_v42, 0.0  ;;  %v1678_v47 = vsel %vm862_vm3, %v1662_v43, 0.0 }
 0x621   :  { %v1675_v53 = vsel %vm862_vm3, %v1661_v48, 0.0  ;;  %v1684_v55 = vsel %vm862_vm3, %v1664_v50, 0.0  ;;  %v1681_v58 = vsel %vm862_vm3, %v1663_v56, 0.0  ;;  %v1687_v63 = vsel %vm862_vm3, %v1665_v62, 0.0 }
 0x622   :  { %v1829_v33 = vmul.f32 0.35355338, %v9528_v2 }
 0x624   :  { %v1904_v34 = vpop.f32.mrb[16].mxu0  ;;  %2003 = vadd.xlane.f32.xlu0 %v2002_v28  ;;  %1667 = vadd.xlane.f32.xlu1 %v1666_v29 }
 0x625   :  { %v8049_v36 = vpop.f32.mrb[17].mxu0 }
 0x628   :  { %2009 = vadd.xlane.f32.xlu0 %v2008_v37  ;;  %1673 = vadd.xlane.f32.xlu1 %v1672_v40  ;;  %v1908_v40 = vmul.f32 0.35355338, %v1904_v34 }
 0x62c   :  { %1670 = vadd.xlane.f32.xlu0 %v1669_v45  ;;  %1679 = vadd.xlane.f32.xlu1 %v1678_v47 }
 0x630   :  { %1676 = vadd.xlane.f32.xlu0 %v1675_v53  ;;  %1685 = vadd.xlane.f32.xlu1 %v1684_v55 }
 0x634   :  { %1682 = vadd.xlane.f32.xlu0 %v1681_v58 }
 0x638   :  { %1688 = vadd.xlane.f32.xlu0 %v1687_v63 }
 0x6a5   :  { %v1989_v59 = vpop.xlane.xlu0 %1988  ;;  %v1992_v6 = vpop.xlane.xlu1 %1991 }
 0x6a6   :  { %v2022_v12 = vrot.slane %v1989_v59, %v9424_v11  ;;  %v2026_v13 = vrot.slane %v1992_v6, %v9424_v11 }
 0x6a8   :  { %v2051_v16 = vsel %vm929_vm4, %v2026_v13, %v2022_v12 }
 0x6a9   :  { %v1995_v7 = vpop.xlane.xlu0 %1994  ;;  %v2001_v8 = vpop.xlane.xlu1 %2000 }
 0x6aa   :  { %v2030_v19 = vrot.slane %v1995_v7, %v9424_v11  ;;  %v2038_v1 = vrot.slane %v2001_v8, %v9424_v11 }
 0x6ac   :  { %v2052_v18 = vsel %vm931_vm5, %v2030_v19, %v2051_v16 }
 0x6ad   :  { %v1998_v14 = vpop.xlane.xlu0 %1997  ;;  %v2007_v3 = vpop.xlane.xlu1 %2006 }
 0x6ae   :  { %v2034_v17 = vrot.slane %v1998_v14, %v9424_v11  ;;  %v2046_v27 = vrot.slane %v2007_v3, %v9424_v11  ;;  %v1508_v3 = vmul.f32 0.35355338, %v9524_v60 }
 0x6b0   :  { %v2053_v61 = vsel %vm933_vm6, %v2034_v17, %v2052_v18  ;;  %v1587_v18 = vmul.f32 0.35355338, %v9526_v0 }
 0x6b1   :  { %v2004_v21 = vpop.xlane.xlu0 %2003  ;;  %v1668_v22 = vpop.xlane.xlu1 %1667  ;;  %v2054_v24 = vsel %vm935_vm7, %v2038_v1, %v2053_v61 }
 0x6b2   :  { %v2042_v23 = vrot.slane %v2004_v21, %v9424_v11  ;;  %v1701_v45 = vrot.slane %v1668_v22, %v9424_v11 }
 0x6b4   :  { %v2055_v25 = vsel %vm937_vm8, %v2042_v23, %v2054_v24 }
 0x6b5   :  { %v2010_v28 = vpop.xlane.xlu0 %2009  ;;  %v1674_v30 = vpop.xlane.xlu1 %1673  ;;  %v2056_v36 = vsel %vm939_vm9, %v2046_v27, %v2055_v25 }
 0x6b6   :  { %v2050_v29 = vrot.slane %v2010_v28, %v9424_v11  ;;  %v1709_v55 = vrot.slane %v1674_v30, %v9424_v11 }
 0x6b8   :  { %v2057_v37 = vsel %vm941_vm10, %v2050_v29, %v2056_v36 }
 0x6b9   :  { %v1671_v42 = vpop.xlane.xlu0 %1670  ;;  %v2059_v43 = vadd.f32 %v2057_v37, %v1829_v33  ;;  %v1680_v53 = vpop.xlane.xlu1 %1679  ;;  %v624_v33 = vld [vmem:[#allocation22 + $0x8] sm:$0xff] }
 0x6ba   :  { %v1705_v47 = vrot.slane %v1671_v42, %v9424_v11  ;;  %v1717_v63 = vrot.slane %v1680_v53, %v9424_v11  ;;  %8066 = vmatpush3.msra.mxu1 %v624_v33 }
 0x6bb   :  { %v2060_v48 = vadd.f32 %v2059_v43, %v1908_v40  ;;  %8070 = vmatprep.subr.mxu1 %v8935_v32 }
 0x6bc   :  { %v1730_v50 = vsel %vm929_vm4, %v1705_v47, %v1701_v45 }
 0x6bd   :  { %v1677_v56 = vpop.xlane.xlu0 %1676  ;;  %v2061_v2 = vsel %vm630_vm2, %v2060_v48, -inf  ;;  %v1731_v34 = vsel %vm931_vm5, %v1709_v55, %v1730_v50  ;;  %v1686_v6 = vpop.xlane.xlu1 %1685 }
 0x6be   :  { %v1713_v58 = vrot.slane %v1677_v56, %v9424_v11  ;;  %2062 = vmax.xlane.f32.xlu1 %v2061_v2  ;;  %v1725_v13 = vrot.slane %v1686_v6, %v9424_v11 }
 0x6c0   :  { %v1732_v62 = vsel %vm933_vm6, %v1713_v58, %v1731_v34 }
 0x6c1   :  { %v1683_v59 = vpop.xlane.xlu0 %1682  ;;  %v1733_v8 = vsel %vm935_vm7, %v1717_v63, %v1732_v62 }
 0x6c2   :  { %v1721_v7 = vrot.slane %v1683_v59, %v9424_v11 }
 0x6c4   :  { %v1734_v12 = vsel %vm937_vm8, %v1721_v7, %v1733_v8 }
 0x6c5   :  { %v1689_v19 = vpop.xlane.xlu0 %1688  ;;  %v1735_v16 = vsel %vm939_vm9, %v1725_v13, %v1734_v12 }
 0x6c6   :  { %v1729_v14 = vrot.slane %v1689_v19, %v9424_v11 }
 0x6c8   :  { %v1736_v17 = vsel %vm941_vm10, %v1729_v14, %v1735_v16 }
 0x6c9   :  { %v1738_v61 = vadd.f32 %v1736_v17, %v1508_v3 }
 0x6cb   :  { %v1739_v1 = vadd.f32 %v1738_v61, %v1587_v18 }
 0x6cd   :  { %v1740_v21 = vsel %vm630_vm2, %v1739_v1, -inf }
 0x6ce   :  { %1741 = vmax.xlane.f32.xlu0 %v1740_v21 }
 0x74b   :  { %v2063_v22 = vpop.xlane.xlu1 %2062 }
 0x74c   :  { %v2064_v23 = vsub.f32 %v2060_v48, %v2063_v22 }
 0x74e   :  { %v2065_v24 = vmul.f32 1.442695, %v2064_v23 }
 0x750   :  { %8445 = vpow2.f32 %v2065_v24 }
 0x75a   :  { %v8446_v25 = vpop.eup %8445 }
 0x75b   :  { %v1742_v27 = vpop.xlane.xlu0 %1741  ;;  %v2067_v28 = vsel %vm630_vm2, %v8446_v25, 0.0 }
 0x75c   :  { %v1743_v60 = vsub.f32 %v1739_v1, %v1742_v27  ;;  %2068 = vadd.xlane.f32.xlu1 %v2067_v28 }
 0x75e   :  { %v1744_v29 = vmul.f32 1.442695, %v1743_v60 }
 0x760   :  { %8447 = vpow2.f32 %v1744_v29 }
 0x76a   :  { %v8448_v30 = vpop.eup %8447 }
 0x76b   :  { %v1746_v0 = vsel %vm630_vm2, %v8448_v30, 0.0 }
 0x76c   :  { %1747 = vadd.xlane.f32.xlu0 %v1746_v0 }
 0x76d   :  { %2072 = vrot.lane.b32.xlu1 %v9314_v46, %s8941_s29 }
 0x771   :  { %2455 = vrot.lane.b32.xlu1 %v9308_v41, %s8942_s1 }
 0x775   :  { %2453 = vrot.lane.b32.xlu1 %v9308_v41, %s8943_s0 }
 0x779   :  { %2695 = vrot.lane.b32.xlu1 %v9314_v46, %s8943_s0 }
 0x77d   :  { %2374 = vrot.lane.b32.xlu1 %v9322_v52, %s8943_s0 }
 0x781   :  { %2774 = vrot.lane.b32.xlu1 %v9320_v51, %s8943_s0 }
 0x782   :  { %2152 = vrot.lane.b32.xlu0 %v9322_v52, %s8941_s29 }
 0x786   :  { %2697 = vrot.lane.b32.xlu0 %v9314_v46, %s8942_s1 }
 0x78a   :  { %2376 = vrot.lane.b32.xlu0 %v9322_v52, %s8942_s1 }
 0x78e   :  { %2776 = vrot.lane.b32.xlu0 %v9320_v51, %s8942_s1 }
 0x7e9   :  { %v2069_v36 = vpop.xlane.xlu1 %2068 }
 0x7ea   :  { %8449 = vrcp.f32 %v2069_v36 }
 0x7ed   :  { %v2073_v37 = vpop.permute.xlu1 %2072 }
 0x7ee   :  { %8056 = vmatpush3.msra.mxu0 %v2073_v37 }
 0x7ef   :  { %8060 = vmatprep.subr.mxu0 %v8935_v32 }
 0x7f1   :  { %v2456_v43 = vpop.permute.xlu1 %2455 }
 0x7f4   :  { %v8450_v40 = vpop.eup %8449 }
 0x7f5   :  { %v2071_v42 = vmul.f32 %v8450_v40, %v8446_v25  ;;  %v2454_v48 = vpop.permute.xlu1 %2453 }
 0x7f7   :  { %8058 = vmatmul.mubr.msk.f32.vlgmr.msra.gmra.mrb[18].mxu0 %vm630_vm2, %v2071_v42  ;;  %2151 = vst.msk [vmem:[#allocation28 + $0x8] sm:$0xff] %vm630_vm2, %v2071_v42 }
 0x7f8   :  { %8062 = vmatprep.mubr.msk.f32.mxu0 %vm8936_vm1, %v8935_v32 }
 0x7f9   :  { %v1748_v45 = vpop.xlane.xlu0 %1747  ;;  %v2696_v55 = vpop.permute.xlu1 %2695 }
 0x7fa   :  { %8451 = vrcp.f32 %v1748_v45 }
 0x7fd   :  { %v2153_v47 = vpop.permute.xlu0 %2152  ;;  %v2375_v58 = vpop.permute.xlu1 %2374 }
 0x7fe   :  { %8061 = vmatpush3.msra.mxu0 %v2153_v47 }
 0x7ff   :  { %8075 = vmatprep.subr.mxu0 %v8935_v32 }
 0x801   :  { %v2698_v50 = vpop.permute.xlu0 %2697  ;;  %v2775_v62 = vpop.permute.xlu1 %2774 }
 0x804   :  { %v8452_v53 = vpop.eup %8451 }
 0x805   :  { %v2377_v56 = vpop.permute.xlu0 %2376  ;;  %v1750_v2 = vmul.f32 %v8452_v53, %v8448_v30 }
 0x807   :  { %2149 = vst.msk [vmem:[#allocation26 + $0x8] sm:$0xff] %vm630_vm2, %v1750_v2  ;;  %8063 = vmatmul.mubr.msk.f32.vlgmr.msra.gmra.mrb[18].mxu0 %vm630_vm2, %v1750_v2 }
 0x808   :  { %8076 = vmatpush3.xpose.msk.msra.mxu0 %vm630_vm2, %v2377_v56  ;;  %8077 = vmatprep.mubr.msk.f32.mxu0 %vm8936_vm1, %v8935_v32 }
 0x809   :  { %8085 = vmatprep.subr.mxu0 %v8935_v32  ;;  %v2777_v34 = vpop.permute.xlu0 %2776 }
 0x80b   :  { %8078 = vmatmul.mubr.msk.f32.vlgmr.msra.gmra.mrb[20].mxu0 %vm630_vm2, %v2375_v58 }
 0x80c   :  { %8086 = vmatpush3.msra.mxu0 %v9348_v57  ;;  %8087 = vmatprep.mubr.msk.f32.mxu0 %vm8936_vm1, %v8935_v32  ;;  %v623_v57 = vld [vmem:[#allocation22] sm:$0xff] }
 0x80d   :  { %8095 = vmatprep.subr.mxu0 %v8935_v32 }
 0x80f   :  { %8088 = vmatmul.mubr.msk.f32.vlgmr.msra.gmra.mrb[22].mxu0 %vm630_vm2, %v2375_v58 }
 0x810   :  { %8097 = vmatprep.mubr.msk.f32.mxu0 %vm8936_vm1, %v8935_v32 }
 0x813   :  { %8096 = vmatpush3.xpose.msk.msra.mxu0 %vm630_vm2, %v2777_v34 }
 0x814   :  { %8105 = vmatprep.subr.mxu0 %v8935_v32 }
 0x816   :  { %8098 = vmatmul.mubr.msk.f32.vlgmr.msra.gmra.mrb[24].mxu0 %vm630_vm2, %v2775_v62 }
 0x817   :  { %8107 = vmatprep.mubr.msk.f32.mxu0 %vm8936_vm1, %v8935_v32 }
 0x8da   :  { %v2224_v63 = vpop.f32.mrb[18].mxu0 }
 0x8db   :  { %v8064_v59 = vpop.f32.mrb[19].mxu0  ;;  %8068 = vmatmul.mubr.msk.f32.vlgmr.msra.gmra.mrb[16].mxu1 %vm630_vm2, %v2224_v63 }
 0x8dc   :  { %8071 = vmatpush3.msra.mxu1 %v623_v57  ;;  %8072 = vmatprep.mubr.msk.f32.mxu1 %vm8936_vm1, %v8935_v32 }
 0x8dd   :  { %8080 = vmatprep.subr.mxu1 %v8935_v32 }
 0x8de   :  { %v9651_v6 = vpop.f32.mrb[20].mxu0 }
 0x8df   :  { %v8079_v7 = vpop.f32.mrb[21].mxu0 }
 0x8e2   :  { %v9653_v8 = vpop.f32.mrb[22].mxu0 }
 0x8e3   :  { %8073 = vmatmul.mubr.msk.f32.vlgmr.msra.gmra.mrb[16].mxu1 %vm630_vm2, %v9536_v15  ;;  %v8089_v12 = vpop.f32.mrb[23].mxu0  ;;  %v2603_v13 = vmul.f32 %v9653_v8, %v9374_v4  ;;  %v2602_v19 = vmul.f32 %v9653_v8, %v9376_v5  ;;  %v2605_v15 = vmul.f32 %v9653_v8, %v9380_v9  ;;  %v2604_v16 = vmul.f32 %v9653_v8, %v9382_v10 }
 0x8e4   :  { %8081 = vmatpush3.xpose.msk.msra.mxu1 %vm630_vm2, %v2456_v43  ;;  %8082 = vmatprep.mubr.msk.f32.mxu1 %vm8936_vm1, %v8935_v32  ;;  %v2606_v42 = vmul.f32 %v9653_v8, %v9394_v20  ;;  %v2608_v47 = vmul.f32 %v9653_v8, %v9400_v26 }
 0x8e5   :  { %8090 = vmatprep.subr.mxu1 %v8935_v32  ;;  %v2613_v14 = vsel %vm862_vm3, %v2603_v13, 0.0  ;;  %v2610_v3 = vsel %vm862_vm3, %v2602_v19, 0.0  ;;  %v2619_v18 = vsel %vm862_vm3, %v2605_v15, 0.0  ;;  %v2616_v61 = vsel %vm862_vm3, %v2604_v16, 0.0 }
 0x8e6   :  { %2614 = vadd.xlane.f32.xlu0 %v2613_v14  ;;  %2611 = vadd.xlane.f32.xlu1 %v2610_v3  ;;  %v2622_v45 = vsel %vm862_vm3, %v2606_v42, 0.0 }
 0x8e7   :  { %8083 = vmatmul.mubr.msk.f32.vlgmr.msra.gmra.mrb[18].mxu1 %vm630_vm2, %v2454_v48 }
 0x8e8   :  { %8091 = vmatpush3.xpose.msk.msra.mxu1 %vm630_vm2, %v2698_v50  ;;  %8092 = vmatprep.mubr.msk.f32.mxu1 %vm8936_vm1, %v8935_v32  ;;  %v2628_v50 = vsel %vm862_vm3, %v2608_v47, 0.0 }
 0x8e9   :  { %v9675_v17 = vpop.f32.mrb[24].mxu0  ;;  %8100 = vmatprep.subr.mxu1 %v8935_v32 }
 0x8ea   :  { %v8099_v1 = vpop.f32.mrb[25].mxu0  ;;  %2620 = vadd.xlane.f32.xlu0 %v2619_v18  ;;  %2617 = vadd.xlane.f32.xlu1 %v2616_v61 }
 0x8eb   :  { %8093 = vmatmul.mubr.msk.f32.vlgmr.msra.gmra.mrb[20].mxu1 %vm630_vm2, %v2696_v55 }
 0x8ec   :  { %8101 = vmatpush3.msra.mxu1 %v9330_v54  ;;  %8102 = vmatprep.mubr.msk.f32.mxu1 %vm8936_vm1, %v8935_v32 }
 0x8ed   :  { %8115 = vmatprep.subr.mxu1 %v8935_v32 }
 0x8ef   :  { %8103 = vmatmul.mubr.msk.f32.vlgmr.msra.gmra.mrb[22].mxu1 %vm630_vm2, %v2696_v55  ;;  %v2609_v55 = vmul.f32 %v9653_v8, %v9412_v38 }
 0x8f0   :  { %8117 = vmatprep.mubr.msk.f32.mxu1 %vm8936_vm1, %v8935_v32 }
 0x8f1   :  { %v2631_v56 = vsel %vm862_vm3, %v2609_v55, 0.0 }
 0x973   :  { %v2612_v2 = vpop.xlane.xlu1 %2611 }
 0x974   :  { %v2645_v61 = vrot.slane %v2612_v2, %v9424_v11 }
 0x977   :  { %v2618_v34 = vpop.xlane.xlu1 %2617 }
 0x9ba   :  { %v9688_v21 = vpop.f32.mrb[18].mxu1 }
 0x9bb   :  { %v8084_v22 = vpop.f32.mrb[19].mxu1 }
 0x9bc   :  { %v2653_v22 = vrot.slane %v2618_v34, %v9424_v11 }
 0x9be   :  { %v9690_v23 = vpop.f32.mrb[20].mxu1 }
 0x9bf   :  { %v8094_v24 = vpop.f32.mrb[21].mxu1 }
 0x9c2   :  { %v2919_v25 = vpop.f32.mrb[22].mxu1 }
 0x9c3   :  { %v8104_v27 = vpop.f32.mrb[23].mxu1  ;;  %v2923_v54 = vmul.f32 %v2919_v25, %v9376_v5  ;;  %v2924_v28 = vmul.f32 %v2919_v25, %v9374_v4  ;;  %v2925_v30 = vmul.f32 %v2919_v25, %v9382_v10  ;;  %v2927_v0 = vmul.f32 %v2919_v25, %v9394_v20 }
 0x9c4   :  { %v2926_v37 = vmul.f32 %v2919_v25, %v9380_v9  ;;  %v2929_v5 = vmul.f32 %v2919_v25, %v9400_v26  ;;  %v2928_v10 = vmul.f32 %v2919_v25, %v9406_v31  ;;  %v2930_v9 = vmul.f32 %v2919_v25, %v9412_v38  ;;  %v2615_v26 = vpop.xlane.xlu0 %2614 }
 0x9c5   :  { %v2931_v60 = vsel %vm862_vm3, %v2923_v54, 0.0  ;;  %v2934_v29 = vsel %vm862_vm3, %v2924_v28, 0.0  ;;  %v2937_v33 = vsel %vm862_vm3, %v2925_v30, 0.0  ;;  %v2943_v36 = vsel %vm862_vm3, %v2927_v0, 0.0 }
 0x9c6   :  { %2932 = vadd.xlane.f32.xlu0 %v2931_v60  ;;  %2935 = vadd.xlane.f32.xlu1 %v2934_v29  ;;  %v2940_v4 = vsel %vm862_vm3, %v2926_v37, 0.0  ;;  %v2949_v40 = vsel %vm862_vm3, %v2929_v5, 0.0  ;;  %v2946_v43 = vsel %vm862_vm3, %v2928_v10, 0.0  ;;  %v2952_v48 = vsel %vm862_vm3, %v2930_v9, 0.0 }
 0x9c7   :  { %v2607_v20 = vmul.f32 %v9653_v8, %v9406_v31  ;;  %v2649_v18 = vrot.slane %v2615_v26, %v9424_v11  ;;  %v2531_v26 = vmul.f32 0.35355338, %v9688_v21 }
 0x9c8   :  { %v2621_v58 = vpop.xlane.xlu0 %2620 }
 0x9c9   :  { %v2625_v53 = vsel %vm862_vm3, %v2607_v20, 0.0  ;;  %v2674_v60 = vsel %vm929_vm4, %v2649_v18, %v2645_v61  ;;  %v2657_v29 = vrot.slane %v2621_v58, %v9424_v11 }
 0x9ca   :  { %2938 = vadd.xlane.f32.xlu0 %v2937_v33  ;;  %2944 = vadd.xlane.f32.xlu1 %v2943_v36  ;;  %v2675_v0 = vsel %vm931_vm5, %v2653_v22, %v2674_v60  ;;  %v2773_v33 = vmul.f32 0.35355338, %v9690_v23 }
 0x9cb   :  { %v2676_v42 = vsel %vm933_vm6, %v2657_v29, %v2675_v0 }
 0x9ce   :  { %2941 = vadd.xlane.f32.xlu0 %v2940_v4  ;;  %2950 = vadd.xlane.f32.xlu1 %v2949_v40  ;;  %v2852_v4 = vmul.f32 0.35355338, %v9675_v17  ;;  %v2452_v17 = vmul.f32 0.35355338, %v9651_v6 }
 0x9d2   :  { %2947 = vadd.xlane.f32.xlu0 %v2946_v43  ;;  %2623 = vadd.xlane.f32.xlu1 %v2622_v45 }
 0x9d6   :  { %2953 = vadd.xlane.f32.xlu0 %v2952_v48  ;;  %2629 = vadd.xlane.f32.xlu1 %v2628_v50 }
 0x9da   :  { %2626 = vadd.xlane.f32.xlu0 %v2625_v53 }
 0x9de   :  { %2632 = vadd.xlane.f32.xlu0 %v2631_v56 }
 0xa53   :  { %v2933_v62 = vpop.xlane.xlu0 %2932  ;;  %v2936_v57 = vpop.xlane.xlu1 %2935 }
 0xa54   :  { %v2966_v31 = vrot.slane %v2933_v62, %v9424_v11  ;;  %v2970_v7 = vrot.slane %v2936_v57, %v9424_v11 }
 0xa56   :  { %v2995_v38 = vsel %vm929_vm4, %v2970_v7, %v2966_v31 }
 0xa57   :  { %v2939_v63 = vpop.xlane.xlu0 %2938  ;;  %v2945_v59 = vpop.xlane.xlu1 %2944 }
 0xa58   :  { %v2974_v12 = vrot.slane %v2939_v63, %v9424_v11  ;;  %v2982_v15 = vrot.slane %v2945_v59, %v9424_v11 }
 0xa5a   :  { %v2996_v14 = vsel %vm931_vm5, %v2974_v12, %v2995_v38 }
 0xa5b   :  { %v2942_v13 = vpop.xlane.xlu0 %2941  ;;  %v2951_v19 = vpop.xlane.xlu1 %2950 }
 0xa5c   :  { %v2978_v8 = vrot.slane %v2942_v13, %v9424_v11  ;;  %v2990_v54 = vrot.slane %v2951_v19, %v9424_v11 }
 0xa5e   :  { %v2997_v3 = vsel %vm933_vm6, %v2978_v8, %v2996_v14 }
 0xa5f   :  { %v2948_v16 = vpop.xlane.xlu0 %2947  ;;  %v2998_v24 = vsel %vm935_vm7, %v2982_v15, %v2997_v3  ;;  %v2624_v27 = vpop.xlane.xlu1 %2623 }
 0xa60   :  { %v2986_v1 = vrot.slane %v2948_v16, %v9424_v11  ;;  %v2661_v36 = vrot.slane %v2624_v27, %v9424_v11 }
 0xa62   :  { %v2999_v25 = vsel %vm937_vm8, %v2986_v1, %v2998_v24  ;;  %v2677_v9 = vsel %vm935_vm7, %v2661_v36, %v2676_v42  ;;  %v9797_v24 = vld [vmem:[#allocation20] sm:$0xff] }
 0xa63   :  { %v2954_v28 = vpop.xlane.xlu0 %2953  ;;  %v3000_v37 = vsel %vm939_vm9, %v2990_v54, %v2999_v25  ;;  %v2630_v43 = vpop.xlane.xlu1 %2629 }
 0xa64   :  { %v2994_v30 = vrot.slane %v2954_v28, %v9424_v11  ;;  %v2669_v48 = vrot.slane %v2630_v43, %v9424_v11 }
 0xa66   :  { %v3001_v5 = vsel %vm941_vm10, %v2994_v30, %v3000_v37  ;;  %v9814_v30 = vld [vmem:[#allocation13] sm:$0xff] }
 0xa67   :  { %v2627_v40 = vpop.xlane.xlu0 %2626  ;;  %v3003_v10 = vadd.f32 %v3001_v5, %v2773_v33 }
 0xa68   :  { %v2665_v45 = vrot.slane %v2627_v40, %v9424_v11 }
 0xa69   :  { %v3004_v47 = vadd.f32 %v3003_v10, %v2852_v4  ;;  %v9826_v4 = vld [vmem:[#allocation23 + $0x8] sm:$0xff]  ;;  %v9829_v10 = vld [vmem:[#allocation23] sm:$0xff] }
 0xa6a   :  { %v2678_v23 = vsel %vm937_vm8, %v2665_v45, %v2677_v9 }
 0xa6b   :  { %v2633_v50 = vpop.xlane.xlu0 %2632  ;;  %v3005_v20 = vsel %vm630_vm2, %v3004_v47, -inf  ;;  %v2679_v55 = vsel %vm939_vm9, %v2669_v48, %v2678_v23  ;;  %v9839_v48 = vld [vmem:[#allocation23 + $0x10] sm:$0xff] }
 0xa6c   :  { %v2673_v53 = vrot.slane %v2633_v50, %v9424_v11  ;;  %3006 = vmax.xlane.f32.xlu1 %v3005_v20 }
 0xa6e   :  { %v2680_v56 = vsel %vm941_vm10, %v2673_v53, %v2679_v55  ;;  %v9845_v53 = vld [vmem:[#allocation23 + $0x30] sm:$0xff] }
 0xa6f   :  { %v2682_v2 = vadd.f32 %v2680_v56, %v2452_v17  ;;  %v9849_v56 = vld [vmem:[#allocation23 + $0x18] sm:$0xff] }
 0xa71   :  { %v2683_v58 = vadd.f32 %v2682_v2, %v2531_v26 }
 0xa73   :  { %v2684_v34 = vsel %vm630_vm2, %v2683_v58, -inf }
 0xa74   :  { %2685 = vmax.xlane.f32.xlu0 %v2684_v34  ;;  %v9854_v34 = vld [vmem:[#allocation23 + $0x28] sm:$0xff] }
 0xaf9   :  { %v3007_v62 = vpop.xlane.xlu1 %3006 }
 0xafa   :  { %v3008_v57 = vsub.f32 %v3004_v47, %v3007_v62  ;;  %v9835_v47 = vld [vmem:[#allocation23 + $0x20] sm:$0xff] }
 0xafc   :  { %v3009_v63 = vmul.f32 1.442695, %v3008_v57 }
 0xafe   :  { %8453 = vpow2.f32 %v3009_v63  ;;  %v9858_v63 = vld [vmem:[#allocation23 + $0x38] sm:$0xff] }
 0xb01   :  { %v2686_v59 = vpop.xlane.xlu0 %2685 }
 0xb02   :  { %v2687_v31 = vsub.f32 %v2683_v58, %v2686_v59 }
 0xb04   :  { %v2688_v7 = vmul.f32 1.442695, %v2687_v31 }
 0xb06   :  { %8455 = vpow2.f32 %v2688_v7 }
 0xb08   :  { %v8454_v6 = vpop.eup %8453 }
 0xb09   :  { %v3011_v12 = vsel %vm630_vm2, %v8454_v6, 0.0 }
 0xb0a   :  { %3012 = vadd.xlane.f32.xlu1 %v3011_v12 }
 0xb10   :  { %v8456_v13 = vpop.eup %8455 }
 0xb11   :  { %v2690_v21 = vsel %vm630_vm2, %v8456_v13, 0.0 }
 0xb12   :  { %2691 = vadd.xlane.f32.xlu0 %v2690_v21 }
 0xb1b   :  { %3016 = vrot.lane.b32.xlu1 %v9314_v46, %s8944_s20 }
 0xb1f   :  { %3327 = vrot.lane.b32.xlu1 %v9308_v41, %s8945_s10 }
 0xb23   :  { %3325 = vrot.lane.b32.xlu1 %v9308_v41, %s8946_s14  ;;  %v625_v41 = vld [vmem:[#allocation22 + $0x10] sm:$0xff] }
 0xb24   :  { %8116 = vmatpush3.msra.mxu1 %v625_v41 }
 0xb25   :  { %8120 = vmatprep.subr.mxu1 %v8935_v32 }
 0xb27   :  { %3567 = vrot.lane.b32.xlu1 %v9314_v46, %s8946_s14 }
 0xb28   :  { %3096 = vrot.lane.b32.xlu0 %v9322_v52, %s8944_s20 }
 0xb2b   :  { %3246 = vrot.lane.b32.xlu1 %v9322_v52, %s8946_s14 }
 0xb2c   :  { %3569 = vrot.lane.b32.xlu0 %v9314_v46, %s8945_s10 }
 0xb2f   :  { %3646 = vrot.lane.b32.xlu1 %v9320_v51, %s8946_s14 }
 0xb30   :  { %3248 = vrot.lane.b32.xlu0 %v9322_v52, %s8945_s10 }
 0xb34   :  { %3648 = vrot.lane.b32.xlu0 %v9320_v51, %s8945_s10 }
 0xb97   :  { %v3013_v38 = vpop.xlane.xlu1 %3012 }
 0xb98   :  { %8457 = vrcp.f32 %v3013_v38 }
 0xb9b   :  { %v3017_v8 = vpop.permute.xlu1 %3016 }
 0xb9c   :  { %8106 = vmatpush3.msra.mxu0 %v3017_v8 }
 0xb9d   :  { %8110 = vmatprep.subr.mxu0 %v8935_v32 }
 0xb9f   :  { %v2692_v19 = vpop.xlane.xlu0 %2691  ;;  %v3328_v51 = vpop.permute.xlu1 %3327 }
 0xba0   :  { %8459 = vrcp.f32 %v2692_v19 }
 0xba2   :  { %v8458_v14 = vpop.eup %8457 }
 0xba3   :  { %v3097_v3 = vpop.permute.xlu0 %3096  ;;  %v3015_v15 = vmul.f32 %v8458_v14, %v8454_v6  ;;  %v3326_v61 = vpop.permute.xlu1 %3325 }
 0xba5   :  { %8108 = vmatmul.mubr.msk.f32.vlgmr.msra.gmra.mrb[26].mxu0 %vm630_vm2, %v3015_v15  ;;  %3095 = vst.msk [vmem:[#allocation28 + $0x10] sm:$0xff] %vm630_vm2, %v3015_v15 }
 0xba6   :  { %8111 = vmatpush3.msra.mxu0 %v3097_v3  ;;  %8112 = vmatprep.mubr.msk.f32.mxu0 %vm8936_vm1, %v8935_v32 }
 0xba7   :  { %8125 = vmatprep.subr.mxu0 %v8935_v32  ;;  %v3570_v1 = vpop.permute.xlu0 %3569  ;;  %v3568_v22 = vpop.permute.xlu1 %3567 }
 0xbaa   :  { %v8460_v16 = vpop.eup %8459 }
 0xbab   :  { %v2694_v18 = vmul.f32 %v8460_v16, %v8456_v13  ;;  %v3249_v27 = vpop.permute.xlu0 %3248  ;;  %v3247_v28 = vpop.permute.xlu1 %3246 }
 0xbad   :  { %3093 = vst.msk [vmem:[#allocation26 + $0x10] sm:$0xff] %vm630_vm2, %v2694_v18  ;;  %8113 = vmatmul.mubr.msk.f32.vlgmr.msra.gmra.mrb[26].mxu0 %vm630_vm2, %v2694_v18 }
 0xbae   :  { %8126 = vmatpush3.xpose.msk.msra.mxu0 %vm630_vm2, %v3328_v51  ;;  %8127 = vmatprep.mubr.msk.f32.mxu0 %vm8936_vm1, %v8935_v32 }
 0xbaf   :  { %8135 = vmatprep.subr.mxu0 %v8935_v32  ;;  %v3649_v36 = vpop.permute.xlu0 %3648  ;;  %v3647_v43 = vpop.permute.xlu1 %3646 }
 0xbb1   :  { %8128 = vmatmul.mubr.msk.f32.vlgmr.msra.gmra.mrb[28].mxu0 %vm630_vm2, %v3326_v61 }
 0xbb2   :  { %8136 = vmatpush3.xpose.msk.msra.mxu0 %vm630_vm2, %v3570_v1  ;;  %8137 = vmatprep.mubr.msk.f32.mxu0 %vm8936_vm1, %v8935_v32 }
 0xbb3   :  { %8145 = vmatprep.subr.mxu0 %v8935_v32 }
 0xbb5   :  { %8138 = vmatmul.mubr.msk.f32.vlgmr.msra.gmra.mrb[30].mxu0 %vm630_vm2, %v3568_v22 }
 0xbb6   :  { %8146 = vmatpush3.msra.mxu0 %v9797_v24  ;;  %8147 = vmatprep.mubr.msk.f32.mxu0 %vm8936_vm1, %v8935_v32 }
 0xbb7   :  { %8165 = vmatprep.subr.mxu0 %v8935_v32 }
 0xbb9   :  { %8148 = vmatmul.mubr.msk.f32.vlgmr.msra.gmra.mrb[32].mxu0 %vm630_vm2, %v3568_v22 }
 0xbba   :  { %8167 = vmatprep.mubr.msk.f32.mxu0 %vm8936_vm1, %v8935_v32 }
 0xc80   :  { %v3168_v25 = vpop.f32.mrb[26].mxu0 }
 0xc81   :  { %v8114_v54 = vpop.f32.mrb[27].mxu0  ;;  %8118 = vmatmul.mubr.msk.f32.vlgmr.msra.gmra.mrb[16].mxu1 %vm630_vm2, %v3168_v25 }
 0xc82   :  { %8121 = vmatpush3.xpose.msk.msra.mxu1 %vm630_vm2, %v3249_v27  ;;  %8122 = vmatprep.mubr.msk.f32.mxu1 %vm8936_vm1, %v8935_v32 }
 0xc83   :  { %8130 = vmatprep.subr.mxu1 %v8935_v32 }
 0xc84   :  { %v9811_v60 = vpop.f32.mrb[28].mxu0 }
 0xc85   :  { %8123 = vmatmul.mubr.msk.f32.vlgmr.msra.gmra.mrb[24].mxu1 %vm630_vm2, %v3247_v28  ;;  %v8129_v29 = vpop.f32.mrb[29].mxu0 }
 0xc86   :  { %8131 = vmatpush3.msra.mxu1 %v9814_v30  ;;  %8132 = vmatprep.mubr.msk.f32.mxu1 %vm8936_vm1, %v8935_v32 }
 0xc87   :  { %8140 = vmatprep.subr.mxu1 %v8935_v32 }
 0xc88   :  { %v9820_v0 = vpop.f32.mrb[30].mxu0 }
 0xc89   :  { %8133 = vmatmul.mubr.msk.f32.vlgmr.msra.gmra.mrb[26].mxu1 %vm630_vm2, %v3247_v28  ;;  %v8139_v33 = vpop.f32.mrb[31].mxu0 }
 0xc8a   :  { %8142 = vmatprep.mubr.msk.f32.mxu1 %vm8936_vm1, %v8935_v32 }
 0xc8c   :  { %v3791_v37 = vpop.f32.mrb[32].mxu0 }
 0xc8d   :  { %8141 = vmatpush3.xpose.msk.msra.mxu1 %vm630_vm2, %v3649_v36  ;;  %v8149_v5 = vpop.f32.mrb[33].mxu0  ;;  %v3796_v40 = vmul.f32 %v9826_v4, %v3791_v37  ;;  %v3795_v42 = vmul.f32 %v9829_v10, %v3791_v37  ;;  %v3799_v23 = vmul.f32 %v9835_v47, %v3791_v37  ;;  %v3797_v50 = vmul.f32 %v9839_v48, %v3791_v37 }
 0xc8e   :  { %8150 = vmatprep.subr.mxu1 %v8935_v32  ;;  %v3801_v17 = vmul.f32 %v9845_v53, %v3791_v37  ;;  %v3798_v26 = vmul.f32 %v9849_v56, %v3791_v37  ;;  %v3800_v62 = vmul.f32 %v9854_v34, %v3791_v37  ;;  %v3802_v59 = vmul.f32 %v9858_v63, %v3791_v37 }
 0xc8f   :  { %v3806_v45 = vsel %vm862_vm3, %v3796_v40, 0.0  ;;  %v3803_v9 = vsel %vm862_vm3, %v3795_v42, 0.0  ;;  %v3815_v20 = vsel %vm862_vm3, %v3799_v23, 0.0  ;;  %v3809_v55 = vsel %vm862_vm3, %v3797_v50, 0.0 }
 0xc90   :  { %8143 = vmatmul.mubr.msk.f32.vlgmr.msra.gmra.mrb[28].mxu1 %vm630_vm2, %v3647_v43  ;;  %3807 = vadd.xlane.f32.xlu1 %v3806_v45  ;;  %v3821_v2 = vsel %vm862_vm3, %v3801_v17, 0.0  ;;  %v3812_v58 = vsel %vm862_vm3, %v3798_v26, 0.0  ;;  %v3818_v57 = vsel %vm862_vm3, %v3800_v62, 0.0  ;;  %v3824_v31 = vsel %vm862_vm3, %v3802_v59, 0.0 }
 0xc91   :  { %3804 = vadd.xlane.f32.xlu0 %v3803_v9  ;;  %8152 = vmatprep.mubr.msk.f32.mxu1 %vm8936_vm1, %v8935_v32  ;;  %v3645_v50 = vmul.f32 0.35355338, %v9820_v0 }
 0xc94   :  { %3816 = vadd.xlane.f32.xlu1 %v3815_v20 }
 0xc95   :  { %3810 = vadd.xlane.f32.xlu0 %v3809_v55 }
 0xc98   :  { %3822 = vadd.xlane.f32.xlu1 %v3821_v2 }
 0xc99   :  { %3813 = vadd.xlane.f32.xlu0 %v3812_v58 }
 0xc9d   :  { %3819 = vadd.xlane.f32.xlu0 %v3818_v57 }
 0xca1   :  { %3825 = vadd.xlane.f32.xlu0 %v3824_v31 }
 0xd1d   :  { %v3808_v13 = vpop.xlane.xlu1 %3807 }
 0xd1e   :  { %v3805_v7 = vpop.xlane.xlu0 %3804  ;;  %v3842_v21 = vrot.slane %v3808_v13, %v9424_v11 }
 0xd1f   :  { %v3838_v41 = vrot.slane %v3805_v7, %v9424_v11 }
 0xd21   :  { %v3817_v19 = vpop.xlane.xlu1 %3816  ;;  %v3867_v3 = vsel %vm929_vm4, %v3842_v21, %v3838_v41 }
 0xd22   :  { %v3811_v6 = vpop.xlane.xlu0 %3810  ;;  %v3854_v1 = vrot.slane %v3817_v19, %v9424_v11 }
 0xd23   :  { %v3846_v38 = vrot.slane %v3811_v6, %v9424_v11 }
 0xd25   :  { %v3868_v15 = vsel %vm931_vm5, %v3846_v38, %v3867_v3  ;;  %v3823_v25 = vpop.xlane.xlu1 %3822 }
 0xd26   :  { %v3814_v12 = vpop.xlane.xlu0 %3813  ;;  %v3862_v5 = vrot.slane %v3823_v25, %v9424_v11 }
 0xd27   :  { %v3850_v14 = vrot.slane %v3814_v12, %v9424_v11 }
 0xd29   :  { %v3869_v16 = vsel %vm933_vm6, %v3850_v14, %v3868_v15 }
 0xd2a   :  { %v3820_v8 = vpop.xlane.xlu0 %3819  ;;  %v3870_v27 = vsel %vm935_vm7, %v3854_v1, %v3869_v16 }
 0xd2b   :  { %v3858_v18 = vrot.slane %v3820_v8, %v9424_v11 }
 0xd2d   :  { %v3871_v28 = vsel %vm937_vm8, %v3858_v18, %v3870_v27 }
 0xd2e   :  { %v3826_v22 = vpop.xlane.xlu0 %3825  ;;  %v3872_v9 = vsel %vm939_vm9, %v3862_v5, %v3871_v28 }
 0xd2f   :  { %v3866_v29 = vrot.slane %v3826_v22, %v9424_v11 }
 0xd31   :  { %v3873_v23 = vsel %vm941_vm10, %v3866_v29, %v3872_v9  ;;  %v3403_v9 = vmul.f32 0.35355338, %v9811_v60 }
 0xd32   :  { %v3875_v62 = vadd.f32 %v3873_v23, %v3645_v50 }
 0xd58   :  { %v9868_v51 = vpop.f32.mrb[24].mxu1 }
 0xd59   :  { %v8124_v61 = vpop.f32.mrb[25].mxu1 }
 0xd5c   :  { %v3470_v54 = vpop.f32.mrb[26].mxu1 }
 0xd5d   :  { %v8134_v33 = vpop.f32.mrb[27].mxu1  ;;  %v3474_v36 = vmul.f32 %v9829_v10, %v3470_v54  ;;  %v3475_v37 = vmul.f32 %v9826_v4, %v3470_v54  ;;  %v3476_v43 = vmul.f32 %v9839_v48, %v3470_v54  ;;  %v3477_v45 = vmul.f32 %v9849_v56, %v3470_v54 }
 0xd5e   :  { %v3478_v26 = vmul.f32 %v9835_v47, %v3470_v54  ;;  %v3479_v2 = vmul.f32 %v9854_v34, %v3470_v54  ;;  %v3480_v0 = vmul.f32 %v9845_v53, %v3470_v54  ;;  %v3481_v6 = vmul.f32 %v9858_v63, %v3470_v54 }
 0xd5f   :  { %v3482_v40 = vsel %vm862_vm3, %v3474_v36, 0.0  ;;  %v3485_v42 = vsel %vm862_vm3, %v3475_v37, 0.0  ;;  %v3488_v17 = vsel %vm862_vm3, %v3476_v43, 0.0  ;;  %v3491_v55 = vsel %vm862_vm3, %v3477_v45, 0.0 }
 0xd60   :  { %3483 = vadd.xlane.f32.xlu1 %v3482_v40  ;;  %3486 = vadd.xlane.f32.xlu0 %v3485_v42  ;;  %v3494_v31 = vsel %vm862_vm3, %v3478_v26, 0.0  ;;  %v3497_v7 = vsel %vm862_vm3, %v3479_v2, 0.0  ;;  %v3500_v12 = vsel %vm862_vm3, %v3480_v0, 0.0  ;;  %v3503_v13 = vsel %vm862_vm3, %v3481_v6, 0.0 }
 0xd61   :  { %v3324_v40 = vmul.f32 0.35355338, %v9868_v51 }
 0xd63   :  { %v3720_v20 = vpop.f32.mrb[28].mxu1 }
 0xd64   :  { %v3724_v58 = vmul.f32 0.35355338, %v3720_v20  ;;  %v8144_v57 = vpop.f32.mrb[29].mxu1  ;;  %3489 = vadd.xlane.f32.xlu1 %v3488_v17  ;;  %3492 = vadd.xlane.f32.xlu0 %v3491_v55 }
 0xd66   :  { %v3876_v59 = vadd.f32 %v3875_v62, %v3724_v58 }
 0xd68   :  { %3495 = vadd.xlane.f32.xlu1 %v3494_v31  ;;  %3498 = vadd.xlane.f32.xlu0 %v3497_v7  ;;  %v3877_v21 = vsel %vm630_vm2, %v3876_v59, -inf }
 0xd6c   :  { %3501 = vadd.xlane.f32.xlu1 %v3500_v12  ;;  %3504 = vadd.xlane.f32.xlu0 %v3503_v13 }
 0xd70   :  { %3878 = vmax.xlane.f32.xlu1 %v3877_v21 }
 0xded   :  { %v3484_v41 = vpop.xlane.xlu1 %3483  ;;  %v3487_v38 = vpop.xlane.xlu0 %3486 }
 0xdee   :  { %v3517_v8 = vrot.slane %v3484_v41, %v9424_v11  ;;  %v3521_v19 = vrot.slane %v3487_v38, %v9424_v11 }
 0xdf0   :  { %v3546_v16 = vsel %vm929_vm4, %v3521_v19, %v3517_v8 }
 0xdf1   :  { %v3490_v14 = vpop.xlane.xlu1 %3489  ;;  %v3493_v3 = vpop.xlane.xlu0 %3492 }
 0xdf2   :  { %v3525_v15 = vrot.slane %v3490_v14, %v9424_v11  ;;  %v3529_v18 = vrot.slane %v3493_v3, %v9424_v11 }
 0xdf4   :  { %v3547_v61 = vsel %vm931_vm5, %v3525_v15, %v3546_v16 }
 0xdf5   :  { %v3496_v1 = vpop.xlane.xlu1 %3495  ;;  %v3499_v22 = vpop.xlane.xlu0 %3498  ;;  %v3548_v27 = vsel %vm933_vm6, %v3529_v18, %v3547_v61 }
 0xdf6   :  { %v3533_v25 = vrot.slane %v3496_v1, %v9424_v11  ;;  %v3537_v54 = vrot.slane %v3499_v22, %v9424_v11 }
 0xdf8   :  { %v3549_v28 = vsel %vm935_vm7, %v3533_v25, %v3548_v27 }
 0xdf9   :  { %v3502_v29 = vpop.xlane.xlu1 %3501  ;;  %v3505_v33 = vpop.xlane.xlu0 %3504  ;;  %v3550_v5 = vsel %vm937_vm8, %v3537_v54, %v3549_v28 }
 0xdfa   :  { %v3541_v36 = vrot.slane %v3502_v29, %v9424_v11  ;;  %v3545_v37 = vrot.slane %v3505_v33, %v9424_v11 }
 0xdfc   :  { %v3551_v42 = vsel %vm939_vm9, %v3541_v36, %v3550_v5 }
 0xdfd   :  { %v3552_v43 = vsel %vm941_vm10, %v3545_v37, %v3551_v42  ;;  %v3879_v45 = vpop.xlane.xlu1 %3878 }
 0xdfe   :  { %v3880_v23 = vsub.f32 %v3876_v59, %v3879_v45  ;;  %v3554_v50 = vadd.f32 %v3552_v43, %v3324_v40 }
 0xe00   :  { %v3881_v20 = vmul.f32 1.442695, %v3880_v23  ;;  %v3555_v17 = vadd.f32 %v3554_v50, %v3403_v9 }
 0xe02   :  { %8461 = vpow2.f32 %v3881_v20  ;;  %v3556_v55 = vsel %vm630_vm2, %v3555_v17, -inf }
 0xe03   :  { %3557 = vmax.xlane.f32.xlu0 %v3556_v55 }
 0xe0c   :  { %v8462_v26 = vpop.eup %8461 }
 0xe0d   :  { %v3883_v2 = vsel %vm630_vm2, %v8462_v26, 0.0 }
 0xe0e   :  { %3884 = vadd.xlane.f32.xlu1 %v3883_v2 }
 0xe1f   :  { %3888 = vrot.lane.b32.xlu1 %v9314_v46, %s8947_s27 }
 0xe23   :  { %4439 = vrot.lane.b32.xlu1 %v9312_v44, %s8937_s6 }
 0xe27   :  { %4120 = vrot.lane.b32.xlu1 %v9304_v35, %s8937_s6 }
 0xe2b   :  { %4517 = vrot.lane.b32.xlu1 %v9318_v49, %s8937_s6 }
 0xe90   :  { %v3558_v60 = vpop.xlane.xlu0 %3557 }
 0xe91   :  { %v3559_v51 = vsub.f32 %v3555_v17, %v3558_v60 }
 0xe93   :  { %v3560_v58 = vmul.f32 1.442695, %v3559_v51 }
 0xe95   :  { %8463 = vpow2.f32 %v3560_v58 }
 0xe9b   :  { %v3885_v62 = vpop.xlane.xlu1 %3884 }
 0xe9c   :  { %8465 = vrcp.f32 %v3885_v62 }
 0xe9f   :  { %v8464_v57 = vpop.eup %8463  ;;  %v3889_v59 = vpop.permute.xlu1 %3888 }
 0xea0   :  { %8151 = vmatpush3.msra.mxu1 %v3889_v59  ;;  %v3562_v46 = vsel %vm630_vm2, %v8464_v57, 0.0 }
 0xea1   :  { %3563 = vadd.xlane.f32.xlu0 %v3562_v46  ;;  %8155 = vmatprep.subr.mxu1 %v8935_v32 }
 0xea3   :  { %v4440_v31 = vpop.permute.xlu1 %4439 }
 0xea6   :  { %v8466_v7 = vpop.eup %8465 }
 0xea7   :  { %v4121_v0 = vpop.permute.xlu1 %4120  ;;  %v3887_v6 = vmul.f32 %v8466_v7, %v8462_v26 }
 0xea8   :  { %8166 = vmatpush3.xpose.msk.msra.mxu0 %vm630_vm2, %v4121_v0 }
 0xea9   :  { %8153 = vmatmul.mubr.msk.f32.vlgmr.msra.gmra.mrb[30].mxu1 %vm630_vm2, %v3887_v6  ;;  %3967 = vst.msk [vmem:[#allocation28 + $0x18] sm:$0xff] %vm630_vm2, %v3887_v6  ;;  %8170 = vmatprep.subr.mxu0 %v8935_v32 }
 0xeaa   :  { %8157 = vmatprep.mubr.msk.f32.mxu1 %vm8936_vm1, %v8935_v32 }
 0xeab   :  { %8168 = vmatmul.mubr.msk.f32.vlgmr.msra.gmra.mrb[34].mxu0 %vm630_vm2, %v9304_v35  ;;  %v4518_v8 = vpop.permute.xlu1 %4517 }
 0xeac   :  { %8172 = vmatprep.mubr.msk.f32.mxu0 %vm8936_vm1, %v8935_v32 }
 0xeb7   :  { %3968 = vrot.lane.b32.xlu0 %v9322_v52, %s8947_s27  ;;  %v626_v52 = vld [vmem:[#allocation22 + $0x18] sm:$0xff] }
 0xebb   :  { %4198 = vrot.lane.b32.xlu0 %v9306_v39, %s8937_s6 }
 0xf2e   :  { %v3564_v12 = vpop.xlane.xlu0 %3563 }
 0xf2f   :  { %8467 = vrcp.f32 %v3564_v12 }
 0xf32   :  { %v3969_v13 = vpop.permute.xlu0 %3968 }
 0xf33   :  { %8156 = vmatpush3.msra.mxu1 %v3969_v13 }
 0xf34   :  { %8160 = vmatprep.subr.mxu1 %v8935_v32 }
 0xf36   :  { %v4199_v21 = vpop.permute.xlu0 %4198 }
 0xf37   :  { %8171 = vmatpush3.xpose.msk.msra.mxu0 %vm630_vm2, %v4199_v21 }
 0xf38   :  { %8175 = vmatprep.subr.mxu0 %v8935_v32 }
 0xf39   :  { %v8468_v41 = vpop.eup %8467 }
 0xf3a   :  { %8173 = vmatmul.mubr.msk.f32.vlgmr.msra.gmra.mrb[36].mxu0 %vm630_vm2, %v9306_v39  ;;  %v3566_v38 = vmul.f32 %v8468_v41, %v8464_v57 }
 0xf3b   :  { %8176 = vmatpush3.msra.mxu0 %v9814_v30  ;;  %8177 = vmatprep.mubr.msk.f32.mxu0 %vm8936_vm1, %v8935_v32 }
 0xf3c   :  { %3965 = vst.msk [vmem:[#allocation26 + $0x18] sm:$0xff] %vm630_vm2, %v3566_v38  ;;  %8158 = vmatmul.mubr.msk.f32.vlgmr.msra.gmra.mrb[30].mxu1 %vm630_vm2, %v3566_v38  ;;  %8185 = vmatprep.subr.mxu0 %v8935_v32 }
 0xf3d   :  { %8161 = vmatpush3.msra.mxu1 %v626_v52  ;;  %8162 = vmatprep.mubr.msk.f32.mxu1 %vm8936_vm1, %v8935_v32 }
 0xf3e   :  { %8178 = vmatmul.mubr.msk.f32.vlgmr.msra.gmra.mrb[38].mxu0 %vm630_vm2, %v9304_v35  ;;  %8180 = vmatprep.subr.mxu1 %v8935_v32 }
 0xf3f   :  { %8187 = vmatprep.mubr.msk.f32.mxu0 %vm8936_vm1, %v8935_v32 }
 0xf42   :  { %8186 = vmatpush3.xpose.msk.msra.mxu0 %vm630_vm2, %v4518_v8 }
 0xf43   :  { %8195 = vmatprep.subr.mxu0 %v8935_v32 }
 0xf45   :  { %8188 = vmatmul.mubr.msk.f32.vlgmr.msra.gmra.mrb[40].mxu0 %vm630_vm2, %v9318_v49 }
 0xf46   :  { %8197 = vmatprep.mubr.msk.f32.mxu0 %vm8936_vm1, %v8935_v32 }
 0xf7e   :  { %v9964_v19 = vpop.f32.mrb[34].mxu0 }
 0xf7f   :  { %v8169_v14 = vpop.f32.mrb[35].mxu0 }
0x100d   :  { %v9966_v3 = vpop.f32.mrb[36].mxu0 }
0x100e   :  { %v8174_v15 = vpop.f32.mrb[37].mxu0 }
0x100f   :  { %v4040_v16 = vpop.f32.mrb[30].mxu1 }
0x1010   :  { %v8159_v18 = vpop.f32.mrb[31].mxu1  ;;  %8163 = vmatmul.mubr.msk.f32.vlgmr.msra.gmra.mrb[16].mxu1 %vm630_vm2, %v4040_v16 }
0x1011   :  { %8181 = vmatpush3.xpose.msk.msra.mxu1 %vm630_vm2, %v4440_v31  ;;  %v9970_v61 = vpop.f32.mrb[38].mxu0  ;;  %8182 = vmatprep.mubr.msk.f32.mxu1 %vm8936_vm1, %v8935_v32 }
0x1012   :  { %v8179_v1 = vpop.f32.mrb[39].mxu0  ;;  %8190 = vmatprep.subr.mxu1 %v8935_v32  ;;  %v4346_v22 = vmul.f32 %v9826_v4, %v9970_v61  ;;  %v4345_v25 = vmul.f32 %v9829_v10, %v9970_v61  ;;  %v4348_v28 = vmul.f32 %v9849_v56, %v9970_v61  ;;  %v4347_v29 = vmul.f32 %v9839_v48, %v9970_v61 }
0x1013   :  { %v4349_v31 = vmul.f32 %v9835_v47, %v9970_v61  ;;  %v4351_v12 = vmul.f32 %v9845_v53, %v9970_v61  ;;  %v4350_v41 = vmul.f32 %v9854_v34, %v9970_v61  ;;  %v4352_v52 = vmul.f32 %v9858_v63, %v9970_v61 }
0x1014   :  { %8183 = vmatmul.mubr.msk.f32.vlgmr.msra.gmra.mrb[32].mxu1 %vm630_vm2, %v9312_v44  ;;  %v4356_v27 = vsel %vm862_vm3, %v4346_v22, 0.0  ;;  %v4353_v54 = vsel %vm862_vm3, %v4345_v25, 0.0  ;;  %v4362_v36 = vsel %vm862_vm3, %v4348_v28, 0.0  ;;  %v4359_v37 = vsel %vm862_vm3, %v4347_v29, 0.0 }
0x1015   :  { %8191 = vmatpush3.msra.mxu1 %v9797_v24  ;;  %4357 = vadd.xlane.f32.xlu0 %v4356_v27  ;;  %v4365_v0 = vsel %vm862_vm3, %v4349_v31, 0.0  ;;  %v4371_v21 = vsel %vm862_vm3, %v4351_v12, 0.0  ;;  %v4368_v38 = vsel %vm862_vm3, %v4350_v41, 0.0  ;;  %v4374_v8 = vsel %vm862_vm3, %v4352_v52, 0.0 }
0x1016   :  { %4354 = vadd.xlane.f32.xlu1 %v4353_v54  ;;  %8192 = vmatprep.mubr.msk.f32.mxu1 %vm8936_vm1, %v8935_v32 }
0x1017   :  { %8205 = vmatprep.subr.mxu1 %v8935_v32 }
0x1018   :  { %v9991_v33 = vpop.f32.mrb[40].mxu0  ;;  %8193 = vmatmul.mubr.msk.f32.vlgmr.msra.gmra.mrb[34].mxu1 %vm630_vm2, %v9312_v44 }
0x1019   :  { %4363 = vadd.xlane.f32.xlu0 %v4362_v36  ;;  %v8189_v5 = vpop.f32.mrb[41].mxu0  ;;  %8207 = vmatprep.mubr.msk.f32.mxu1 %vm8936_vm1, %v8935_v32 }
0x101a   :  { %4360 = vadd.xlane.f32.xlu1 %v4359_v37 }
0x10a2   :  { %v4358_v14 = vpop.xlane.xlu0 %4357 }
0x10a3   :  { %v4355_v15 = vpop.xlane.xlu1 %4354 }
0x10a6   :  { %v4364_v16 = vpop.xlane.xlu0 %4363 }
0x10a7   :  { %v4361_v18 = vpop.xlane.xlu1 %4360 }
0x10e3   :  { %v4113_v40 = vpop.f32.mrb[16].mxu1 }
0x10e4   :  { %4118 = vst.msk [vmem:[#allocation25] sm:$0xff] %vm249_vm0, %v4113_v40  ;;  %v8164_v42 = vpop.f32.mrb[17].mxu1 }
0x10e7   :  { %v10000_v43 = vpop.f32.mrb[32].mxu1 }
0x10e8   :  { %v8184_v45 = vpop.f32.mrb[33].mxu1 }
0x10eb   :  { %v4660_v9 = vpop.f32.mrb[34].mxu1 }
0x10ec   :  { %v8194_v23 = vpop.f32.mrb[35].mxu1  ;;  %v4664_v50 = vmul.f32 %v9829_v10, %v4660_v9  ;;  %v4665_v20 = vmul.f32 %v9826_v4, %v4660_v9  ;;  %v4666_v26 = vmul.f32 %v9839_v48, %v4660_v9  ;;  %v4668_v2 = vmul.f32 %v9835_v47, %v4660_v9 }
0x10ed   :  { %v4667_v58 = vmul.f32 %v9849_v56, %v4660_v9  ;;  %v4670_v62 = vmul.f32 %v9845_v53, %v4660_v9  ;;  %v4669_v46 = vmul.f32 %v9854_v34, %v4660_v9  ;;  %v4671_v6 = vmul.f32 %v9858_v63, %v4660_v9 }
0x10ee   :  { %v4672_v17 = vsel %vm862_vm3, %v4664_v50, 0.0  ;;  %v4675_v55 = vsel %vm862_vm3, %v4665_v20, 0.0  ;;  %v4678_v60 = vsel %vm862_vm3, %v4666_v26, 0.0  ;;  %v4684_v51 = vsel %vm862_vm3, %v4668_v2, 0.0 }
0x10ef   :  { %4673 = vadd.xlane.f32.xlu0 %v4672_v17  ;;  %4676 = vadd.xlane.f32.xlu1 %v4675_v55  ;;  %v4681_v57 = vsel %vm862_vm3, %v4667_v58, 0.0  ;;  %v4690_v59 = vsel %vm862_vm3, %v4670_v62, 0.0  ;;  %v4687_v7 = vsel %vm862_vm3, %v4669_v46, 0.0  ;;  %v4693_v13 = vsel %vm862_vm3, %v4671_v6, 0.0 }
0x10f0   :  { %v4392_v23 = vrot.slane %v4358_v14, %v9424_v11  ;;  %v4388_v50 = vrot.slane %v4355_v15, %v9424_v11  ;;  %v4396_v17 = vrot.slane %v4361_v18, %v9424_v11  ;;  %v4400_v62 = vrot.slane %v4364_v16, %v9424_v11 }
0x10f1   :  { %v4515_v46 = vmul.f32 0.35355338, %v10000_v43  ;;  %v4593_v6 = vmul.f32 0.35355338, %v9991_v33  ;;  %v4196_v33 = vmul.f32 0.35355338, %v9964_v19 }
0x10f2   :  { %v4417_v58 = vsel %vm929_vm4, %v4392_v23, %v4388_v50 }
0x10f3   :  { %4679 = vadd.xlane.f32.xlu0 %v4678_v60  ;;  %4685 = vadd.xlane.f32.xlu1 %v4684_v51 }
0x10f7   :  { %4682 = vadd.xlane.f32.xlu0 %v4681_v57  ;;  %4691 = vadd.xlane.f32.xlu1 %v4690_v59  ;;  %v4418_v59 = vsel %vm931_vm5, %v4396_v17, %v4417_v58 }
0x10fb   :  { %4688 = vadd.xlane.f32.xlu0 %v4687_v7  ;;  %4366 = vadd.xlane.f32.xlu1 %v4365_v0 }
0x10ff   :  { %4694 = vadd.xlane.f32.xlu0 %v4693_v13  ;;  %4372 = vadd.xlane.f32.xlu1 %v4371_v21  ;;  %v4419_v21 = vsel %vm933_vm6, %v4400_v62, %v4418_v59 }
0x1103   :  { %4369 = vadd.xlane.f32.xlu0 %v4368_v38 }
0x1107   :  { %4375 = vadd.xlane.f32.xlu0 %v4374_v8 }
0x117c   :  { %v4674_v1 = vpop.xlane.xlu0 %4673  ;;  %v4677_v22 = vpop.xlane.xlu1 %4676 }
0x117d   :  { %v4707_v54 = vrot.slane %v4674_v1, %v9424_v11  ;;  %v4711_v28 = vrot.slane %v4677_v22, %v9424_v11 }
0x117f   :  { %v4736_v61 = vsel %vm929_vm4, %v4711_v28, %v4707_v54 }
0x1180   :  { %v4680_v25 = vpop.xlane.xlu0 %4679  ;;  %v4686_v27 = vpop.xlane.xlu1 %4685 }
0x1181   :  { %v4715_v29 = vrot.slane %v4680_v25, %v9424_v11  ;;  %v4723_v45 = vrot.slane %v4686_v27, %v9424_v11  ;;  %v4274_v25 = vmul.f32 0.35355338, %v9966_v3 }
0x1183   :  { %v4737_v40 = vsel %vm931_vm5, %v4715_v29, %v4736_v61 }
0x1184   :  { %v4683_v36 = vpop.xlane.xlu0 %4682  ;;  %v4692_v5 = vpop.xlane.xlu1 %4691 }
0x1185   :  { %v4719_v37 = vrot.slane %v4683_v36, %v9424_v11  ;;  %v4731_v60 = vrot.slane %v4692_v5, %v9424_v11 }
0x1187   :  { %v4738_v42 = vsel %vm933_vm6, %v4719_v37, %v4737_v40 }
0x1188   :  { %v4689_v9 = vpop.xlane.xlu0 %4688  ;;  %v4739_v55 = vsel %vm935_vm7, %v4723_v45, %v4738_v42  ;;  %v4367_v2 = vpop.xlane.xlu1 %4366 }
0x1189   :  { %v4727_v20 = vrot.slane %v4689_v9, %v9424_v11  ;;  %v4404_v31 = vrot.slane %v4367_v2, %v9424_v11 }
0x118b   :  { %v4740_v26 = vsel %vm937_vm8, %v4727_v20, %v4739_v55  ;;  %v4420_v52 = vsel %vm935_vm7, %v4404_v31, %v4419_v21 }
0x118c   :  { %v4695_v51 = vpop.xlane.xlu0 %4694  ;;  %v4741_v7 = vsel %vm939_vm9, %v4731_v60, %v4740_v26  ;;  %v4373_v41 = vpop.xlane.xlu1 %4372 }
0x118d   :  { %v4735_v57 = vrot.slane %v4695_v51, %v9424_v11  ;;  %v4412_v14 = vrot.slane %v4373_v41, %v9424_v11 }
0x118f   :  { %v4742_v0 = vsel %vm941_vm10, %v4735_v57, %v4741_v7 }
0x1190   :  { %v4370_v12 = vpop.xlane.xlu0 %4369  ;;  %v4744_v13 = vadd.f32 %v4742_v0, %v4515_v46  ;;  %v8511_v46 = vld [vmem:[#allocation22 + $0x8] sm:$0xff] }
0x1191   :  { %v4408_v38 = vrot.slane %v4370_v12, %v9424_v11 }
0x1192   :  { %v4745_v8 = vadd.f32 %v4744_v13, %v4593_v6 }
0x1193   :  { %v4421_v43 = vsel %vm937_vm8, %v4408_v38, %v4420_v52 }
0x1194   :  { %v4376_v15 = vpop.xlane.xlu0 %4375  ;;  %v4746_v16 = vsel %vm630_vm2, %v4745_v8, -inf  ;;  %v4422_v1 = vsel %vm939_vm9, %v4412_v14, %v4421_v43 }
0x1195   :  { %v4416_v18 = vrot.slane %v4376_v15, %v9424_v11  ;;  %4747 = vmax.xlane.f32.xlu1 %v4746_v16 }
0x1197   :  { %v4423_v22 = vsel %vm941_vm10, %v4416_v18, %v4422_v1 }
0x1198   :  { %v4425_v27 = vadd.f32 %v4423_v22, %v4196_v33 }
0x119a   :  { %v4426_v54 = vadd.f32 %v4425_v27, %v4274_v25 }
0x119c   :  { %v4427_v28 = vsel %vm630_vm2, %v4426_v54, -inf }
0x119d   :  { %4428 = vmax.xlane.f32.xlu0 %v4427_v28 }
0x11a6   :  { %4915 = vrot.lane.b32.xlu1 %v9304_v35, %s8938_s13 }
0x11aa   :  { %4994 = vrot.lane.b32.xlu1 %v9306_v39, %s8938_s13 }
0x11ae   :  { %4992 = vrot.lane.b32.xlu1 %v9306_v39, %s8939_s28 }
0x11b2   :  { %4757 = vrot.lane.b32.xlu1 %v9312_v44, %s8940_s5 }
0x1222   :  { %v4748_v19 = vpop.xlane.xlu1 %4747 }
0x1223   :  { %v4749_v29 = vsub.f32 %v4745_v8, %v4748_v19 }
0x1225   :  { %v4750_v3 = vmul.f32 1.442695, %v4749_v29 }
0x1226   :  { %v4916_v36 = vpop.permute.xlu1 %4915 }
0x1227   :  { %8469 = vpow2.f32 %v4750_v3  ;;  %8206 = vmatpush3.xpose.msk.msra.mxu1 %vm630_vm2, %v4916_v36 }
0x1228   :  { %8210 = vmatprep.subr.mxu1 %v8935_v32 }
0x122a   :  { %v4429_v61 = vpop.xlane.xlu0 %4428  ;;  %v4995_v37 = vpop.permute.xlu1 %4994 }
0x122b   :  { %v4430_v5 = vsub.f32 %v4426_v54, %v4429_v61 }
0x122d   :  { %v4431_v40 = vmul.f32 1.442695, %v4430_v5 }
0x122e   :  { %v4993_v42 = vpop.permute.xlu1 %4992 }
0x122f   :  { %8471 = vpow2.f32 %v4431_v40 }
0x1231   :  { %v8470_v45 = vpop.eup %8469 }
0x1232   :  { %v4758_v9 = vpop.permute.xlu1 %4757  ;;  %v4752_v23 = vsel %vm630_vm2, %v8470_v45, 0.0 }
0x1233   :  { %4753 = vadd.xlane.f32.xlu1 %v4752_v23  ;;  %8196 = vmatpush3.msra.mxu0 %v4758_v9 }
0x1234   :  { %8200 = vmatprep.subr.mxu0 %v8935_v32 }
0x1239   :  { %v8472_v50 = vpop.eup %8471 }
0x123a   :  { %v4433_v20 = vsel %vm630_vm2, %v8472_v50, 0.0 }
0x123b   :  { %4434 = vadd.xlane.f32.xlu0 %v4433_v20 }
0x1244   :  { %4837 = vrot.lane.b32.xlu1 %v9304_v35, %s8940_s5 }
0x1248   :  { %5313 = vrot.lane.b32.xlu1 %v9318_v49, %s8939_s28 }
0x1251   :  { %4913 = vrot.lane.b32.xlu0 %v9304_v35, %s8939_s28 }
0x1255   :  { %5236 = vrot.lane.b32.xlu0 %v9312_v44, %s8938_s13 }
0x1259   :  { %5234 = vrot.lane.b32.xlu0 %v9312_v44, %s8939_s28 }
0x125d   :  { %5315 = vrot.lane.b32.xlu0 %v9318_v49, %s8938_s13 }
0x12c0   :  { %v4754_v17 = vpop.xlane.xlu1 %4753 }
0x12c1   :  { %8473 = vrcp.f32 %v4754_v17 }
0x12c4   :  { %v4838_v51 = vpop.permute.xlu1 %4837 }
0x12c8   :  { %v4435_v55 = vpop.xlane.xlu0 %4434 }
0x12c9   :  { %8475 = vrcp.f32 %v4435_v55 }
0x12cb   :  { %v8474_v26 = vpop.eup %8473 }
0x12cc   :  { %v4756_v2 = vmul.f32 %v8474_v26, %v8470_v45  ;;  %v4914_v60 = vpop.permute.xlu0 %4913 }
0x12cd   :  { %8208 = vmatmul.mubr.msk.f32.vlgmr.msra.gmra.mrb[36].mxu1 %vm630_vm2, %v4914_v60 }
0x12ce   :  { %4836 = vst.msk [vmem:[#allocation28 + $0x20] sm:$0xff] %vm630_vm2, %v4756_v2  ;;  %8211 = vmatpush3.xpose.msk.msra.mxu1 %vm630_vm2, %v4995_v37  ;;  %8198 = vmatmul.mubr.msk.f32.vlgmr.msra.gmra.mrb[42].mxu0 %vm630_vm2, %v4756_v2 }
0x12cf   :  { %8201 = vmatpush3.msra.mxu0 %v4838_v51  ;;  %8212 = vmatprep.mubr.msk.f32.mxu1 %vm8936_vm1, %v8935_v32 }
0x12d0   :  { %v5237_v58 = vpop.permute.xlu0 %5236  ;;  %8220 = vmatprep.subr.mxu1 %v8935_v32  ;;  %8202 = vmatprep.mubr.msk.f32.mxu0 %vm8936_vm1, %v8935_v32 }
0x12d1   :  { %8213 = vmatmul.mubr.msk.f32.vlgmr.msra.gmra.mrb[38].mxu1 %vm630_vm2, %v4993_v42  ;;  %8215 = vmatprep.subr.mxu0 %v8935_v32 }
0x12d2   :  { %8221 = vmatpush3.xpose.msk.msra.mxu1 %vm630_vm2, %v5237_v58  ;;  %8222 = vmatprep.mubr.msk.f32.mxu1 %vm8936_vm1, %v8935_v32 }
0x12d3   :  { %v8476_v62 = vpop.eup %8475  ;;  %8230 = vmatprep.subr.mxu1 %v8935_v32 }
0x12d4   :  { %v4437_v57 = vmul.f32 %v8476_v62, %v8472_v50  ;;  %v5235_v59 = vpop.permute.xlu0 %5234 }
0x12d5   :  { %8223 = vmatmul.mubr.msk.f32.vlgmr.msra.gmra.mrb[40].mxu1 %vm630_vm2, %v5235_v59 }
0x12d6   :  { %4834 = vst.msk [vmem:[#allocation26 + $0x20] sm:$0xff] %vm630_vm2, %v4437_v57  ;;  %8203 = vmatmul.mubr.msk.f32.vlgmr.msra.gmra.mrb[42].mxu0 %vm630_vm2, %v4437_v57  ;;  %8231 = vmatpush3.msra.mxu1 %v9797_v24 }
0x12d7   :  { %8216 = vmatpush3.msra.mxu0 %v9814_v30  ;;  %8232 = vmatprep.mubr.msk.f32.mxu1 %vm8936_vm1, %v8935_v32  ;;  %v5314_v30 = vpop.permute.xlu1 %5313 }
0x12d8   :  { %8217 = vmatprep.mubr.msk.f32.mxu0 %vm8936_vm1, %v8935_v32  ;;  %8225 = vmatprep.subr.mxu0 %v8935_v32  ;;  %v5316_v24 = vpop.permute.xlu0 %5315 }
0x12d9   :  { %8233 = vmatmul.mubr.msk.f32.vlgmr.msra.gmra.mrb[42].mxu1 %vm630_vm2, %v5235_v59  ;;  %8245 = vmatprep.subr.mxu1 %v8935_v32 }
0x12da   :  { %8218 = vmatmul.mubr.msk.f32.vlgmr.msra.gmra.mrb[44].mxu0 %vm630_vm2, %v4914_v60  ;;  %8246 = vmatpush3.msra.mxu1 %v8511_v46 }
0x12db   :  { %8227 = vmatprep.mubr.msk.f32.mxu0 %vm8936_vm1, %v8935_v32  ;;  %8247 = vmatprep.mubr.msk.f32.mxu1 %vm8936_vm1, %v8935_v32 }
0x12dc   :  { %8250 = vmatprep.subr.mxu1 %v8935_v32 }
0x12de   :  { %8226 = vmatpush3.xpose.msk.msra.mxu0 %vm630_vm2, %v5316_v24 }
0x12df   :  { %8235 = vmatprep.subr.mxu0 %v8935_v32 }
0x12e1   :  { %8228 = vmatmul.mubr.msk.f32.vlgmr.msra.gmra.mrb[46].mxu0 %vm630_vm2, %v5314_v30 }
0x12e2   :  { %8237 = vmatprep.mubr.msk.f32.mxu0 %vm8936_vm1, %v8935_v32 }
0x13a0   :  { %v10129_v31 = vpop.f32.mrb[36].mxu1 }
0x13a1   :  { %v8209_v7 = vpop.f32.mrb[37].mxu1 }
0x13a4   :  { %v10131_v0 = vpop.f32.mrb[38].mxu1 }
0x13a5   :  { %v8214_v6 = vpop.f32.mrb[39].mxu1 }
0x13a8   :  { %v10133_v12 = vpop.f32.mrb[40].mxu1 }
0x13a9   :  { %v10135_v13 = vpop.f32.mrb[42].mxu0  ;;  %v8224_v21 = vpop.f32.mrb[41].mxu1 }
0x13aa   :  { %v8204_v41 = vpop.f32.mrb[43].mxu0 }
0x13ac   :  { %v5458_v38 = vpop.f32.mrb[42].mxu1 }
0x13ad   :  { %v5137_v52 = vpop.f32.mrb[44].mxu0  ;;  %v8234_v8 = vpop.f32.mrb[43].mxu1  ;;  %v5463_v43 = vmul.f32 %v9826_v4, %v5458_v38  ;;  %v5462_v14 = vmul.f32 %v9829_v10, %v5458_v38  ;;  %v5466_v33 = vmul.f32 %v9835_v47, %v5458_v38  ;;  %v5464_v1 = vmul.f32 %v9839_v48, %v5458_v38 }
0x13ae   :  { %v8219_v15 = vpop.f32.mrb[45].mxu0  ;;  %v5468_v27 = vmul.f32 %v9845_v53, %v5458_v38  ;;  %v5465_v54 = vmul.f32 %v9849_v56, %v5458_v38  ;;  %v5467_v36 = vmul.f32 %v9854_v34, %v5458_v38  ;;  %v5141_v61 = vmul.f32 %v9829_v10, %v5137_v52 }
0x13af   :  { %v5473_v16 = vsel %vm862_vm3, %v5463_v43, 0.0  ;;  %v5470_v18 = vsel %vm862_vm3, %v5462_v14, 0.0  ;;  %v5482_v22 = vsel %vm862_vm3, %v5466_v33, 0.0  ;;  %v5476_v25 = vsel %vm862_vm3, %v5464_v1, 0.0 }
0x13b0   :  { %5474 = vadd.xlane.f32.xlu1 %v5473_v16  ;;  %5471 = vadd.xlane.f32.xlu0 %v5470_v18  ;;  %v5488_v29 = vsel %vm862_vm3, %v5468_v27, 0.0  ;;  %v5479_v3 = vsel %vm862_vm3, %v5465_v54, 0.0  ;;  %v5485_v37 = vsel %vm862_vm3, %v5467_v36, 0.0  ;;  %v5149_v5 = vsel %vm862_vm3, %v5141_v61, 0.0 }
0x13b1   :  { %v5469_v40 = vmul.f32 %v9858_v63, %v5458_v38  ;;  %v5143_v42 = vmul.f32 %v9839_v48, %v5137_v52  ;;  %v5142_v23 = vmul.f32 %v9826_v4, %v5137_v52  ;;  %v5145_v10 = vmul.f32 %v9835_v47, %v5137_v52 }
0x13b2   :  { %v5144_v17 = vmul.f32 %v9849_v56, %v5137_v52  ;;  %v5147_v48 = vmul.f32 %v9845_v53, %v5137_v52  ;;  %v5146_v4 = vmul.f32 %v9854_v34, %v5137_v52  ;;  %v5148_v2 = vmul.f32 %v9858_v63, %v5137_v52 }
0x13b3   :  { %v5491_v45 = vsel %vm862_vm3, %v5469_v40, 0.0  ;;  %v5155_v9 = vsel %vm862_vm3, %v5143_v42, 0.0  ;;  %v5152_v50 = vsel %vm862_vm3, %v5142_v23, 0.0  ;;  %v5161_v20 = vsel %vm862_vm3, %v5145_v10, 0.0 }
0x13b4   :  { %v10147_v28 = vpop.f32.mrb[46].mxu0  ;;  %5483 = vadd.xlane.f32.xlu1 %v5482_v22  ;;  %5477 = vadd.xlane.f32.xlu0 %v5476_v25  ;;  %v5158_v55 = vsel %vm862_vm3, %v5144_v17, 0.0  ;;  %v5167_v26 = vsel %vm862_vm3, %v5147_v48, 0.0  ;;  %v5164_v47 = vsel %vm862_vm3, %v5146_v4, 0.0  ;;  %v5170_v60 = vsel %vm862_vm3, %v5148_v2, 0.0 }
0x13b5   :  { %v8229_v19 = vpop.f32.mrb[47].mxu0  ;;  %v5312_v18 = vmul.f32 0.35355338, %v10133_v12  ;;  %v5391_v22 = vmul.f32 0.35355338, %v10147_v28 }
0x13b8   :  { %5489 = vadd.xlane.f32.xlu1 %v5488_v29  ;;  %5480 = vadd.xlane.f32.xlu0 %v5479_v3 }
0x13bc   :  { %5486 = vadd.xlane.f32.xlu0 %v5485_v37  ;;  %5150 = vadd.xlane.f32.xlu1 %v5149_v5 }
0x13c0   :  { %5492 = vadd.xlane.f32.xlu0 %v5491_v45  ;;  %5156 = vadd.xlane.f32.xlu1 %v5155_v9 }
0x13c4   :  { %5153 = vadd.xlane.f32.xlu0 %v5152_v50  ;;  %5162 = vadd.xlane.f32.xlu1 %v5161_v20 }
0x13c8   :  { %5159 = vadd.xlane.f32.xlu0 %v5158_v55  ;;  %5168 = vadd.xlane.f32.xlu1 %v5167_v26  ;;  %v4991_v55 = vmul.f32 0.35355338, %v10129_v31 }
0x13cc   :  { %5165 = vadd.xlane.f32.xlu0 %v5164_v47  ;;  %v5070_v47 = vmul.f32 0.35355338, %v10131_v0 }
0x13d0   :  { %5171 = vadd.xlane.f32.xlu0 %v5170_v60 }
0x143d   :  { %v5472_v56 = vpop.xlane.xlu0 %5471  ;;  %v5475_v53 = vpop.xlane.xlu1 %5474 }
0x143e   :  { %v5505_v62 = vrot.slane %v5472_v56, %v9424_v11  ;;  %v5509_v57 = vrot.slane %v5475_v53, %v9424_v11 }
0x1440   :  { %v5534_v24 = vsel %vm929_vm4, %v5509_v57, %v5505_v62 }
0x1441   :  { %v5478_v51 = vpop.xlane.xlu0 %5477  ;;  %v5484_v58 = vpop.xlane.xlu1 %5483 }
0x1442   :  { %v5513_v34 = vrot.slane %v5478_v51, %v9424_v11  ;;  %v5521_v6 = vrot.slane %v5484_v58, %v9424_v11 }
0x1444   :  { %v5535_v30 = vsel %vm931_vm5, %v5513_v34, %v5534_v24 }
0x1445   :  { %v5481_v59 = vpop.xlane.xlu0 %5480  ;;  %v5490_v46 = vpop.xlane.xlu1 %5489 }
0x1446   :  { %v5517_v63 = vrot.slane %v5481_v59, %v9424_v11  ;;  %v5529_v43 = vrot.slane %v5490_v46, %v9424_v11 }
0x1448   :  { %v5536_v7 = vsel %vm933_vm6, %v5517_v63, %v5535_v30 }
0x1449   :  { %v5487_v21 = vpop.xlane.xlu0 %5486  ;;  %v5151_v41 = vpop.xlane.xlu1 %5150  ;;  %v5537_v52 = vsel %vm935_vm7, %v5521_v6, %v5536_v7 }
0x144a   :  { %v5525_v38 = vrot.slane %v5487_v21, %v9424_v11  ;;  %v5184_v54 = vrot.slane %v5151_v41, %v9424_v11 }
0x144c   :  { %v5538_v8 = vsel %vm937_vm8, %v5525_v38, %v5537_v52 }
0x144d   :  { %v5493_v14 = vpop.xlane.xlu0 %5492  ;;  %v5157_v16 = vpop.xlane.xlu1 %5156  ;;  %v5539_v33 = vsel %vm939_vm9, %v5529_v43, %v5538_v8 }
0x144e   :  { %v5533_v15 = vrot.slane %v5493_v14, %v9424_v11  ;;  %v5192_v61 = vrot.slane %v5157_v16, %v9424_v11 }
0x1450   :  { %v5540_v1 = vsel %vm941_vm10, %v5533_v15, %v5539_v33 }
0x1451   :  { %v5154_v25 = vpop.xlane.xlu0 %5153  ;;  %v5542_v27 = vadd.f32 %v5540_v1, %v5312_v18  ;;  %v5163_v36 = vpop.xlane.xlu1 %5162  ;;  %v10244_v18 = vld [vmem:[#allocation13] sm:$0xff] }
0x1452   :  { %v5188_v19 = vrot.slane %v5154_v25, %v9424_v11  ;;  %v5200_v42 = vrot.slane %v5163_v36, %v9424_v11  ;;  %v10268_v36 = vld [vmem:[#allocation23 + $0x8] sm:$0xff] }
0x1453   :  { %v5543_v29 = vadd.f32 %v5542_v27, %v5391_v22  ;;  %v8513_v27 = vld [vmem:[#allocation22] sm:$0xff] }
0x1454   :  { %v5213_v3 = vsel %vm929_vm4, %v5188_v19, %v5184_v54 }
0x1455   :  { %v5160_v37 = vpop.xlane.xlu0 %5159  ;;  %v5544_v12 = vsel %vm630_vm2, %v5543_v29, -inf  ;;  %v5214_v28 = vsel %vm931_vm5, %v5192_v61, %v5213_v3  ;;  %v5169_v9 = vpop.xlane.xlu1 %5168 }
0x1456   :  { %v5196_v5 = vrot.slane %v5160_v37, %v9424_v11  ;;  %5545 = vmax.xlane.f32.xlu1 %v5544_v12  ;;  %v5208_v20 = vrot.slane %v5169_v9, %v9424_v11  ;;  %v10272_v37 = vld [vmem:[#allocation23] sm:$0xff] }
0x1458   :  { %v5215_v40 = vsel %vm933_vm6, %v5196_v5, %v5214_v28  ;;  %v10282_v28 = vld [vmem:[#allocation23 + $0x18] sm:$0xff] }
0x1459   :  { %v5166_v45 = vpop.xlane.xlu0 %5165  ;;  %v5216_v10 = vsel %vm935_vm7, %v5200_v42, %v5215_v40  ;;  %v10286_v42 = vld [vmem:[#allocation23 + $0x10] sm:$0xff] }
0x145a   :  { %v5204_v23 = vrot.slane %v5166_v45, %v9424_v11 }
0x145c   :  { %v5217_v50 = vsel %vm937_vm8, %v5204_v23, %v5216_v10 }
0x145d   :  { %v5172_v17 = vpop.xlane.xlu0 %5171  ;;  %v5218_v26 = vsel %vm939_vm9, %v5208_v20, %v5217_v50  ;;  %v10301_v20 = vld [vmem:[#allocation20] sm:$0xff] }
0x145e   :  { %v5212_v48 = vrot.slane %v5172_v17, %v9424_v11  ;;  %v8519_v17 = vld [vmem:[#allocation22 + $0x10] sm:$0xff] }
0x1460   :  { %v5219_v4 = vsel %vm941_vm10, %v5212_v48, %v5218_v26 }
0x1461   :  { %v5221_v2 = vadd.f32 %v5219_v4, %v4991_v55 }
0x1463   :  { %v5222_v60 = vadd.f32 %v5221_v2, %v5070_v47 }
0x1465   :  { %v5223_v56 = vsel %vm630_vm2, %v5222_v60, -inf }
0x1466   :  { %5224 = vmax.xlane.f32.xlu0 %v5223_v56 }
0x14e3   :  { %v5546_v53 = vpop.xlane.xlu1 %5545 }
0x14e4   :  { %v5547_v51 = vsub.f32 %v5543_v29, %v5546_v53 }
0x14e6   :  { %v5548_v58 = vmul.f32 1.442695, %v5547_v51 }
0x14e8   :  { %8477 = vpow2.f32 %v5548_v58 }
0x14f2   :  { %v8478_v62 = vpop.eup %8477 }
0x14f3   :  { %v5225_v57 = vpop.xlane.xlu0 %5224  ;;  %v5550_v34 = vsel %vm630_vm2, %v8478_v62, 0.0 }
0x14f4   :  { %v5226_v31 = vsub.f32 %v5222_v60, %v5225_v57  ;;  %5551 = vadd.xlane.f32.xlu1 %v5550_v34 }
0x14f6   :  { %v5227_v59 = vmul.f32 1.442695, %v5226_v31 }
0x14f8   :  { %8479 = vpow2.f32 %v5227_v59 }
0x1502   :  { %v8480_v46 = vpop.eup %8479 }
0x1503   :  { %v5229_v0 = vsel %vm630_vm2, %v8480_v46, 0.0 }
0x1504   :  { %5230 = vadd.xlane.f32.xlu0 %v5229_v0 }
0x1505   :  { %5555 = vrot.lane.b32.xlu1 %v9312_v44, %s8941_s29 }
0x1509   :  { %5938 = vrot.lane.b32.xlu1 %v9306_v39, %s8942_s1 }
0x150d   :  { %5936 = vrot.lane.b32.xlu1 %v9306_v39, %s8943_s0 }
0x1511   :  { %6178 = vrot.lane.b32.xlu1 %v9312_v44, %s8943_s0 }
0x1515   :  { %5857 = vrot.lane.b32.xlu1 %v9304_v35, %s8943_s0 }
0x1519   :  { %6257 = vrot.lane.b32.xlu1 %v9318_v49, %s8943_s0 }
0x151a   :  { %5635 = vrot.lane.b32.xlu0 %v9304_v35, %s8941_s29 }
0x151e   :  { %6180 = vrot.lane.b32.xlu0 %v9312_v44, %s8942_s1 }
0x1522   :  { %5859 = vrot.lane.b32.xlu0 %v9304_v35, %s8942_s1 }
0x1526   :  { %6259 = vrot.lane.b32.xlu0 %v9318_v49, %s8942_s1 }
0x1581   :  { %v5552_v24 = vpop.xlane.xlu1 %5551 }
0x1582   :  { %8481 = vrcp.f32 %v5552_v24 }
0x1585   :  { %v5556_v63 = vpop.permute.xlu1 %5555 }
0x1586   :  { %8236 = vmatpush3.msra.mxu0 %v5556_v63 }
0x1587   :  { %8240 = vmatprep.subr.mxu0 %v8935_v32 }
0x1589   :  { %v5939_v6 = vpop.permute.xlu1 %5938 }
0x158c   :  { %v8482_v30 = vpop.eup %8481 }
0x158d   :  { %v5554_v7 = vmul.f32 %v8482_v30, %v8478_v62  ;;  %v5937_v38 = vpop.permute.xlu1 %5936  ;;  %v10321_v62 = vld [vmem:[#allocation23 + $0x20] sm:$0xff]  ;;  %v10332_v30 = vld [vmem:[#allocation23 + $0x28] sm:$0xff] }
0x158f   :  { %5634 = vst.msk [vmem:[#allocation28 + $0x28] sm:$0xff] %vm630_vm2, %v5554_v7  ;;  %8238 = vmatmul.mubr.msk.f32.vlgmr.msra.gmra.mrb[48].mxu0 %vm630_vm2, %v5554_v7 }
0x1590   :  { %8242 = vmatprep.mubr.msk.f32.mxu0 %vm8936_vm1, %v8935_v32 }
0x1591   :  { %v5231_v21 = vpop.xlane.xlu0 %5230  ;;  %v10235_v43 = vpop.permute.xlu1 %6178 }
0x1592   :  { %8483 = vrcp.f32 %v5231_v21 }
0x1595   :  { %v5636_v41 = vpop.permute.xlu0 %5635  ;;  %v5858_v16 = vpop.permute.xlu1 %5857 }
0x1596   :  { %8241 = vmatpush3.msra.mxu0 %v5636_v41 }
0x1597   :  { %8255 = vmatprep.subr.mxu0 %v8935_v32 }
0x1599   :  { %v6181_v52 = vpop.permute.xlu0 %6180  ;;  %v6258_v1 = vpop.permute.xlu1 %6257 }
0x159c   :  { %v8484_v8 = vpop.eup %8483 }
0x159d   :  { %v5233_v14 = vmul.f32 %v8484_v8, %v8480_v46  ;;  %v5860_v15 = vpop.permute.xlu0 %5859  ;;  %v10327_v46 = vld [vmem:[#allocation23 + $0x30] sm:$0xff] }
0x159f   :  { %5632 = vst.msk [vmem:[#allocation26 + $0x28] sm:$0xff] %vm630_vm2, %v5233_v14  ;;  %8243 = vmatmul.mubr.msk.f32.vlgmr.msra.gmra.mrb[48].mxu0 %vm630_vm2, %v5233_v14 }
0x15a0   :  { %8256 = vmatpush3.xpose.msk.msra.mxu0 %vm630_vm2, %v5860_v15  ;;  %8257 = vmatprep.mubr.msk.f32.mxu0 %vm8936_vm1, %v8935_v32 }
0x15a1   :  { %8265 = vmatprep.subr.mxu0 %v8935_v32  ;;  %v6260_v33 = vpop.permute.xlu0 %6259 }
0x15a3   :  { %8258 = vmatmul.mubr.msk.f32.vlgmr.msra.gmra.mrb[50].mxu0 %vm630_vm2, %v5858_v16 }
0x15a4   :  { %8266 = vmatpush3.msra.mxu0 %v10244_v18  ;;  %8267 = vmatprep.mubr.msk.f32.mxu0 %vm8936_vm1, %v8935_v32 }
0x15a5   :  { %8275 = vmatprep.subr.mxu0 %v8935_v32 }
0x15a7   :  { %8268 = vmatmul.mubr.msk.f32.vlgmr.msra.gmra.mrb[52].mxu0 %vm630_vm2, %v5858_v16 }
0x15a8   :  { %8277 = vmatprep.mubr.msk.f32.mxu0 %vm8936_vm1, %v8935_v32 }
0x15ab   :  { %8276 = vmatpush3.xpose.msk.msra.mxu0 %vm630_vm2, %v6260_v33 }
0x15ac   :  { %8285 = vmatprep.subr.mxu0 %v8935_v32 }
0x15ae   :  { %8278 = vmatmul.mubr.msk.f32.vlgmr.msra.gmra.mrb[54].mxu0 %vm630_vm2, %v6258_v1 }
0x15af   :  { %8287 = vmatprep.mubr.msk.f32.mxu0 %vm8936_vm1, %v8935_v32 }
0x1672   :  { %v5707_v22 = vpop.f32.mrb[48].mxu0 }
0x1673   :  { %v8244_v25 = vpop.f32.mrb[49].mxu0  ;;  %8248 = vmatmul.mubr.msk.f32.vlgmr.msra.gmra.mrb[44].mxu1 %vm630_vm2, %v5707_v22 }
0x1674   :  { %8251 = vmatpush3.msra.mxu1 %v8513_v27  ;;  %8252 = vmatprep.mubr.msk.f32.mxu1 %vm8936_vm1, %v8935_v32 }
0x1675   :  { %8260 = vmatprep.subr.mxu1 %v8935_v32 }
0x1676   :  { %v10262_v54 = vpop.f32.mrb[50].mxu0 }
0x1677   :  { %v8259_v19 = vpop.f32.mrb[51].mxu0 }
0x167a   :  { %v10264_v29 = vpop.f32.mrb[52].mxu0 }
0x167b   :  { %8253 = vmatmul.mubr.msk.f32.vlgmr.msra.gmra.mrb[44].mxu1 %vm630_vm2, %v10135_v13  ;;  %v8269_v3 = vpop.f32.mrb[53].mxu0  ;;  %v6086_v61 = vmul.f32 %v10268_v36, %v10264_v29  ;;  %v6085_v12 = vmul.f32 %v10272_v37, %v10264_v29  ;;  %v6088_v40 = vmul.f32 %v10282_v28, %v10264_v29  ;;  %v6087_v45 = vmul.f32 %v10286_v42, %v10264_v29 }
0x167c   :  { %8261 = vmatpush3.xpose.msk.msra.mxu1 %vm630_vm2, %v5939_v6  ;;  %8262 = vmatprep.mubr.msk.f32.mxu1 %vm8936_vm1, %v8935_v32  ;;  %v6089_v6 = vmul.f32 %v10321_v62, %v10264_v29  ;;  %v6091_v8 = vmul.f32 %v10327_v46, %v10264_v29  ;;  %v6090_v15 = vmul.f32 %v10332_v30, %v10264_v29 }
0x167d   :  { %8270 = vmatprep.subr.mxu1 %v8935_v32  ;;  %v6096_v13 = vsel %vm862_vm3, %v6086_v61, 0.0  ;;  %v6093_v5 = vsel %vm862_vm3, %v6085_v12, 0.0  ;;  %v6102_v23 = vsel %vm862_vm3, %v6088_v40, 0.0  ;;  %v6099_v10 = vsel %vm862_vm3, %v6087_v45, 0.0 }
0x167e   :  { %6097 = vadd.xlane.f32.xlu0 %v6096_v13  ;;  %6094 = vadd.xlane.f32.xlu1 %v6093_v5  ;;  %v6105_v41 = vsel %vm862_vm3, %v6089_v6, 0.0  ;;  %v6111_v14 = vsel %vm862_vm3, %v6091_v8, 0.0  ;;  %v6108_v16 = vsel %vm862_vm3, %v6090_v15, 0.0 }
0x167f   :  { %8263 = vmatmul.mubr.msk.f32.vlgmr.msra.gmra.mrb[46].mxu1 %vm630_vm2, %v5937_v38  ;;  %v10339_v38 = vld [vmem:[#allocation23 + $0x38] sm:$0xff] }
0x1680   :  { %8271 = vmatpush3.xpose.msk.msra.mxu1 %vm630_vm2, %v6181_v52  ;;  %8272 = vmatprep.mubr.msk.f32.mxu1 %vm8936_vm1, %v8935_v32  ;;  %v6092_v33 = vmul.f32 %v10339_v38, %v10264_v29 }
0x1681   :  { %v10294_v9 = vpop.f32.mrb[54].mxu0  ;;  %8280 = vmatprep.subr.mxu1 %v8935_v32 }
0x1682   :  { %v8279_v50 = vpop.f32.mrb[55].mxu0  ;;  %6103 = vadd.xlane.f32.xlu0 %v6102_v23  ;;  %6100 = vadd.xlane.f32.xlu1 %v6099_v10  ;;  %v6114_v1 = vsel %vm862_vm3, %v6092_v33, 0.0 }
0x1683   :  { %8273 = vmatmul.mubr.msk.f32.vlgmr.msra.gmra.mrb[48].mxu1 %vm630_vm2, %v10235_v43 }
0x1684   :  { %8281 = vmatpush3.msra.mxu1 %v10301_v20  ;;  %8282 = vmatprep.mubr.msk.f32.mxu1 %vm8936_vm1, %v8935_v32 }
0x1685   :  { %8295 = vmatprep.subr.mxu1 %v8935_v32 }
0x1687   :  { %8283 = vmatmul.mubr.msk.f32.vlgmr.msra.gmra.mrb[50].mxu1 %vm630_vm2, %v10235_v43 }
0x1688   :  { %8296 = vmatpush3.msra.mxu1 %v8519_v17  ;;  %8297 = vmatprep.mubr.msk.f32.mxu1 %vm8936_vm1, %v8935_v32 }
0x1689   :  { %8300 = vmatprep.subr.mxu1 %v8935_v32 }
0x170b   :  { %v6098_v22 = vpop.xlane.xlu0 %6097  ;;  %v6095_v25 = vpop.xlane.xlu1 %6094 }
0x170f   :  { %v6104_v27 = vpop.xlane.xlu0 %6103  ;;  %v6101_v19 = vpop.xlane.xlu1 %6100 }
0x1752   :  { %v10312_v48 = vpop.f32.mrb[46].mxu1 }
0x1753   :  { %v8264_v55 = vpop.f32.mrb[47].mxu1 }
0x1756   :  { %v10314_v26 = vpop.f32.mrb[48].mxu1 }
0x1757   :  { %v8274_v4 = vpop.f32.mrb[49].mxu1 }
0x175a   :  { %v6402_v47 = vpop.f32.mrb[50].mxu1 }
0x175b   :  { %v8284_v2 = vpop.f32.mrb[51].mxu1  ;;  %v6406_v60 = vmul.f32 %v10272_v37, %v6402_v47  ;;  %v6407_v56 = vmul.f32 %v10268_v36, %v6402_v47  ;;  %v6408_v58 = vmul.f32 %v10286_v42, %v6402_v47  ;;  %v6410_v57 = vmul.f32 %v10321_v62, %v6402_v47 }
0x175c   :  { %v6409_v59 = vmul.f32 %v10282_v28, %v6402_v47  ;;  %v6412_v0 = vmul.f32 %v10327_v46, %v6402_v47  ;;  %v6411_v7 = vmul.f32 %v10332_v30, %v6402_v47  ;;  %v6413_v52 = vmul.f32 %v10339_v38, %v6402_v47 }
0x175d   :  { %v6414_v53 = vsel %vm862_vm3, %v6406_v60, 0.0  ;;  %v6417_v51 = vsel %vm862_vm3, %v6407_v56, 0.0  ;;  %v6420_v34 = vsel %vm862_vm3, %v6408_v58, 0.0  ;;  %v6426_v31 = vsel %vm862_vm3, %v6410_v57, 0.0 }
0x175e   :  { %6415 = vadd.xlane.f32.xlu0 %v6414_v53  ;;  %6418 = vadd.xlane.f32.xlu1 %v6417_v51  ;;  %v6423_v24 = vsel %vm862_vm3, %v6409_v59, 0.0  ;;  %v6432_v63 = vsel %vm862_vm3, %v6412_v0, 0.0  ;;  %v6429_v21 = vsel %vm862_vm3, %v6411_v7, 0.0  ;;  %v6435_v43 = vsel %vm862_vm3, %v6413_v52, 0.0 }
0x175f   :  { %v6132_v2 = vrot.slane %v6098_v22, %v9424_v11  ;;  %v6128_v60 = vrot.slane %v6095_v25, %v9424_v11  ;;  %v6136_v53 = vrot.slane %v6101_v19, %v9424_v11  ;;  %v6140_v0 = vrot.slane %v6104_v27, %v9424_v11 }
0x1760   :  { %v6256_v7 = vmul.f32 0.35355338, %v10314_v26  ;;  %v6335_v52 = vmul.f32 0.35355338, %v10294_v9  ;;  %v5935_v9 = vmul.f32 0.35355338, %v10262_v54 }
0x1761   :  { %v6157_v59 = vsel %vm929_vm4, %v6132_v2, %v6128_v60 }
0x1762   :  { %6421 = vadd.xlane.f32.xlu0 %v6420_v34  ;;  %6427 = vadd.xlane.f32.xlu1 %v6426_v31 }
0x1766   :  { %6424 = vadd.xlane.f32.xlu0 %v6423_v24  ;;  %6433 = vadd.xlane.f32.xlu1 %v6432_v63  ;;  %v6158_v63 = vsel %vm931_vm5, %v6136_v53, %v6157_v59 }
0x176a   :  { %6430 = vadd.xlane.f32.xlu0 %v6429_v21  ;;  %6106 = vadd.xlane.f32.xlu1 %v6105_v41 }
0x176e   :  { %6436 = vadd.xlane.f32.xlu0 %v6435_v43  ;;  %6112 = vadd.xlane.f32.xlu1 %v6111_v14  ;;  %v6159_v14 = vsel %vm933_vm6, %v6140_v0, %v6158_v63 }
0x1772   :  { %6109 = vadd.xlane.f32.xlu0 %v6108_v16 }
0x1776   :  { %6115 = vadd.xlane.f32.xlu0 %v6114_v1 }
0x17eb   :  { %v6416_v3 = vpop.xlane.xlu0 %6415  ;;  %v6419_v61 = vpop.xlane.xlu1 %6418 }
0x17ec   :  { %v6449_v5 = vrot.slane %v6416_v3, %v9424_v11  ;;  %v6453_v40 = vrot.slane %v6419_v61, %v9424_v11 }
0x17ee   :  { %v6478_v29 = vsel %vm929_vm4, %v6453_v40, %v6449_v5 }
0x17ef   :  { %v6422_v12 = vpop.xlane.xlu0 %6421  ;;  %v6428_v13 = vpop.xlane.xlu1 %6427 }
0x17f0   :  { %v6457_v45 = vrot.slane %v6422_v12, %v9424_v11  ;;  %v6465_v4 = vrot.slane %v6428_v13, %v9424_v11  ;;  %v6014_v12 = vmul.f32 0.35355338, %v10312_v48 }
0x17f2   :  { %v6479_v17 = vsel %vm931_vm5, %v6457_v45, %v6478_v29 }
0x17f3   :  { %v6425_v23 = vpop.xlane.xlu0 %6424  ;;  %v6434_v50 = vpop.xlane.xlu1 %6433 }
0x17f4   :  { %v6461_v10 = vrot.slane %v6425_v23, %v9424_v11  ;;  %v6473_v34 = vrot.slane %v6434_v50, %v9424_v11 }
0x17f6   :  { %v6480_v55 = vsel %vm933_vm6, %v6461_v10, %v6479_v17 }
0x17f7   :  { %v6431_v47 = vpop.xlane.xlu0 %6430  ;;  %v6481_v51 = vsel %vm935_vm7, %v6465_v4, %v6480_v55  ;;  %v6107_v57 = vpop.xlane.xlu1 %6106 }
0x17f8   :  { %v6469_v56 = vrot.slane %v6431_v47, %v9424_v11  ;;  %v6144_v6 = vrot.slane %v6107_v57, %v9424_v11 }
0x17fa   :  { %v6482_v58 = vsel %vm937_vm8, %v6469_v56, %v6481_v51  ;;  %v6160_v33 = vsel %vm935_vm7, %v6144_v6, %v6159_v14 }
0x17fb   :  { %v6437_v31 = vpop.xlane.xlu0 %6436  ;;  %v6483_v21 = vsel %vm939_vm9, %v6473_v34, %v6482_v58  ;;  %v6113_v15 = vpop.xlane.xlu1 %6112 }
0x17fc   :  { %v6477_v24 = vrot.slane %v6437_v31, %v9424_v11  ;;  %v6152_v22 = vrot.slane %v6113_v15, %v9424_v11 }
0x17fe   :  { %v6484_v41 = vsel %vm941_vm10, %v6477_v24, %v6483_v21 }
0x17ff   :  { %v6110_v8 = vpop.xlane.xlu0 %6109  ;;  %v6486_v43 = vadd.f32 %v6484_v41, %v6256_v7 }
0x1800   :  { %v6148_v16 = vrot.slane %v6110_v8, %v9424_v11 }
0x1801   :  { %v6487_v1 = vadd.f32 %v6486_v43, %v6335_v52 }
0x1802   :  { %v6161_v26 = vsel %vm937_vm8, %v6148_v16, %v6160_v33 }
0x1803   :  { %v6116_v25 = vpop.xlane.xlu0 %6115  ;;  %v6488_v27 = vsel %vm630_vm2, %v6487_v1, -inf  ;;  %v6162_v3 = vsel %vm939_vm9, %v6152_v22, %v6161_v26 }
0x1804   :  { %v6156_v19 = vrot.slane %v6116_v25, %v9424_v11  ;;  %6489 = vmax.xlane.f32.xlu1 %v6488_v27 }
0x1806   :  { %v6163_v61 = vsel %vm941_vm10, %v6156_v19, %v6162_v3 }
0x1807   :  { %v6165_v13 = vadd.f32 %v6163_v61, %v5935_v9 }
0x1809   :  { %v6166_v5 = vadd.f32 %v6165_v13, %v6014_v12 }
0x180b   :  { %v6167_v40 = vsel %vm630_vm2, %v6166_v5, -inf }
0x180c   :  { %6168 = vmax.xlane.f32.xlu0 %v6167_v40 }
0x1891   :  { %v6490_v45 = vpop.xlane.xlu1 %6489 }
0x1892   :  { %v6491_v23 = vsub.f32 %v6487_v1, %v6490_v45 }
0x1894   :  { %v6492_v29 = vmul.f32 1.442695, %v6491_v23 }
0x1896   :  { %8485 = vpow2.f32 %v6492_v29 }
0x1899   :  { %v6169_v10 = vpop.xlane.xlu0 %6168 }
0x189a   :  { %v6170_v50 = vsub.f32 %v6166_v5, %v6169_v10 }
0x189c   :  { %v6171_v17 = vmul.f32 1.442695, %v6170_v50 }
0x189e   :  { %8487 = vpow2.f32 %v6171_v17 }
0x18a0   :  { %v8486_v54 = vpop.eup %8485 }
0x18a1   :  { %v6494_v55 = vsel %vm630_vm2, %v8486_v54, 0.0 }
0x18a2   :  { %6495 = vadd.xlane.f32.xlu1 %v6494_v55 }
0x18a8   :  { %v8488_v4 = vpop.eup %8487 }
0x18a9   :  { %v6173_v48 = vsel %vm630_vm2, %v8488_v4, 0.0 }
0x18aa   :  { %6174 = vadd.xlane.f32.xlu0 %v6173_v48 }
0x18b3   :  { %6499 = vrot.lane.b32.xlu1 %v9312_v44, %s8944_s20 }
0x18b7   :  { %6810 = vrot.lane.b32.xlu1 %v9306_v39, %s8945_s10 }
0x18bb   :  { %6808 = vrot.lane.b32.xlu1 %v9306_v39, %s8946_s14 }
0x18bf   :  { %7050 = vrot.lane.b32.xlu1 %v9312_v44, %s8946_s14 }
0x18c0   :  { %6579 = vrot.lane.b32.xlu0 %v9304_v35, %s8944_s20 }
0x18c3   :  { %6729 = vrot.lane.b32.xlu1 %v9304_v35, %s8946_s14 }
0x18c4   :  { %7052 = vrot.lane.b32.xlu0 %v9312_v44, %s8945_s10 }
0x18c7   :  { %7129 = vrot.lane.b32.xlu1 %v9318_v49, %s8946_s14 }
0x18c8   :  { %6731 = vrot.lane.b32.xlu0 %v9304_v35, %s8945_s10 }
0x18cc   :  { %7131 = vrot.lane.b32.xlu0 %v9318_v49, %s8945_s10 }
0x192f   :  { %v6496_v39 = vpop.xlane.xlu1 %6495 }
0x1930   :  { %8489 = vrcp.f32 %v6496_v39 }
0x1933   :  { %v6500_v47 = vpop.permute.xlu1 %6499 }
0x1934   :  { %8286 = vmatpush3.msra.mxu0 %v6500_v47 }
0x1935   :  { %8290 = vmatprep.subr.mxu0 %v8935_v32 }
0x1937   :  { %v6175_v2 = vpop.xlane.xlu0 %6174  ;;  %v6811_v49 = vpop.permute.xlu1 %6810 }
0x1938   :  { %8491 = vrcp.f32 %v6175_v2 }
0x193a   :  { %v8490_v60 = vpop.eup %8489 }
0x193b   :  { %v6498_v56 = vmul.f32 %v8490_v60, %v8486_v54  ;;  %v6580_v53 = vpop.permute.xlu0 %6579  ;;  %v6809_v57 = vpop.permute.xlu1 %6808 }
0x193d   :  { %6578 = vst.msk [vmem:[#allocation28 + $0x30] sm:$0xff] %vm630_vm2, %v6498_v56  ;;  %8288 = vmatmul.mubr.msk.f32.vlgmr.msra.gmra.mrb[56].mxu0 %vm630_vm2, %v6498_v56 }
0x193e   :  { %8291 = vmatpush3.msra.mxu0 %v6580_v53  ;;  %8292 = vmatprep.mubr.msk.f32.mxu0 %vm8936_vm1, %v8935_v32 }
0x193f   :  { %8305 = vmatprep.subr.mxu0 %v8935_v32  ;;  %v7053_v34 = vpop.permute.xlu0 %7052  ;;  %v7051_v31 = vpop.permute.xlu1 %7050 }
0x1942   :  { %v8492_v51 = vpop.eup %8491 }
0x1943   :  { %v6177_v58 = vmul.f32 %v8492_v51, %v8488_v4  ;;  %v6732_v0 = vpop.permute.xlu0 %6731  ;;  %v6730_v63 = vpop.permute.xlu1 %6729 }
0x1945   :  { %6576 = vst.msk [vmem:[#allocation26 + $0x30] sm:$0xff] %vm630_vm2, %v6177_v58  ;;  %8293 = vmatmul.mubr.msk.f32.vlgmr.msra.gmra.mrb[56].mxu0 %vm630_vm2, %v6177_v58 }
0x1946   :  { %8306 = vmatpush3.xpose.msk.msra.mxu0 %vm630_vm2, %v6811_v49  ;;  %8307 = vmatprep.mubr.msk.f32.mxu0 %vm8936_vm1, %v8935_v32 }
0x1947   :  { %8315 = vmatprep.subr.mxu0 %v8935_v32  ;;  %v7132_v41 = vpop.permute.xlu0 %7131  ;;  %v7130_v14 = vpop.permute.xlu1 %7129 }
0x1949   :  { %8308 = vmatmul.mubr.msk.f32.vlgmr.msra.gmra.mrb[58].mxu0 %vm630_vm2, %v6809_v57 }
0x194a   :  { %8316 = vmatpush3.xpose.msk.msra.mxu0 %vm630_vm2, %v7053_v34  ;;  %8317 = vmatprep.mubr.msk.f32.mxu0 %vm8936_vm1, %v8935_v32 }
0x194b   :  { %8325 = vmatprep.subr.mxu0 %v8935_v32 }
0x194d   :  { %8318 = vmatmul.mubr.msk.f32.vlgmr.msra.gmra.mrb[60].mxu0 %vm630_vm2, %v7051_v31 }
0x194e   :  { %8326 = vmatpush3.msra.mxu0 %v10301_v20  ;;  %8327 = vmatprep.mubr.msk.f32.mxu0 %vm8936_vm1, %v8935_v32 }
0x1951   :  { %8328 = vmatmul.mubr.msk.f32.vlgmr.msra.gmra.mrb[62].mxu0 %vm630_vm2, %v7051_v31 }
0x1a18   :  { %v6651_v59 = vpop.f32.mrb[56].mxu0 }
0x1a19   :  { %v8294_v24 = vpop.f32.mrb[57].mxu0  ;;  %8298 = vmatmul.mubr.msk.f32.vlgmr.msra.gmra.mrb[44].mxu1 %vm630_vm2, %v6651_v59 }
0x1a1a   :  { %8301 = vmatpush3.xpose.msk.msra.mxu1 %vm630_vm2, %v6732_v0  ;;  %8302 = vmatprep.mubr.msk.f32.mxu1 %vm8936_vm1, %v8935_v32 }
0x1a1b   :  { %8310 = vmatprep.subr.mxu1 %v8935_v32 }
0x1a1c   :  { %v10437_v7 = vpop.f32.mrb[58].mxu0 }
0x1a1d   :  { %8303 = vmatmul.mubr.msk.f32.vlgmr.msra.gmra.mrb[52].mxu1 %vm630_vm2, %v6730_v63  ;;  %v8309_v20 = vpop.f32.mrb[59].mxu0 }
0x1a1e   :  { %8311 = vmatpush3.msra.mxu1 %v10244_v18  ;;  %8312 = vmatprep.mubr.msk.f32.mxu1 %vm8936_vm1, %v8935_v32 }
0x1a1f   :  { %8320 = vmatprep.subr.mxu1 %v8935_v32 }
0x1a20   :  { %v10444_v6 = vpop.f32.mrb[60].mxu0 }
0x1a21   :  { %8313 = vmatmul.mubr.msk.f32.vlgmr.msra.gmra.mrb[54].mxu1 %vm630_vm2, %v6730_v63  ;;  %v8319_v21 = vpop.f32.mrb[61].mxu0 }
0x1a22   :  { %8322 = vmatprep.mubr.msk.f32.mxu1 %vm8936_vm1, %v8935_v32 }
0x1a24   :  { %v7274_v52 = vpop.f32.mrb[62].mxu0 }
0x1a25   :  { %8321 = vmatpush3.xpose.msk.msra.mxu1 %vm630_vm2, %v7132_v41  ;;  %v8329_v8 = vpop.f32.mrb[63].mxu0  ;;  %v7279_v18 = vmul.f32 %v10268_v36, %v7274_v52  ;;  %v7278_v43 = vmul.f32 %v10272_v37, %v7274_v52  ;;  %v7282_v33 = vmul.f32 %v10321_v62, %v7274_v52  ;;  %v7280_v1 = vmul.f32 %v10286_v42, %v7274_v52 }
0x1a26   :  { %8330 = vmatprep.subr.mxu1 %v8935_v32  ;;  %v7284_v22 = vmul.f32 %v10327_v46, %v7274_v52  ;;  %v7281_v27 = vmul.f32 %v10282_v28, %v7274_v52  ;;  %v7283_v3 = vmul.f32 %v10332_v30, %v7274_v52  ;;  %v7285_v12 = vmul.f32 %v10339_v38, %v7274_v52 }
0x1a27   :  { %v7289_v15 = vsel %vm862_vm3, %v7279_v18, 0.0  ;;  %v7286_v16 = vsel %vm862_vm3, %v7278_v43, 0.0  ;;  %v7298_v26 = vsel %vm862_vm3, %v7282_v33, 0.0  ;;  %v7292_v25 = vsel %vm862_vm3, %v7280_v1, 0.0 }
0x1a28   :  { %8323 = vmatmul.mubr.msk.f32.vlgmr.msra.gmra.mrb[56].mxu1 %vm630_vm2, %v7130_v14  ;;  %7290 = vadd.xlane.f32.xlu1 %v7289_v15  ;;  %v7304_v19 = vsel %vm862_vm3, %v7284_v22, 0.0  ;;  %v7295_v9 = vsel %vm862_vm3, %v7281_v27, 0.0  ;;  %v7301_v61 = vsel %vm862_vm3, %v7283_v3, 0.0  ;;  %v7307_v13 = vsel %vm862_vm3, %v7285_v12, 0.0 }
0x1a29   :  { %7287 = vadd.xlane.f32.xlu0 %v7286_v16  ;;  %8332 = vmatprep.mubr.msk.f32.mxu1 %vm8936_vm1, %v8935_v32 }
0x1a2c   :  { %7299 = vadd.xlane.f32.xlu1 %v7298_v26 }
0x1a2d   :  { %7293 = vadd.xlane.f32.xlu0 %v7292_v25 }
0x1a30   :  { %7305 = vadd.xlane.f32.xlu1 %v7304_v19 }
0x1a31   :  { %7296 = vadd.xlane.f32.xlu0 %v7295_v9 }
0x1a35   :  { %7302 = vadd.xlane.f32.xlu0 %v7301_v61 }
0x1a39   :  { %7308 = vadd.xlane.f32.xlu0 %v7307_v13 }
0x1ab5   :  { %v7291_v23 = vpop.xlane.xlu1 %7290 }
0x1ab6   :  { %v7288_v5 = vpop.xlane.xlu0 %7287  ;;  %v7325_v29 = vrot.slane %v7291_v23, %v9424_v11 }
0x1ab7   :  { %v7321_v10 = vrot.slane %v7288_v5, %v9424_v11 }
0x1ab9   :  { %v7300_v54 = vpop.xlane.xlu1 %7299  ;;  %v7350_v4 = vsel %vm929_vm4, %v7325_v29, %v7321_v10 }
0x1aba   :  { %v7294_v40 = vpop.xlane.xlu0 %7293  ;;  %v7337_v56 = vrot.slane %v7300_v54, %v9424_v11 }
0x1abb   :  { %v7329_v50 = vrot.slane %v7294_v40, %v9424_v11 }
0x1abd   :  { %v7351_v48 = vsel %vm931_vm5, %v7329_v50, %v7350_v4  ;;  %v7306_v49 = vpop.xlane.xlu1 %7305 }
0x1abe   :  { %v7297_v45 = vpop.xlane.xlu0 %7296  ;;  %v7345_v24 = vrot.slane %v7306_v49, %v9424_v11 }
0x1abf   :  { %v7333_v55 = vrot.slane %v7297_v45, %v9424_v11 }
0x1ac1   :  { %v7352_v47 = vsel %vm933_vm6, %v7333_v55, %v7351_v48 }
0x1ac2   :  { %v7303_v17 = vpop.xlane.xlu0 %7302  ;;  %v7353_v51 = vsel %vm935_vm7, %v7337_v56, %v7352_v47 }
0x1ac3   :  { %v7341_v2 = vrot.slane %v7303_v17, %v9424_v11 }
0x1ac5   :  { %v7354_v57 = vsel %vm937_vm8, %v7341_v2, %v7353_v51 }
0x1ac6   :  { %v7309_v53 = vpop.xlane.xlu0 %7308  ;;  %v7355_v52 = vsel %vm939_vm9, %v7345_v24, %v7354_v57 }
0x1ac7   :  { %v7349_v34 = vrot.slane %v7309_v53, %v9424_v11  ;;  %v6886_v53 = vmul.f32 0.35355338, %v10437_v7 }
0x1ac9   :  { %v7356_v8 = vsel %vm941_vm10, %v7349_v34, %v7355_v52 }
0x1af0   :  { %v10476_v39 = vpop.f32.mrb[52].mxu1 }
0x1af1   :  { %v8304_v60 = vpop.f32.mrb[53].mxu1  ;;  %v6807_v47 = vmul.f32 0.35355338, %v10476_v39 }
0x1af4   :  { %v6953_v58 = vpop.f32.mrb[54].mxu1 }
0x1af5   :  { %v8314_v31 = vpop.f32.mrb[55].mxu1  ;;  %v6957_v59 = vmul.f32 %v10272_v37, %v6953_v58  ;;  %v6958_v0 = vmul.f32 %v10268_v36, %v6953_v58  ;;  %v6959_v21 = vmul.f32 %v10286_v42, %v6953_v58  ;;  %v6960_v41 = vmul.f32 %v10282_v28, %v6953_v58 }
0x1af6   :  { %v7128_v37 = vmul.f32 0.35355338, %v10444_v6  ;;  %v6961_v14 = vmul.f32 %v10321_v62, %v6953_v58  ;;  %v6962_v15 = vmul.f32 %v10332_v30, %v6953_v58  ;;  %v6963_v6 = vmul.f32 %v10327_v46, %v6953_v58 }
0x1af7   :  { %v6965_v63 = vsel %vm862_vm3, %v6957_v59, 0.0  ;;  %v6968_v20 = vsel %vm862_vm3, %v6958_v0, 0.0  ;;  %v6971_v36 = vsel %vm862_vm3, %v6959_v21, 0.0  ;;  %v6974_v43 = vsel %vm862_vm3, %v6960_v41, 0.0 }
0x1af8   :  { %6966 = vadd.xlane.f32.xlu1 %v6965_v63  ;;  %6969 = vadd.xlane.f32.xlu0 %v6968_v20  ;;  %v7358_v16 = vadd.f32 %v7356_v8, %v7128_v37  ;;  %v6977_v1 = vsel %vm862_vm3, %v6961_v14, 0.0  ;;  %v6980_v26 = vsel %vm862_vm3, %v6962_v15, 0.0  ;;  %v6964_v22 = vmul.f32 %v10339_v38, %v6953_v58 }
0x1af9   :  { %v6983_v62 = vsel %vm862_vm3, %v6963_v6, 0.0 }
0x1afa   :  { %v6986_v30 = vsel %vm862_vm3, %v6964_v22, 0.0 }
0x1afb   :  { %v7203_v18 = vpop.f32.mrb[56].mxu1 }
0x1afc   :  { %v7207_v42 = vmul.f32 0.35355338, %v7203_v18  ;;  %v8324_v28 = vpop.f32.mrb[57].mxu1  ;;  %6972 = vadd.xlane.f32.xlu1 %v6971_v36  ;;  %6975 = vadd.xlane.f32.xlu0 %v6974_v43  ;;  %v8524_v18 = vld [vmem:[#allocation22 + $0x18] sm:$0xff] }
0x1afe   :  { %v7359_v33 = vadd.f32 %v7358_v16, %v7207_v42 }
0x1b00   :  { %6978 = vadd.xlane.f32.xlu1 %v6977_v1  ;;  %6981 = vadd.xlane.f32.xlu0 %v6980_v26  ;;  %v7360_v25 = vsel %vm630_vm2, %v7359_v33, -inf }
0x1b04   :  { %6984 = vadd.xlane.f32.xlu1 %v6983_v62  ;;  %6987 = vadd.xlane.f32.xlu0 %v6986_v30 }
0x1b08   :  { %7361 = vmax.xlane.f32.xlu1 %v7360_v25 }
0x1b85   :  { %v6967_v27 = vpop.xlane.xlu1 %6966  ;;  %v6970_v19 = vpop.xlane.xlu0 %6969 }
0x1b86   :  { %v7000_v9 = vrot.slane %v6967_v27, %v9424_v11  ;;  %v7004_v3 = vrot.slane %v6970_v19, %v9424_v11 }
0x1b88   :  { %v7029_v12 = vsel %vm929_vm4, %v7004_v3, %v7000_v9 }
0x1b89   :  { %v6973_v46 = vpop.xlane.xlu1 %6972  ;;  %v6976_v61 = vpop.xlane.xlu0 %6975 }
0x1b8a   :  { %v7008_v38 = vrot.slane %v6973_v46, %v9424_v11  ;;  %v7012_v13 = vrot.slane %v6976_v61, %v9424_v11 }
0x1b8c   :  { %v7030_v5 = vsel %vm931_vm5, %v7008_v38, %v7029_v12 }
0x1b8d   :  { %v6979_v40 = vpop.xlane.xlu1 %6978  ;;  %v6982_v45 = vpop.xlane.xlu0 %6981  ;;  %v7031_v29 = vsel %vm933_vm6, %v7012_v13, %v7030_v5 }
0x1b8e   :  { %v7016_v23 = vrot.slane %v6979_v40, %v9424_v11  ;;  %v7020_v10 = vrot.slane %v6982_v45, %v9424_v11 }
0x1b90   :  { %v7032_v50 = vsel %vm935_vm7, %v7016_v23, %v7031_v29 }
0x1b91   :  { %v6985_v17 = vpop.xlane.xlu1 %6984  ;;  %v6988_v54 = vpop.xlane.xlu0 %6987  ;;  %v7033_v48 = vsel %vm937_vm8, %v7020_v10, %v7032_v50 }
0x1b92   :  { %v7024_v55 = vrot.slane %v6985_v17, %v9424_v11  ;;  %v7028_v4 = vrot.slane %v6988_v54, %v9424_v11 }
0x1b94   :  { %v7034_v2 = vsel %vm939_vm9, %v7024_v55, %v7033_v48 }
0x1b95   :  { %v7035_v60 = vsel %vm941_vm10, %v7028_v4, %v7034_v2  ;;  %v7362_v56 = vpop.xlane.xlu1 %7361 }
0x1b96   :  { %v7363_v49 = vsub.f32 %v7359_v33, %v7362_v56  ;;  %v7037_v51 = vadd.f32 %v7035_v60, %v6807_v47 }
0x1b98   :  { %v7364_v58 = vmul.f32 1.442695, %v7363_v49  ;;  %v7038_v57 = vadd.f32 %v7037_v51, %v6886_v53 }
0x1b9a   :  { %8493 = vpow2.f32 %v7364_v58  ;;  %v7039_v34 = vsel %vm630_vm2, %v7038_v57, -inf }
0x1b9b   :  { %7040 = vmax.xlane.f32.xlu0 %v7039_v34 }
0x1ba4   :  { %v8494_v11 = vpop.eup %8493 }
0x1ba5   :  { %v7366_v31 = vsel %vm630_vm2, %v8494_v11, 0.0 }
0x1ba6   :  { %7367 = vadd.xlane.f32.xlu1 %v7366_v31 }
0x1bb7   :  { %7371 = vrot.lane.b32.xlu1 %v9312_v44, %s8947_s27 }
0x1c28   :  { %v7041_v39 = vpop.xlane.xlu0 %7040 }
0x1c29   :  { %v7042_v59 = vsub.f32 %v7038_v57, %v7041_v39 }
0x1c2b   :  { %v7043_v0 = vmul.f32 1.442695, %v7042_v59 }
0x1c2d   :  { %8495 = vpow2.f32 %v7043_v0 }
0x1c33   :  { %v7368_v7 = vpop.xlane.xlu1 %7367 }
0x1c34   :  { %8497 = vrcp.f32 %v7368_v7 }
0x1c37   :  { %v8496_v24 = vpop.eup %8495  ;;  %v7372_v63 = vpop.permute.xlu1 %7371 }
0x1c38   :  { %8331 = vmatpush3.msra.mxu1 %v7372_v63  ;;  %v7045_v20 = vsel %vm630_vm2, %v8496_v24, 0.0 }
0x1c39   :  { %7046 = vadd.xlane.f32.xlu0 %v7045_v20  ;;  %8335 = vmatprep.subr.mxu1 %v8935_v32 }
0x1c3e   :  { %v8498_v21 = vpop.eup %8497 }
0x1c3f   :  { %v7370_v41 = vmul.f32 %v8498_v21, %v8494_v11 }
0x1c41   :  { %7450 = vst.msk [vmem:[#allocation28 + $0x38] sm:$0xff] %vm630_vm2, %v7370_v41  ;;  %8333 = vmatmul.mubr.msk.f32.vlgmr.msra.gmra.mrb[58].mxu1 %vm630_vm2, %v7370_v41 }
0x1c42   :  { %8337 = vmatprep.mubr.msk.f32.mxu1 %vm8936_vm1, %v8935_v32 }
0x1c4f   :  { %7451 = vrot.lane.b32.xlu0 %v9304_v35, %s8947_s27 }
0x1cc6   :  { %v7047_v44 = vpop.xlane.xlu0 %7046 }
0x1cc7   :  { %8499 = vrcp.f32 %v7047_v44 }
0x1cca   :  { %v7452_v52 = vpop.permute.xlu0 %7451 }
0x1ccb   :  { %8336 = vmatpush3.msra.mxu1 %v7452_v52 }
0x1ccc   :  { %8340 = vmatprep.subr.mxu1 %v8935_v32 }
0x1cd1   :  { %v8500_v8 = vpop.eup %8499 }
0x1cd2   :  { %v7049_v37 = vmul.f32 %v8500_v8, %v8496_v24 }
0x1cd4   :  { %7448 = vst.msk [vmem:[#allocation26 + $0x38] sm:$0xff] %vm630_vm2, %v7049_v37  ;;  %8338 = vmatmul.mubr.msk.f32.vlgmr.msra.gmra.mrb[58].mxu1 %vm630_vm2, %v7049_v37 }
0x1cd5   :  { %8341 = vmatpush3.msra.mxu1 %v8524_v18  ;;  %8342 = vmatprep.mubr.msk.f32.mxu1 %vm8936_vm1, %v8935_v32 }
0x1da7   :  { %v7523_v36 = vpop.f32.mrb[58].mxu1 }
0x1da8   :  { %v8339_v43 = vpop.f32.mrb[59].mxu1  ;;  %8343 = vmatmul.mubr.msk.f32.vlgmr.msra.gmra.mrb[44].mxu1 %vm630_vm2, %v7523_v36 }
0x1da9   :  { %8844 = shalt.err (!%p8841_p4)
}
0x1daa   :  { %s8845_s19 = scalar_lea.hbm %s10603_s17, 1024 }
0x1dab   :  { %p8846_p5 = scmp.ne.s32.totalorder %s10603_s17, %s8845_s19  ;;  %p8849_p6 = scmp.lt.u32.totalorder %s8845_s19, %s10603_s17 }
0x1dad   :  { %p8851_p7 = pnand %p8849_p6, %p8846_p5 }
0x1daf   :  { %8854 = shalt.err (!%p8851_p7)
}
0x1db0   :  { %7625 = dma.vmem_to_hbm [thread:$0]  %s7620_s11, 1024, %s10603_s17, [#allocation27], %s8921_s25, %s8921_s25, %s8922_s26  }
0x1db1   :  { %s8949_s12 = smov [#allocation28]  }
0x1db2   :  { %s7631_s3 = sshll.u32 %s8949_s12, 4  ;;  %s7632_s3 = int_to_ptr.vmem [resolvable:$true] %s7631_s3 }
0x1db3   :  { %s8855_s4 = scalar_lea.vmem %s7632_s3, 1024  ;;  %p8860_p9 = scmp.lt.s32.totalorder %s7632_s3, %s7632_s3 }
0x1db4   :  { %p8856_p8 = scmp.ne.s32.totalorder %s7632_s3, %s8855_s4  ;;  %p8861_p10 = scmp.lt.s32.totalorder %s8855_s4, %s8855_s4 }
0x1db6   :  { %p8862_p11 = por %p8861_p10, %p8860_p9 }
0x1db8   :  { %p8863_p12 = pnand %p8862_p11, %p8856_p8 }
0x1dba   :  { %8866 = shalt.err (!%p8863_p12)
}
0x1dbb   :  { %s8867_s13 = scalar_lea.hbm %s10604_s18, 1024 }
0x1dbc   :  { %p8868_p13 = scmp.ne.s32.totalorder %s10604_s18, %s8867_s13  ;;  %p8871_p0 = scmp.lt.u32.totalorder %s8867_s13, %s10604_s18 }
0x1dbe   :  { %p8873_p1 = pnand %p8871_p0, %p8868_p13 }
0x1dc0   :  { %8876 = shalt.err (!%p8873_p1)
}
0x1dc1   :  { %7637 = dma.vmem_to_hbm [thread:$0]  %s7632_s3, 1024, %s10604_s18, [#allocation27], %s8921_s25, %s8921_s25, %s8922_s26  }
0x1dc2   :  { %s8950_s20 = smov [#allocation25]  }
0x1dc3   :  { %s7607_s10 = sshll.u32 %s8950_s20, 4  ;;  %s7608_s10 = int_to_ptr.vmem [resolvable:$true] %s7607_s10 }
0x1dc4   :  { %s8877_s14 = scalar_lea.vmem %s7608_s10, 256  ;;  %p8882_p3 = scmp.lt.s32.totalorder %s7608_s10, %s7608_s10 }
0x1dc5   :  { %p8878_p2 = scmp.ne.s32.totalorder %s7608_s10, %s8877_s14  ;;  %p8883_p4 = scmp.lt.s32.totalorder %s8877_s14, %s8877_s14 }
0x1dc7   :  { %p8884_p5 = por %p8883_p4, %p8882_p3 }
0x1dc9   :  { %p8885_p6 = pnand %p8884_p5, %p8878_p2 }
0x1e7b   :  { %v7596_v32 = vpop.f32.mrb[44].mxu1 }
0x1e7c   :  { %7601 = vst.msk [vmem:[#allocation25 + $0x8] sm:$0xff] %vm249_vm0, %v7596_v32  ;;  %v8344_v35 = vpop.f32.mrb[45].mxu1 }
0x1e7d   :  { %8888 = shalt.err (!%p8885_p6)
}
0x1e7e   :  { %s10616_s11 = sld [smem:[#allocation42_spill]] }
0x1e84   :  { %s8889_s15 = scalar_lea.hbm %s10616_s11, 256 }
0x1e85   :  { %p8890_p7 = scmp.ne.s32.totalorder %s10616_s11, %s8889_s15  ;;  %p8893_p8 = scmp.lt.u32.totalorder %s8889_s15, %s10616_s11 }
0x1e87   :  { %p8895_p9 = pnand %p8893_p8, %p8890_p7 }
0x1e89   :  { %8898 = shalt.err (!%p8895_p9)
}
0x1e8a   :  { %7613 = dma.vmem_to_hbm [thread:$0]  %s7608_s10, 256, %s10616_s11, [#allocation4], %s8921_s25, %s8921_s25, %s8922_s26  }
0x1e8b   :  { %8915 = dma.done.wait [#allocation4], 256  }
0x1e8c   :  { %8916 = vsyncadd [#allocation4], 4294967040 }
0x1e8d   :  { %8917 = dma.done.wait [#allocation27], 2048  }
0x1e8e   :  { %8918 = vsyncadd [#allocation27], 4294965248 }
0x1e8f   :  { %7647 = vsyncpa [#allocation3], 1 }
0x1e90   :  { %7648 = vsyncpa [#allocation6], 1 }
0x1e91   :  { %7649 = vsyncpa [#allocation9], 1 }
0x1e92   :  { %7650 = vsyncpa [#allocation12], 1 }
0x1e93   :  { %7651 = vsyncpa [#allocation15], 1 }
0x1e94   :  { %7652 = vsyncpa [#allocation18], 1 }
0x1e95   :  { %7653 = vsyncpa [#allocation21], 1 }
0x1e96   :  { %7654 = vsyncpa [#allocation24], 1 }
0x1e97   :  { %7655 = vsyncpa [#allocation4], 1 }
0x1e98   :  { %7656 = vsyncpa [#allocation27], 1 }

</bundles_post_ra>
